<compile_context>
chip_gen: v6e
topology: v6e:2x2x1
jax: 0.10.0
libtpu: 0.0.40
codegen_flags: <defaults>
</compile_context>

<pallas_src>
import jax
import jax.numpy as jnp
from jax.experimental import pallas as pl
from jax.experimental.pallas import tpu as pltpu

K = 8                 # conv kernel size      (from "k8")
D = 8                 # conv dilation         (from "d8")
C = 4                 # hidden channels       (synthetic choice)
PAD = (K - 1) * D     # causal receptive field = 56
OFF = 128             # lane-aligned left pad inside scratch (>= PAD, multiple of 128)


def _round_up(x, m):
    return (x + m - 1) // m * m


def _sdn_kernel(x_ref, w1_ref, b1_ref, w2_ref, b2_ref, w3_ref, b3_ref,
                o_ref, xpad_ref, h1_ref, hr_ref):
    R, L = x_ref.shape
    x = x_ref[...].astype(jnp.float32)

    zpad = jnp.zeros((R, OFF), jnp.float32)

    # ---- causal padding: zeros at [:, :OFF], data (lane-aligned) at [:, OFF:OFF+L] ----
    xpad_ref[:, :OFF] = zpad
    xpad_ref[:, OFF:OFF + L] = x
    # only the pad region of the activation scratch needs zeros (taps with t < K-1 read it)
    for c in range(C):
        h1_ref[c, :, :OFF] = zpad
        hr_ref[c, :, :OFF] = zpad

    # ---- c1: Conv1d(1 -> C, k=K, dilation=D), causal ----
    # taps outer / channels inner: each shifted slice is loaded once; the C accumulators
    # are independent chains so the VALU slots stay full.
    acc1 = [jnp.full((R, L), b1_ref[c], jnp.float32) for c in range(C)]
    for t in range(K):
        off_t = OFF - (K - 1 - t) * D
        src = xpad_ref[:, off_t:off_t + L]
        for c in range(C):
            acc1[c] = acc1[c] + w1_ref[c * K + t] * src
    for c in range(C):
        h1_ref[c, :, OFF:OFF + L] = acc1[c]        # lane-aligned store

    # ---- c2: Conv1d(C -> C) + residual(c1) + relu ----
    acc2 = [jnp.full((R, L), b2_ref[co], jnp.float32) for co in range(C)]
    for ci in range(C):
        for t in range(K):
            off_t = OFF - (K - 1 - t) * D
            src = h1_ref[ci, :, off_t:off_t + L]   # loaded once, used by all C outputs
            for co in range(C):
                acc2[co] = acc2[co] + w2_ref[(co * C + ci) * K + t] * src
    for co in range(C):
        res = acc2[co] + h1_ref[co, :, OFF:OFF + L]            # residual branch c1(x)
        hr_ref[co, :, OFF:OFF + L] = jnp.maximum(res, 0.0)     # lane-aligned store

    # ---- c3: Conv1d(C -> 1, k=K, dilation=D) -> mem (one partial accumulator per ci) ----
    acc3 = [jnp.zeros((R, L), jnp.float32) for _ in range(C)]
    for ci in range(C):
        for t in range(K):
            off_t = OFF - (K - 1 - t) * D
            acc3[ci] = acc3[ci] + w3_ref[ci * K + t] * hr_ref[ci, :, off_t:off_t + L]
    mem = (acc3[0] + acc3[1]) + (acc3[2] + acc3[3]) + b3_ref[0]

    # ---- surrogate forward (Heaviside): s = (mem + x - 1 >= 0), written in caller dtype ----
    v = mem + x - 1.0
    o_ref[...] = (v >= 0.0).astype(o_ref.dtype)


def init_params(key):
    k1, k2, k3, k4, k5, k6 = jax.random.split(key, 6)
    w1 = 0.3 * jax.random.normal(k1, (C, K), jnp.float32)       # c1 weight (Cout=C, Cin=1, K)
    b1 = 0.1 * jax.random.normal(k2, (C,), jnp.float32)
    w2 = 0.3 * jax.random.normal(k3, (C, C, K), jnp.float32)    # c2 weight
    b2 = 0.1 * jax.random.normal(k4, (C,), jnp.float32)
    w3 = 0.3 * jax.random.normal(k5, (C, K), jnp.float32)       # c3 weight (Cout=1, Cin=C, K)
    b3 = 0.1 * jax.random.normal(k6, (1,), jnp.float32)
    return w1, b1, w2, b2, w3, b3


def sdn_neuron_forward(x, params, *, vmem_budget_bytes=24 * 1024 * 1024):
    w1, b1, w2, b2, w3, b3 = params
    shape = x.shape
    L = shape[-1]
    R = x.size // L
    x2d = x.reshape(R, L)
    itemsize = jnp.dtype(x.dtype).itemsize

    # scratch width: lane-aligned left pad + data rounded up to full lanes
    Lp = OFF + _round_up(L, 128)

    # per-row VMEM bytes: (2C+1) f32 scratch rows + double-buffered in/out tiles + headroom
    # for a handful of live (R_TILE, L) f32 accumulator values inside the kernel.
    bytes_per_row = (2 * C + 1) * Lp * 4 + 2 * 2 * L * itemsize + 6 * L * 4
    r_tile = min(256, _round_up(R, 8),
                 max(8, (vmem_budget_bytes // bytes_per_row) // 8 * 8))
    r_pad = _round_up(R, r_tile)
    if r_pad != R:
        x2d = jnp.pad(x2d, ((0, r_pad - R), (0, 0)))
    grid = (r_pad // r_tile,)

    vmem_limit = int(min(96 << 20, max(16 << 20, r_tile * bytes_per_row + (4 << 20))))

    smem = pl.BlockSpec(memory_space=pltpu.MemorySpace.SMEM)
    tile_spec = pl.BlockSpec((r_tile, L), lambda i: (i, 0))

    out2d = pl.pallas_call(
        _sdn_kernel,
        out_shape=jax.ShapeDtypeStruct((r_pad, L), x.dtype),
        grid=grid,
        in_specs=[tile_spec, smem, smem, smem, smem, smem, smem],
        out_specs=tile_spec,
        scratch_shapes=[
            pltpu.VMEM((r_tile, Lp), jnp.float32),      # padded input
            pltpu.VMEM((C, r_tile, Lp), jnp.float32),   # padded c1 activations
            pltpu.VMEM((C, r_tile, Lp), jnp.float32),   # padded relu(c2+c1) activations
        ],
        compiler_params=pltpu.CompilerParams(
            dimension_semantics=("parallel",),
            vmem_limit_bytes=vmem_limit,
        ),
    )(x2d,
      w1.reshape(-1).astype(jnp.float32), b1.astype(jnp.float32),
      w2.reshape(-1).astype(jnp.float32), b2.astype(jnp.float32),
      w3.reshape(-1).astype(jnp.float32), b3.astype(jnp.float32))
    return out2d[:R].reshape(shape)


def _ref_forward(x, params):
    """Pure-JAX reference mirroring the kernel math (same summation order)."""
    w1, b1, w2, b2, w3, b3 = params
    shape = x.shape
    L = shape[-1]
    x2d = x.reshape(-1, L).astype(jnp.float32)
    R = x2d.shape[0]
    xp = jnp.pad(x2d, ((0, 0), (PAD, 0)))

    acc1 = [jnp.full((R, L), b1[c], jnp.float32) for c in range(C)]
    for t in range(K):
        src = xp[:, t * D:t * D + L]
        for c in range(C):
            acc1[c] = acc1[c] + w1[c, t] * src
    h1 = acc1
    h1p = [jnp.pad(h, ((0, 0), (PAD, 0))) for h in h1]

    acc2 = [jnp.full((R, L), b2[co], jnp.float32) for co in range(C)]
    for ci in range(C):
        for t in range(K):
            src = h1p[ci][:, t * D:t * D + L]
            for co in range(C):
                acc2[co] = acc2[co] + w2[co, ci, t] * src
    hr = [jnp.maximum(acc2[co] + h1[co], 0.0) for co in range(C)]
    hrp = [jnp.pad(h, ((0, 0), (PAD, 0))) for h in hr]

    acc3 = [jnp.zeros((R, L), jnp.float32) for _ in range(C)]
    for ci in range(C):
        for t in range(K):
            acc3[ci] = acc3[ci] + w3[ci, t] * hrp[ci][:, t * D:t * D + L]
    mem = (acc3[0] + acc3[1]) + (acc3[2] + acc3[3]) + b3[0]
    v = mem + x2d - 1.0
    return (v >= 0.0).astype(jnp.float32).reshape(shape)


if __name__ == "__main__":
    key = jax.random.PRNGKey(0)
    kx, kp = jax.random.split(key)
    # batch=2, channels=4, seq(last dim, conv axis)=128 -> reshaped to (8, 1, 128) by pred()
    x = jax.random.uniform(kx, (2, 4, 128), dtype=jnp.float32)
    params = init_params(kp)

    out = jax.block_until_ready(sdn_neuron_forward(x, params))
    ref = _ref_forward(x, params)

    assert out.shape == x.shape and out.dtype == x.dtype
    err = float(jnp.mean(jnp.abs(out.astype(jnp.float32) - ref)))
    assert err < 1e-3, f"mismatch vs pure-JAX reference: {err}"
    print("KERNEL_OK")
</pallas_src>

<mosaic_0001>
module attributes {stable_mosaic.version = 11 : i64} {
  func.func @_sdn_kernel(%arg0: i32, %arg1: memref<8x128xf32, #tpu.memory_space<vmem>>, %arg2: memref<32xf32, #tpu.memory_space<smem>>, %arg3: memref<4xf32, #tpu.memory_space<smem>>, %arg4: memref<128xf32, #tpu.memory_space<smem>>, %arg5: memref<4xf32, #tpu.memory_space<smem>>, %arg6: memref<32xf32, #tpu.memory_space<smem>>, %arg7: memref<1xf32, #tpu.memory_space<smem>>, %arg8: memref<8x128xf32, #tpu.memory_space<vmem>>, %arg9: memref<8x256xf32, #tpu.memory_space<vmem>>, %arg10: memref<4x8x256xf32, #tpu.memory_space<vmem>>, %arg11: memref<4x8x256xf32, #tpu.memory_space<vmem>>) attributes {dimension_semantics = [#tpu.dimension_semantics<parallel>], iteration_bounds = array<i64: 1>, scalar_prefetch = 0 : i64, scratch_operands = 3 : i64, tpu.core_type = #tpu.core_type<tc>, window_params = [{transform_indices = @transform_0, window_bounds = array<i64: 8, 128>}, {transform_indices = @transform_1, window_bounds = array<i64: 32>}, {transform_indices = @transform_2, window_bounds = array<i64: 4>}, {transform_indices = @transform_3, window_bounds = array<i64: 128>}, {transform_indices = @transform_4, window_bounds = array<i64: 4>}, {transform_indices = @transform_5, window_bounds = array<i64: 32>}, {transform_indices = @transform_6, window_bounds = array<i64: 1>}, {transform_indices = @transform_7, window_bounds = array<i64: 8, 128>}]} {
    %c0 = arith.constant 0 : index
    %c0_0 = arith.constant 0 : index
    %0 = vector.load %arg1[%c0, %c0_0] : memref<8x128xf32, #tpu.memory_space<vmem>>, vector<8x128xf32>
    %cst = arith.constant 0.000000e+00 : f32
    %1 = vector.broadcast %cst : f32 to vector<8x128xf32>
    %c0_1 = arith.constant 0 : index
    %c0_2 = arith.constant 0 : index
    %2 = vector.load %arg9[%c0_1, %c0_2] : memref<8x256xf32, #tpu.memory_space<vmem>>, vector<8x128xf32>
    tpu.vector_store %arg9[%c0_1, %c0_2], %1 {strides = array<i32>} : memref<8x256xf32, #tpu.memory_space<vmem>>, vector<8x128xf32>,
    %c0_3 = arith.constant 0 : index
    %c128 = arith.constant 128 : index
    %3 = vector.load %arg9[%c0_3, %c128] : memref<8x256xf32, #tpu.memory_space<vmem>>, vector<8x128xf32>
    tpu.vector_store %arg9[%c0_3, %c128], %0 {strides = array<i32>} : memref<8x256xf32, #tpu.memory_space<vmem>>, vector<8x128xf32>,
    %c0_4 = arith.constant 0 : index
    %c0_5 = arith.constant 0 : index
    %c0_6 = arith.constant 0 : index
    %4 = vector.load %arg10[%c0_4, %c0_5, %c0_6] : memref<4x8x256xf32, #tpu.memory_space<vmem>>, vector<1x8x128xf32>
    %5 = vector.shape_cast %4 : vector<1x8x128xf32> to vector<8x128xf32>
    %6 = vector.shape_cast %1 : vector<8x128xf32> to vector<1x8x128xf32>
    tpu.vector_store %arg10[%c0_4, %c0_5, %c0_6], %6 {strides = array<i32>} : memref<4x8x256xf32, #tpu.memory_space<vmem>>, vector<1x8x128xf32>,
    %c0_7 = arith.constant 0 : index
    %c0_8 = arith.constant 0 : index
    %c0_9 = arith.constant 0 : index
    %7 = vector.load %arg11[%c0_7, %c0_8, %c0_9] : memref<4x8x256xf32, #tpu.memory_space<vmem>>, vector<1x8x128xf32>
    %8 = vector.shape_cast %7 : vector<1x8x128xf32> to vector<8x128xf32>
    %9 = vector.shape_cast %1 : vector<8x128xf32> to vector<1x8x128xf32>
    tpu.vector_store %arg11[%c0_7, %c0_8, %c0_9], %9 {strides = array<i32>} : memref<4x8x256xf32, #tpu.memory_space<vmem>>, vector<1x8x128xf32>,
    %c1 = arith.constant 1 : index
    %c0_10 = arith.constant 0 : index
    %c0_11 = arith.constant 0 : index
    %10 = vector.load %arg10[%c1, %c0_10, %c0_11] : memref<4x8x256xf32, #tpu.memory_space<vmem>>, vector<1x8x128xf32>
    %11 = vector.shape_cast %10 : vector<1x8x128xf32> to vector<8x128xf32>
    %12 = vector.shape_cast %1 : vector<8x128xf32> to vector<1x8x128xf32>
    tpu.vector_store %arg10[%c1, %c0_10, %c0_11], %12 {strides = array<i32>} : memref<4x8x256xf32, #tpu.memory_space<vmem>>, vector<1x8x128xf32>,
    %c1_12 = arith.constant 1 : index
    %c0_13 = arith.constant 0 : index
    %c0_14 = arith.constant 0 : index
    %13 = vector.load %arg11[%c1_12, %c0_13, %c0_14] : memref<4x8x256xf32, #tpu.memory_space<vmem>>, vector<1x8x128xf32>
    %14 = vector.shape_cast %13 : vector<1x8x128xf32> to vector<8x128xf32>
    %15 = vector.shape_cast %1 : vector<8x128xf32> to vector<1x8x128xf32>
    tpu.vector_store %arg11[%c1_12, %c0_13, %c0_14], %15 {strides = array<i32>} : memref<4x8x256xf32, #tpu.memory_space<vmem>>, vector<1x8x128xf32>,
    %c2 = arith.constant 2 : index
    %c0_15 = arith.constant 0 : index
    %c0_16 = arith.constant 0 : index
    %16 = vector.load %arg10[%c2, %c0_15, %c0_16] : memref<4x8x256xf32, #tpu.memory_space<vmem>>, vector<1x8x128xf32>
    %17 = vector.shape_cast %16 : vector<1x8x128xf32> to vector<8x128xf32>
    %18 = vector.shape_cast %1 : vector<8x128xf32> to vector<1x8x128xf32>
    tpu.vector_store %arg10[%c2, %c0_15, %c0_16], %18 {strides = array<i32>} : memref<4x8x256xf32, #tpu.memory_space<vmem>>, vector<1x8x128xf32>,
    %c2_17 = arith.constant 2 : index
    %c0_18 = arith.constant 0 : index
    %c0_19 = arith.constant 0 : index
    %19 = vector.load %arg11[%c2_17, %c0_18, %c0_19] : memref<4x8x256xf32, #tpu.memory_space<vmem>>, vector<1x8x128xf32>
    %20 = vector.shape_cast %19 : vector<1x8x128xf32> to vector<8x128xf32>
    %21 = vector.shape_cast %1 : vector<8x128xf32> to vector<1x8x128xf32>
    tpu.vector_store %arg11[%c2_17, %c0_18, %c0_19], %21 {strides = array<i32>} : memref<4x8x256xf32, #tpu.memory_space<vmem>>, vector<1x8x128xf32>,
    %c3 = arith.constant 3 : index
    %c0_20 = arith.constant 0 : index
    %c0_21 = arith.constant 0 : index
    %22 = vector.load %arg10[%c3, %c0_20, %c0_21] : memref<4x8x256xf32, #tpu.memory_space<vmem>>, vector<1x8x128xf32>
    %23 = vector.shape_cast %22 : vector<1x8x128xf32> to vector<8x128xf32>
    %24 = vector.shape_cast %1 : vector<8x128xf32> to vector<1x8x128xf32>
    tpu.vector_store %arg10[%c3, %c0_20, %c0_21], %24 {strides = array<i32>} : memref<4x8x256xf32, #tpu.memory_space<vmem>>, vector<1x8x128xf32>,
    %c3_22 = arith.constant 3 : index
    %c0_23 = arith.constant 0 : index
    %c0_24 = arith.constant 0 : index
    %25 = vector.load %arg11[%c3_22, %c0_23, %c0_24] : memref<4x8x256xf32, #tpu.memory_space<vmem>>, vector<1x8x128xf32>
    %26 = vector.shape_cast %25 : vector<1x8x128xf32> to vector<8x128xf32>
    %27 = vector.shape_cast %1 : vector<8x128xf32> to vector<1x8x128xf32>
    tpu.vector_store %arg11[%c3_22, %c0_23, %c0_24], %27 {strides = array<i32>} : memref<4x8x256xf32, #tpu.memory_space<vmem>>, vector<1x8x128xf32>,
    %c0_25 = arith.constant 0 : index
    %28 = memref.load %arg3[%c0_25] : memref<4xf32, #tpu.memory_space<smem>>
    %29 = vector.broadcast %28 : f32 to vector<8x128xf32>
    %c1_26 = arith.constant 1 : index
    %30 = memref.load %arg3[%c1_26] : memref<4xf32, #tpu.memory_space<smem>>
    %31 = vector.broadcast %30 : f32 to vector<8x128xf32>
    %c2_27 = arith.constant 2 : index
    %32 = memref.load %arg3[%c2_27] : memref<4xf32, #tpu.memory_space<smem>>
    %33 = vector.broadcast %32 : f32 to vector<8x128xf32>
    %c3_28 = arith.constant 3 : index
    %34 = memref.load %arg3[%c3_28] : memref<4xf32, #tpu.memory_space<smem>>
    %35 = vector.broadcast %34 : f32 to vector<8x128xf32>
    %c0_29 = arith.constant 0 : index
    %c72 = arith.constant 72 : index
    %36 = vector.load %arg9[%c0_29, %c72] : memref<8x256xf32, #tpu.memory_space<vmem>>, vector<8x128xf32>
    %c0_30 = arith.constant 0 : index
    %37 = memref.load %arg2[%c0_30] : memref<32xf32, #tpu.memory_space<smem>>
    %38 = vector.broadcast %37 : f32 to vector<8x128xf32>
    %39 = arith.mulf %38, %36 : vector<8x128xf32>
    %40 = arith.addf %29, %39 : vector<8x128xf32>
    %c8 = arith.constant 8 : index
    %41 = memref.load %arg2[%c8] : memref<32xf32, #tpu.memory_space<smem>>
    %42 = vector.broadcast %41 : f32 to vector<8x128xf32>
    %43 = arith.mulf %42, %36 : vector<8x128xf32>
    %44 = arith.addf %31, %43 : vector<8x128xf32>
    %c16 = arith.constant 16 : index
    %45 = memref.load %arg2[%c16] : memref<32xf32, #tpu.memory_space<smem>>
    %46 = vector.broadcast %45 : f32 to vector<8x128xf32>
    %47 = arith.mulf %46, %36 : vector<8x128xf32>
    %48 = arith.addf %33, %47 : vector<8x128xf32>
    %c24 = arith.constant 24 : index
    %49 = memref.load %arg2[%c24] : memref<32xf32, #tpu.memory_space<smem>>
    %50 = vector.broadcast %49 : f32 to vector<8x128xf32>
    %51 = arith.mulf %50, %36 : vector<8x128xf32>
    %52 = arith.addf %35, %51 : vector<8x128xf32>
    %c0_31 = arith.constant 0 : index
    %c80 = arith.constant 80 : index
    %53 = vector.load %arg9[%c0_31, %c80] : memref<8x256xf32, #tpu.memory_space<vmem>>, vector<8x128xf32>
    %c1_32 = arith.constant 1 : index
    %54 = memref.load %arg2[%c1_32] : memref<32xf32, #tpu.memory_space<smem>>
    %55 = vector.broadcast %54 : f32 to vector<8x128xf32>
    %56 = arith.mulf %55, %53 : vector<8x128xf32>
    %57 = arith.addf %40, %56 : vector<8x128xf32>
    %c9 = arith.constant 9 : index
    %58 = memref.load %arg2[%c9] : memref<32xf32, #tpu.memory_space<smem>>
    %59 = vector.broadcast %58 : f32 to vector<8x128xf32>
    %60 = arith.mulf %59, %53 : vector<8x128xf32>
    %61 = arith.addf %44, %60 : vector<8x128xf32>
    %c17 = arith.constant 17 : index
    %62 = memref.load %arg2[%c17] : memref<32xf32, #tpu.memory_space<smem>>
    %63 = vector.broadcast %62 : f32 to vector<8x128xf32>
    %64 = arith.mulf %63, %53 : vector<8x128xf32>
    %65 = arith.addf %48, %64 : vector<8x128xf32>
    %c25 = arith.constant 25 : index
    %66 = memref.load %arg2[%c25] : memref<32xf32, #tpu.memory_space<smem>>
    %67 = vector.broadcast %66 : f32 to vector<8x128xf32>
    %68 = arith.mulf %67, %53 : vector<8x128xf32>
    %69 = arith.addf %52, %68 : vector<8x128xf32>
    %c0_33 = arith.constant 0 : index
    %c88 = arith.constant 88 : index
    %70 = vector.load %arg9[%c0_33, %c88] : memref<8x256xf32, #tpu.memory_space<vmem>>, vector<8x128xf32>
    %c2_34 = arith.constant 2 : index
    %71 = memref.load %arg2[%c2_34] : memref<32xf32, #tpu.memory_space<smem>>
    %72 = vector.broadcast %71 : f32 to vector<8x128xf32>
    %73 = arith.mulf %72, %70 : vector<8x128xf32>
    %74 = arith.addf %57, %73 : vector<8x128xf32>
    %c10 = arith.constant 10 : index
    %75 = memref.load %arg2[%c10] : memref<32xf32, #tpu.memory_space<smem>>
    %76 = vector.broadcast %75 : f32 to vector<8x128xf32>
    %77 = arith.mulf %76, %70 : vector<8x128xf32>
    %78 = arith.addf %61, %77 : vector<8x128xf32>
    %c18 = arith.constant 18 : index
    %79 = memref.load %arg2[%c18] : memref<32xf32, #tpu.memory_space<smem>>
    %80 = vector.broadcast %79 : f32 to vector<8x128xf32>
    %81 = arith.mulf %80, %70 : vector<8x128xf32>
    %82 = arith.addf %65, %81 : vector<8x128xf32>
    %c26 = arith.constant 26 : index
    %83 = memref.load %arg2[%c26] : memref<32xf32, #tpu.memory_space<smem>>
    %84 = vector.broadcast %83 : f32 to vector<8x128xf32>
    %85 = arith.mulf %84, %70 : vector<8x128xf32>
    %86 = arith.addf %69, %85 : vector<8x128xf32>
    %c0_35 = arith.constant 0 : index
    %c96 = arith.constant 96 : index
    %87 = vector.load %arg9[%c0_35, %c96] : memref<8x256xf32, #tpu.memory_space<vmem>>, vector<8x128xf32>
    %c3_36 = arith.constant 3 : index
    %88 = memref.load %arg2[%c3_36] : memref<32xf32, #tpu.memory_space<smem>>
    %89 = vector.broadcast %88 : f32 to vector<8x128xf32>
    %90 = arith.mulf %89, %87 : vector<8x128xf32>
    %91 = arith.addf %74, %90 : vector<8x128xf32>
    %c11 = arith.constant 11 : index
    %92 = memref.load %arg2[%c11] : memref<32xf32, #tpu.memory_space<smem>>
    %93 = vector.broadcast %92 : f32 to vector<8x128xf32>
    %94 = arith.mulf %93, %87 : vector<8x128xf32>
    %95 = arith.addf %78, %94 : vector<8x128xf32>
    %c19 = arith.constant 19 : index
    %96 = memref.load %arg2[%c19] : memref<32xf32, #tpu.memory_space<smem>>
    %97 = vector.broadcast %96 : f32 to vector<8x128xf32>
    %98 = arith.mulf %97, %87 : vector<8x128xf32>
    %99 = arith.addf %82, %98 : vector<8x128xf32>
    %c27 = arith.constant 27 : index
    %100 = memref.load %arg2[%c27] : memref<32xf32, #tpu.memory_space<smem>>
    %101 = vector.broadcast %100 : f32 to vector<8x128xf32>
    %102 = arith.mulf %101, %87 : vector<8x128xf32>
    %103 = arith.addf %86, %102 : vector<8x128xf32>
    %c0_37 = arith.constant 0 : index
    %c104 = arith.constant 104 : index
    %104 = vector.load %arg9[%c0_37, %c104] : memref<8x256xf32, #tpu.memory_space<vmem>>, vector<8x128xf32>
    %c4 = arith.constant 4 : index
    %105 = memref.load %arg2[%c4] : memref<32xf32, #tpu.memory_space<smem>>
    %106 = vector.broadcast %105 : f32 to vector<8x128xf32>
    %107 = arith.mulf %106, %104 : vector<8x128xf32>
    %108 = arith.addf %91, %107 : vector<8x128xf32>
    %c12 = arith.constant 12 : index
    %109 = memref.load %arg2[%c12] : memref<32xf32, #tpu.memory_space<smem>>
    %110 = vector.broadcast %109 : f32 to vector<8x128xf32>
    %111 = arith.mulf %110, %104 : vector<8x128xf32>
    %112 = arith.addf %95, %111 : vector<8x128xf32>
    %c20 = arith.constant 20 : index
    %113 = memref.load %arg2[%c20] : memref<32xf32, #tpu.memory_space<smem>>
    %114 = vector.broadcast %113 : f32 to vector<8x128xf32>
    %115 = arith.mulf %114, %104 : vector<8x128xf32>
    %116 = arith.addf %99, %115 : vector<8x128xf32>
    %c28 = arith.constant 28 : index
    %117 = memref.load %arg2[%c28] : memref<32xf32, #tpu.memory_space<smem>>
    %118 = vector.broadcast %117 : f32 to vector<8x128xf32>
    %119 = arith.mulf %118, %104 : vector<8x128xf32>
    %120 = arith.addf %103, %119 : vector<8x128xf32>
    %c0_38 = arith.constant 0 : index
    %c112 = arith.constant 112 : index
    %121 = vector.load %arg9[%c0_38, %c112] : memref<8x256xf32, #tpu.memory_space<vmem>>, vector<8x128xf32>
    %c5 = arith.constant 5 : index
    %122 = memref.load %arg2[%c5] : memref<32xf32, #tpu.memory_space<smem>>
    %123 = vector.broadcast %122 : f32 to vector<8x128xf32>
    %124 = arith.mulf %123, %121 : vector<8x128xf32>
    %125 = arith.addf %108, %124 : vector<8x128xf32>
    %c13 = arith.constant 13 : index
    %126 = memref.load %arg2[%c13] : memref<32xf32, #tpu.memory_space<smem>>
    %127 = vector.broadcast %126 : f32 to vector<8x128xf32>
    %128 = arith.mulf %127, %121 : vector<8x128xf32>
    %129 = arith.addf %112, %128 : vector<8x128xf32>
    %c21 = arith.constant 21 : index
    %130 = memref.load %arg2[%c21] : memref<32xf32, #tpu.memory_space<smem>>
    %131 = vector.broadcast %130 : f32 to vector<8x128xf32>
    %132 = arith.mulf %131, %121 : vector<8x128xf32>
    %133 = arith.addf %116, %132 : vector<8x128xf32>
    %c29 = arith.constant 29 : index
    %134 = memref.load %arg2[%c29] : memref<32xf32, #tpu.memory_space<smem>>
    %135 = vector.broadcast %134 : f32 to vector<8x128xf32>
    %136 = arith.mulf %135, %121 : vector<8x128xf32>
    %137 = arith.addf %120, %136 : vector<8x128xf32>
    %c0_39 = arith.constant 0 : index
    %c120 = arith.constant 120 : index
    %138 = vector.load %arg9[%c0_39, %c120] : memref<8x256xf32, #tpu.memory_space<vmem>>, vector<8x128xf32>
    %c6 = arith.constant 6 : index
    %139 = memref.load %arg2[%c6] : memref<32xf32, #tpu.memory_space<smem>>
    %140 = vector.broadcast %139 : f32 to vector<8x128xf32>
    %141 = arith.mulf %140, %138 : vector<8x128xf32>
    %142 = arith.addf %125, %141 : vector<8x128xf32>
    %c14 = arith.constant 14 : index
    %143 = memref.load %arg2[%c14] : memref<32xf32, #tpu.memory_space<smem>>
    %144 = vector.broadcast %143 : f32 to vector<8x128xf32>
    %145 = arith.mulf %144, %138 : vector<8x128xf32>
    %146 = arith.addf %129, %145 : vector<8x128xf32>
    %c22 = arith.constant 22 : index
    %147 = memref.load %arg2[%c22] : memref<32xf32, #tpu.memory_space<smem>>
    %148 = vector.broadcast %147 : f32 to vector<8x128xf32>
    %149 = arith.mulf %148, %138 : vector<8x128xf32>
    %150 = arith.addf %133, %149 : vector<8x128xf32>
    %c30 = arith.constant 30 : index
    %151 = memref.load %arg2[%c30] : memref<32xf32, #tpu.memory_space<smem>>
    %152 = vector.broadcast %151 : f32 to vector<8x128xf32>
    %153 = arith.mulf %152, %138 : vector<8x128xf32>
    %154 = arith.addf %137, %153 : vector<8x128xf32>
    %c0_40 = arith.constant 0 : index
    %c128_41 = arith.constant 128 : index
    %155 = vector.load %arg9[%c0_40, %c128_41] : memref<8x256xf32, #tpu.memory_space<vmem>>, vector<8x128xf32>
    %c7 = arith.constant 7 : index
    %156 = memref.load %arg2[%c7] : memref<32xf32, #tpu.memory_space<smem>>
    %157 = vector.broadcast %156 : f32 to vector<8x128xf32>
    %158 = arith.mulf %157, %155 : vector<8x128xf32>
    %159 = arith.addf %142, %158 : vector<8x128xf32>
    %c15 = arith.constant 15 : index
    %160 = memref.load %arg2[%c15] : memref<32xf32, #tpu.memory_space<smem>>
    %161 = vector.broadcast %160 : f32 to vector<8x128xf32>
    %162 = arith.mulf %161, %155 : vector<8x128xf32>
    %163 = arith.addf %146, %162 : vector<8x128xf32>
    %c23 = arith.constant 23 : index
    %164 = memref.load %arg2[%c23] : memref<32xf32, #tpu.memory_space<smem>>
    %165 = vector.broadcast %164 : f32 to vector<8x128xf32>
    %166 = arith.mulf %165, %155 : vector<8x128xf32>
    %167 = arith.addf %150, %166 : vector<8x128xf32>
    %c31 = arith.constant 31 : index
    %168 = memref.load %arg2[%c31] : memref<32xf32, #tpu.memory_space<smem>>
    %169 = vector.broadcast %168 : f32 to vector<8x128xf32>
    %170 = arith.mulf %169, %155 : vector<8x128xf32>
    %171 = arith.addf %154, %170 : vector<8x128xf32>
    %c0_42 = arith.constant 0 : index
    %c0_43 = arith.constant 0 : index
    %c128_44 = arith.constant 128 : index
    %172 = vector.load %arg10[%c0_42, %c0_43, %c128_44] : memref<4x8x256xf32, #tpu.memory_space<vmem>>, vector<1x8x128xf32>
    %173 = vector.shape_cast %172 : vector<1x8x128xf32> to vector<8x128xf32>
    %174 = vector.shape_cast %159 : vector<8x128xf32> to vector<1x8x128xf32>
    tpu.vector_store %arg10[%c0_42, %c0_43, %c128_44], %174 {strides = array<i32>} : memref<4x8x256xf32, #tpu.memory_space<vmem>>, vector<1x8x128xf32>,
    %c1_45 = arith.constant 1 : index
    %c0_46 = arith.constant 0 : index
    %c128_47 = arith.constant 128 : index
    %175 = vector.load %arg10[%c1_45, %c0_46, %c128_47] : memref<4x8x256xf32, #tpu.memory_space<vmem>>, vector<1x8x128xf32>
    %176 = vector.shape_cast %175 : vector<1x8x128xf32> to vector<8x128xf32>
    %177 = vector.shape_cast %163 : vector<8x128xf32> to vector<1x8x128xf32>
    tpu.vector_store %arg10[%c1_45, %c0_46, %c128_47], %177 {strides = array<i32>} : memref<4x8x256xf32, #tpu.memory_space<vmem>>, vector<1x8x128xf32>,
    %c2_48 = arith.constant 2 : index
    %c0_49 = arith.constant 0 : index
    %c128_50 = arith.constant 128 : index
    %178 = vector.load %arg10[%c2_48, %c0_49, %c128_50] : memref<4x8x256xf32, #tpu.memory_space<vmem>>, vector<1x8x128xf32>
    %179 = vector.shape_cast %178 : vector<1x8x128xf32> to vector<8x128xf32>
    %180 = vector.shape_cast %167 : vector<8x128xf32> to vector<1x8x128xf32>
    tpu.vector_store %arg10[%c2_48, %c0_49, %c128_50], %180 {strides = array<i32>} : memref<4x8x256xf32, #tpu.memory_space<vmem>>, vector<1x8x128xf32>,
    %c3_51 = arith.constant 3 : index
    %c0_52 = arith.constant 0 : index
    %c128_53 = arith.constant 128 : index
    %181 = vector.load %arg10[%c3_51, %c0_52, %c128_53] : memref<4x8x256xf32, #tpu.memory_space<vmem>>, vector<1x8x128xf32>
    %182 = vector.shape_cast %181 : vector<1x8x128xf32> to vector<8x128xf32>
    %183 = vector.shape_cast %171 : vector<8x128xf32> to vector<1x8x128xf32>
    tpu.vector_store %arg10[%c3_51, %c0_52, %c128_53], %183 {strides = array<i32>} : memref<4x8x256xf32, #tpu.memory_space<vmem>>, vector<1x8x128xf32>,
    %c0_54 = arith.constant 0 : index
    %184 = memref.load %arg5[%c0_54] : memref<4xf32, #tpu.memory_space<smem>>
    %185 = vector.broadcast %184 : f32 to vector<8x128xf32>
    %c1_55 = arith.constant 1 : index
    %186 = memref.load %arg5[%c1_55] : memref<4xf32, #tpu.memory_space<smem>>
    %187 = vector.broadcast %186 : f32 to vector<8x128xf32>
    %c2_56 = arith.constant 2 : index
    %188 = memref.load %arg5[%c2_56] : memref<4xf32, #tpu.memory_space<smem>>
    %189 = vector.broadcast %188 : f32 to vector<8x128xf32>
    %c3_57 = arith.constant 3 : index
    %190 = memref.load %arg5[%c3_57] : memref<4xf32, #tpu.memory_space<smem>>
    %191 = vector.broadcast %190 : f32 to vector<8x128xf32>
    %c0_58 = arith.constant 0 : index
    %c0_59 = arith.constant 0 : index
    %c72_60 = arith.constant 72 : index
    %192 = vector.load %arg10[%c0_58, %c0_59, %c72_60] : memref<4x8x256xf32, #tpu.memory_space<vmem>>, vector<1x8x128xf32>
    %193 = vector.shape_cast %192 : vector<1x8x128xf32> to vector<8x128xf32>
    %c0_61 = arith.constant 0 : index
    %194 = memref.load %arg4[%c0_61] : memref<128xf32, #tpu.memory_space<smem>>
    %195 = vector.broadcast %194 : f32 to vector<8x128xf32>
    %196 = arith.mulf %195, %193 : vector<8x128xf32>
    %197 = arith.addf %185, %196 : vector<8x128xf32>
    %c32 = arith.constant 32 : index
    %198 = memref.load %arg4[%c32] : memref<128xf32, #tpu.memory_space<smem>>
    %199 = vector.broadcast %198 : f32 to vector<8x128xf32>
    %200 = arith.mulf %199, %193 : vector<8x128xf32>
    %201 = arith.addf %187, %200 : vector<8x128xf32>
    %c64 = arith.constant 64 : index
    %202 = memref.load %arg4[%c64] : memref<128xf32, #tpu.memory_space<smem>>
    %203 = vector.broadcast %202 : f32 to vector<8x128xf32>
    %204 = arith.mulf %203, %193 : vector<8x128xf32>
    %205 = arith.addf %189, %204 : vector<8x128xf32>
    %c96_62 = arith.constant 96 : index
    %206 = memref.load %arg4[%c96_62] : memref<128xf32, #tpu.memory_space<smem>>
    %207 = vector.broadcast %206 : f32 to vector<8x128xf32>
    %208 = arith.mulf %207, %193 : vector<8x128xf32>
    %209 = arith.addf %191, %208 : vector<8x128xf32>
    %c0_63 = arith.constant 0 : index
    %c0_64 = arith.constant 0 : index
    %c80_65 = arith.constant 80 : index
    %210 = vector.load %arg10[%c0_63, %c0_64, %c80_65] : memref<4x8x256xf32, #tpu.memory_space<vmem>>, vector<1x8x128xf32>
    %211 = vector.shape_cast %210 : vector<1x8x128xf32> to vector<8x128xf32>
    %c1_66 = arith.constant 1 : index
    %212 = memref.load %arg4[%c1_66] : memref<128xf32, #tpu.memory_space<smem>>
    %213 = vector.broadcast %212 : f32 to vector<8x128xf32>
    %214 = arith.mulf %213, %211 : vector<8x128xf32>
    %215 = arith.addf %197, %214 : vector<8x128xf32>
    %c33 = arith.constant 33 : index
    %216 = memref.load %arg4[%c33] : memref<128xf32, #tpu.memory_space<smem>>
    %217 = vector.broadcast %216 : f32 to vector<8x128xf32>
    %218 = arith.mulf %217, %211 : vector<8x128xf32>
    %219 = arith.addf %201, %218 : vector<8x128xf32>
    %c65 = arith.constant 65 : index
    %220 = memref.load %arg4[%c65] : memref<128xf32, #tpu.memory_space<smem>>
    %221 = vector.broadcast %220 : f32 to vector<8x128xf32>
    %222 = arith.mulf %221, %211 : vector<8x128xf32>
    %223 = arith.addf %205, %222 : vector<8x128xf32>
    %c97 = arith.constant 97 : index
    %224 = memref.load %arg4[%c97] : memref<128xf32, #tpu.memory_space<smem>>
    %225 = vector.broadcast %224 : f32 to vector<8x128xf32>
    %226 = arith.mulf %225, %211 : vector<8x128xf32>
    %227 = arith.addf %209, %226 : vector<8x128xf32>
    %c0_67 = arith.constant 0 : index
    %c0_68 = arith.constant 0 : index
    %c88_69 = arith.constant 88 : index
    %228 = vector.load %arg10[%c0_67, %c0_68, %c88_69] : memref<4x8x256xf32, #tpu.memory_space<vmem>>, vector<1x8x128xf32>
    %229 = vector.shape_cast %228 : vector<1x8x128xf32> to vector<8x128xf32>
    %c2_70 = arith.constant 2 : index
    %230 = memref.load %arg4[%c2_70] : memref<128xf32, #tpu.memory_space<smem>>
    %231 = vector.broadcast %230 : f32 to vector<8x128xf32>
    %232 = arith.mulf %231, %229 : vector<8x128xf32>
    %233 = arith.addf %215, %232 : vector<8x128xf32>
    %c34 = arith.constant 34 : index
    %234 = memref.load %arg4[%c34] : memref<128xf32, #tpu.memory_space<smem>>
    %235 = vector.broadcast %234 : f32 to vector<8x128xf32>
    %236 = arith.mulf %235, %229 : vector<8x128xf32>
    %237 = arith.addf %219, %236 : vector<8x128xf32>
    %c66 = arith.constant 66 : index
    %238 = memref.load %arg4[%c66] : memref<128xf32, #tpu.memory_space<smem>>
    %239 = vector.broadcast %238 : f32 to vector<8x128xf32>
    %240 = arith.mulf %239, %229 : vector<8x128xf32>
    %241 = arith.addf %223, %240 : vector<8x128xf32>
    %c98 = arith.constant 98 : index
    %242 = memref.load %arg4[%c98] : memref<128xf32, #tpu.memory_space<smem>>
    %243 = vector.broadcast %242 : f32 to vector<8x128xf32>
    %244 = arith.mulf %243, %229 : vector<8x128xf32>
    %245 = arith.addf %227, %244 : vector<8x128xf32>
    %c0_71 = arith.constant 0 : index
    %c0_72 = arith.constant 0 : index
    %c96_73 = arith.constant 96 : index
    %246 = vector.load %arg10[%c0_71, %c0_72, %c96_73] : memref<4x8x256xf32, #tpu.memory_space<vmem>>, vector<1x8x128xf32>
    %247 = vector.shape_cast %246 : vector<1x8x128xf32> to vector<8x128xf32>
    %c3_74 = arith.constant 3 : index
    %248 = memref.load %arg4[%c3_74] : memref<128xf32, #tpu.memory_space<smem>>
    %249 = vector.broadcast %248 : f32 to vector<8x128xf32>
    %250 = arith.mulf %249, %247 : vector<8x128xf32>
    %251 = arith.addf %233, %250 : vector<8x128xf32>
    %c35 = arith.constant 35 : index
    %252 = memref.load %arg4[%c35] : memref<128xf32, #tpu.memory_space<smem>>
    %253 = vector.broadcast %252 : f32 to vector<8x128xf32>
    %254 = arith.mulf %253, %247 : vector<8x128xf32>
    %255 = arith.addf %237, %254 : vector<8x128xf32>
    %c67 = arith.constant 67 : index
    %256 = memref.load %arg4[%c67] : memref<128xf32, #tpu.memory_space<smem>>
    %257 = vector.broadcast %256 : f32 to vector<8x128xf32>
    %258 = arith.mulf %257, %247 : vector<8x128xf32>
    %259 = arith.addf %241, %258 : vector<8x128xf32>
    %c99 = arith.constant 99 : index
    %260 = memref.load %arg4[%c99] : memref<128xf32, #tpu.memory_space<smem>>
    %261 = vector.broadcast %260 : f32 to vector<8x128xf32>
    %262 = arith.mulf %261, %247 : vector<8x128xf32>
    %263 = arith.addf %245, %262 : vector<8x128xf32>
    %c0_75 = arith.constant 0 : index
    %c0_76 = arith.constant 0 : index
    %c104_77 = arith.constant 104 : index
    %264 = vector.load %arg10[%c0_75, %c0_76, %c104_77] : memref<4x8x256xf32, #tpu.memory_space<vmem>>, vector<1x8x128xf32>
    %265 = vector.shape_cast %264 : vector<1x8x128xf32> to vector<8x128xf32>
    %c4_78 = arith.constant 4 : index
    %266 = memref.load %arg4[%c4_78] : memref<128xf32, #tpu.memory_space<smem>>
    %267 = vector.broadcast %266 : f32 to vector<8x128xf32>
    %268 = arith.mulf %267, %265 : vector<8x128xf32>
    %269 = arith.addf %251, %268 : vector<8x128xf32>
    %c36 = arith.constant 36 : index
    %270 = memref.load %arg4[%c36] : memref<128xf32, #tpu.memory_space<smem>>
    %271 = vector.broadcast %270 : f32 to vector<8x128xf32>
    %272 = arith.mulf %271, %265 : vector<8x128xf32>
    %273 = arith.addf %255, %272 : vector<8x128xf32>
    %c68 = arith.constant 68 : index
    %274 = memref.load %arg4[%c68] : memref<128xf32, #tpu.memory_space<smem>>
    %275 = vector.broadcast %274 : f32 to vector<8x128xf32>
    %276 = arith.mulf %275, %265 : vector<8x128xf32>
    %277 = arith.addf %259, %276 : vector<8x128xf32>
    %c100 = arith.constant 100 : index
    %278 = memref.load %arg4[%c100] : memref<128xf32, #tpu.memory_space<smem>>
    %279 = vector.broadcast %278 : f32 to vector<8x128xf32>
    %280 = arith.mulf %279, %265 : vector<8x128xf32>
    %281 = arith.addf %263, %280 : vector<8x128xf32>
    %c0_79 = arith.constant 0 : index
    %c0_80 = arith.constant 0 : index
    %c112_81 = arith.constant 112 : index
    %282 = vector.load %arg10[%c0_79, %c0_80, %c112_81] : memref<4x8x256xf32, #tpu.memory_space<vmem>>, vector<1x8x128xf32>
    %283 = vector.shape_cast %282 : vector<1x8x128xf32> to vector<8x128xf32>
    %c5_82 = arith.constant 5 : index
    %284 = memref.load %arg4[%c5_82] : memref<128xf32, #tpu.memory_space<smem>>
    %285 = vector.broadcast %284 : f32 to vector<8x128xf32>
    %286 = arith.mulf %285, %283 : vector<8x128xf32>
    %287 = arith.addf %269, %286 : vector<8x128xf32>
    %c37 = arith.constant 37 : index
    %288 = memref.load %arg4[%c37] : memref<128xf32, #tpu.memory_space<smem>>
    %289 = vector.broadcast %288 : f32 to vector<8x128xf32>
    %290 = arith.mulf %289, %283 : vector<8x128xf32>
    %291 = arith.addf %273, %290 : vector<8x128xf32>
    %c69 = arith.constant 69 : index
    %292 = memref.load %arg4[%c69] : memref<128xf32, #tpu.memory_space<smem>>
    %293 = vector.broadcast %292 : f32 to vector<8x128xf32>
    %294 = arith.mulf %293, %283 : vector<8x128xf32>
    %295 = arith.addf %277, %294 : vector<8x128xf32>
    %c101 = arith.constant 101 : index
    %296 = memref.load %arg4[%c101] : memref<128xf32, #tpu.memory_space<smem>>
    %297 = vector.broadcast %296 : f32 to vector<8x128xf32>
    %298 = arith.mulf %297, %283 : vector<8x128xf32>
    %299 = arith.addf %281, %298 : vector<8x128xf32>
    %c0_83 = arith.constant 0 : index
    %c0_84 = arith.constant 0 : index
    %c120_85 = arith.constant 120 : index
    %300 = vector.load %arg10[%c0_83, %c0_84, %c120_85] : memref<4x8x256xf32, #tpu.memory_space<vmem>>, vector<1x8x128xf32>
    %301 = vector.shape_cast %300 : vector<1x8x128xf32> to vector<8x128xf32>
    %c6_86 = arith.constant 6 : index
    %302 = memref.load %arg4[%c6_86] : memref<128xf32, #tpu.memory_space<smem>>
    %303 = vector.broadcast %302 : f32 to vector<8x128xf32>
    %304 = arith.mulf %303, %301 : vector<8x128xf32>
    %305 = arith.addf %287, %304 : vector<8x128xf32>
    %c38 = arith.constant 38 : index
    %306 = memref.load %arg4[%c38] : memref<128xf32, #tpu.memory_space<smem>>
    %307 = vector.broadcast %306 : f32 to vector<8x128xf32>
    %308 = arith.mulf %307, %301 : vector<8x128xf32>
    %309 = arith.addf %291, %308 : vector<8x128xf32>
    %c70 = arith.constant 70 : index
    %310 = memref.load %arg4[%c70] : memref<128xf32, #tpu.memory_space<smem>>
    %311 = vector.broadcast %310 : f32 to vector<8x128xf32>
    %312 = arith.mulf %311, %301 : vector<8x128xf32>
    %313 = arith.addf %295, %312 : vector<8x128xf32>
    %c102 = arith.constant 102 : index
    %314 = memref.load %arg4[%c102] : memref<128xf32, #tpu.memory_space<smem>>
    %315 = vector.broadcast %314 : f32 to vector<8x128xf32>
    %316 = arith.mulf %315, %301 : vector<8x128xf32>
    %317 = arith.addf %299, %316 : vector<8x128xf32>
    %c0_87 = arith.constant 0 : index
    %c0_88 = arith.constant 0 : index
    %c128_89 = arith.constant 128 : index
    %318 = vector.load %arg10[%c0_87, %c0_88, %c128_89] : memref<4x8x256xf32, #tpu.memory_space<vmem>>, vector<1x8x128xf32>
    %319 = vector.shape_cast %318 : vector<1x8x128xf32> to vector<8x128xf32>
    %c7_90 = arith.constant 7 : index
    %320 = memref.load %arg4[%c7_90] : memref<128xf32, #tpu.memory_space<smem>>
    %321 = vector.broadcast %320 : f32 to vector<8x128xf32>
    %322 = arith.mulf %321, %319 : vector<8x128xf32>
    %323 = arith.addf %305, %322 : vector<8x128xf32>
    %c39 = arith.constant 39 : index
    %324 = memref.load %arg4[%c39] : memref<128xf32, #tpu.memory_space<smem>>
    %325 = vector.broadcast %324 : f32 to vector<8x128xf32>
    %326 = arith.mulf %325, %319 : vector<8x128xf32>
    %327 = arith.addf %309, %326 : vector<8x128xf32>
    %c71 = arith.constant 71 : index
    %328 = memref.load %arg4[%c71] : memref<128xf32, #tpu.memory_space<smem>>
    %329 = vector.broadcast %328 : f32 to vector<8x128xf32>
    %330 = arith.mulf %329, %319 : vector<8x128xf32>
    %331 = arith.addf %313, %330 : vector<8x128xf32>
    %c103 = arith.constant 103 : index
    %332 = memref.load %arg4[%c103] : memref<128xf32, #tpu.memory_space<smem>>
    %333 = vector.broadcast %332 : f32 to vector<8x128xf32>
    %334 = arith.mulf %333, %319 : vector<8x128xf32>
    %335 = arith.addf %317, %334 : vector<8x128xf32>
    %c1_91 = arith.constant 1 : index
    %c0_92 = arith.constant 0 : index
    %c72_93 = arith.constant 72 : index
    %336 = vector.load %arg10[%c1_91, %c0_92, %c72_93] : memref<4x8x256xf32, #tpu.memory_space<vmem>>, vector<1x8x128xf32>
    %337 = vector.shape_cast %336 : vector<1x8x128xf32> to vector<8x128xf32>
    %c8_94 = arith.constant 8 : index
    %338 = memref.load %arg4[%c8_94] : memref<128xf32, #tpu.memory_space<smem>>
    %339 = vector.broadcast %338 : f32 to vector<8x128xf32>
    %340 = arith.mulf %339, %337 : vector<8x128xf32>
    %341 = arith.addf %323, %340 : vector<8x128xf32>
    %c40 = arith.constant 40 : index
    %342 = memref.load %arg4[%c40] : memref<128xf32, #tpu.memory_space<smem>>
    %343 = vector.broadcast %342 : f32 to vector<8x128xf32>
    %344 = arith.mulf %343, %337 : vector<8x128xf32>
    %345 = arith.addf %327, %344 : vector<8x128xf32>
    %c72_95 = arith.constant 72 : index
    %346 = memref.load %arg4[%c72_95] : memref<128xf32, #tpu.memory_space<smem>>
    %347 = vector.broadcast %346 : f32 to vector<8x128xf32>
    %348 = arith.mulf %347, %337 : vector<8x128xf32>
    %349 = arith.addf %331, %348 : vector<8x128xf32>
    %c104_96 = arith.constant 104 : index
    %350 = memref.load %arg4[%c104_96] : memref<128xf32, #tpu.memory_space<smem>>
    %351 = vector.broadcast %350 : f32 to vector<8x128xf32>
    %352 = arith.mulf %351, %337 : vector<8x128xf32>
    %353 = arith.addf %335, %352 : vector<8x128xf32>
    %c1_97 = arith.constant 1 : index
    %c0_98 = arith.constant 0 : index
    %c80_99 = arith.constant 80 : index
    %354 = vector.load %arg10[%c1_97, %c0_98, %c80_99] : memref<4x8x256xf32, #tpu.memory_space<vmem>>, vector<1x8x128xf32>
    %355 = vector.shape_cast %354 : vector<1x8x128xf32> to vector<8x128xf32>
    %c9_100 = arith.constant 9 : index
    %356 = memref.load %arg4[%c9_100] : memref<128xf32, #tpu.memory_space<smem>>
    %357 = vector.broadcast %356 : f32 to vector<8x128xf32>
    %358 = arith.mulf %357, %355 : vector<8x128xf32>
    %359 = arith.addf %341, %358 : vector<8x128xf32>
    %c41 = arith.constant 41 : index
    %360 = memref.load %arg4[%c41] : memref<128xf32, #tpu.memory_space<smem>>
    %361 = vector.broadcast %360 : f32 to vector<8x128xf32>
    %362 = arith.mulf %361, %355 : vector<8x128xf32>
    %363 = arith.addf %345, %362 : vector<8x128xf32>
    %c73 = arith.constant 73 : index
    %364 = memref.load %arg4[%c73] : memref<128xf32, #tpu.memory_space<smem>>
    %365 = vector.broadcast %364 : f32 to vector<8x128xf32>
    %366 = arith.mulf %365, %355 : vector<8x128xf32>
    %367 = arith.addf %349, %366 : vector<8x128xf32>
    %c105 = arith.constant 105 : index
    %368 = memref.load %arg4[%c105] : memref<128xf32, #tpu.memory_space<smem>>
    %369 = vector.broadcast %368 : f32 to vector<8x128xf32>
    %370 = arith.mulf %369, %355 : vector<8x128xf32>
    %371 = arith.addf %353, %370 : vector<8x128xf32>
    %c1_101 = arith.constant 1 : index
    %c0_102 = arith.constant 0 : index
    %c88_103 = arith.constant 88 : index
    %372 = vector.load %arg10[%c1_101, %c0_102, %c88_103] : memref<4x8x256xf32, #tpu.memory_space<vmem>>, vector<1x8x128xf32>
    %373 = vector.shape_cast %372 : vector<1x8x128xf32> to vector<8x128xf32>
    %c10_104 = arith.constant 10 : index
    %374 = memref.load %arg4[%c10_104] : memref<128xf32, #tpu.memory_space<smem>>
    %375 = vector.broadcast %374 : f32 to vector<8x128xf32>
    %376 = arith.mulf %375, %373 : vector<8x128xf32>
    %377 = arith.addf %359, %376 : vector<8x128xf32>
    %c42 = arith.constant 42 : index
    %378 = memref.load %arg4[%c42] : memref<128xf32, #tpu.memory_space<smem>>
    %379 = vector.broadcast %378 : f32 to vector<8x128xf32>
    %380 = arith.mulf %379, %373 : vector<8x128xf32>
    %381 = arith.addf %363, %380 : vector<8x128xf32>
    %c74 = arith.constant 74 : index
    %382 = memref.load %arg4[%c74] : memref<128xf32, #tpu.memory_space<smem>>
    %383 = vector.broadcast %382 : f32 to vector<8x128xf32>
    %384 = arith.mulf %383, %373 : vector<8x128xf32>
    %385 = arith.addf %367, %384 : vector<8x128xf32>
    %c106 = arith.constant 106 : index
    %386 = memref.load %arg4[%c106] : memref<128xf32, #tpu.memory_space<smem>>
    %387 = vector.broadcast %386 : f32 to vector<8x128xf32>
    %388 = arith.mulf %387, %373 : vector<8x128xf32>
    %389 = arith.addf %371, %388 : vector<8x128xf32>
    %c1_105 = arith.constant 1 : index
    %c0_106 = arith.constant 0 : index
    %c96_107 = arith.constant 96 : index
    %390 = vector.load %arg10[%c1_105, %c0_106, %c96_107] : memref<4x8x256xf32, #tpu.memory_space<vmem>>, vector<1x8x128xf32>
    %391 = vector.shape_cast %390 : vector<1x8x128xf32> to vector<8x128xf32>
    %c11_108 = arith.constant 11 : index
    %392 = memref.load %arg4[%c11_108] : memref<128xf32, #tpu.memory_space<smem>>
    %393 = vector.broadcast %392 : f32 to vector<8x128xf32>
    %394 = arith.mulf %393, %391 : vector<8x128xf32>
    %395 = arith.addf %377, %394 : vector<8x128xf32>
    %c43 = arith.constant 43 : index
    %396 = memref.load %arg4[%c43] : memref<128xf32, #tpu.memory_space<smem>>
    %397 = vector.broadcast %396 : f32 to vector<8x128xf32>
    %398 = arith.mulf %397, %391 : vector<8x128xf32>
    %399 = arith.addf %381, %398 : vector<8x128xf32>
    %c75 = arith.constant 75 : index
    %400 = memref.load %arg4[%c75] : memref<128xf32, #tpu.memory_space<smem>>
    %401 = vector.broadcast %400 : f32 to vector<8x128xf32>
    %402 = arith.mulf %401, %391 : vector<8x128xf32>
    %403 = arith.addf %385, %402 : vector<8x128xf32>
    %c107 = arith.constant 107 : index
    %404 = memref.load %arg4[%c107] : memref<128xf32, #tpu.memory_space<smem>>
    %405 = vector.broadcast %404 : f32 to vector<8x128xf32>
    %406 = arith.mulf %405, %391 : vector<8x128xf32>
    %407 = arith.addf %389, %406 : vector<8x128xf32>
    %c1_109 = arith.constant 1 : index
    %c0_110 = arith.constant 0 : index
    %c104_111 = arith.constant 104 : index
    %408 = vector.load %arg10[%c1_109, %c0_110, %c104_111] : memref<4x8x256xf32, #tpu.memory_space<vmem>>, vector<1x8x128xf32>
    %409 = vector.shape_cast %408 : vector<1x8x128xf32> to vector<8x128xf32>
    %c12_112 = arith.constant 12 : index
    %410 = memref.load %arg4[%c12_112] : memref<128xf32, #tpu.memory_space<smem>>
    %411 = vector.broadcast %410 : f32 to vector<8x128xf32>
    %412 = arith.mulf %411, %409 : vector<8x128xf32>
    %413 = arith.addf %395, %412 : vector<8x128xf32>
    %c44 = arith.constant 44 : index
    %414 = memref.load %arg4[%c44] : memref<128xf32, #tpu.memory_space<smem>>
    %415 = vector.broadcast %414 : f32 to vector<8x128xf32>
    %416 = arith.mulf %415, %409 : vector<8x128xf32>
    %417 = arith.addf %399, %416 : vector<8x128xf32>
    %c76 = arith.constant 76 : index
    %418 = memref.load %arg4[%c76] : memref<128xf32, #tpu.memory_space<smem>>
    %419 = vector.broadcast %418 : f32 to vector<8x128xf32>
    %420 = arith.mulf %419, %409 : vector<8x128xf32>
    %421 = arith.addf %403, %420 : vector<8x128xf32>
    %c108 = arith.constant 108 : index
    %422 = memref.load %arg4[%c108] : memref<128xf32, #tpu.memory_space<smem>>
    %423 = vector.broadcast %422 : f32 to vector<8x128xf32>
    %424 = arith.mulf %423, %409 : vector<8x128xf32>
    %425 = arith.addf %407, %424 : vector<8x128xf32>
    %c1_113 = arith.constant 1 : index
    %c0_114 = arith.constant 0 : index
    %c112_115 = arith.constant 112 : index
    %426 = vector.load %arg10[%c1_113, %c0_114, %c112_115] : memref<4x8x256xf32, #tpu.memory_space<vmem>>, vector<1x8x128xf32>
    %427 = vector.shape_cast %426 : vector<1x8x128xf32> to vector<8x128xf32>
    %c13_116 = arith.constant 13 : index
    %428 = memref.load %arg4[%c13_116] : memref<128xf32, #tpu.memory_space<smem>>
    %429 = vector.broadcast %428 : f32 to vector<8x128xf32>
    %430 = arith.mulf %429, %427 : vector<8x128xf32>
    %431 = arith.addf %413, %430 : vector<8x128xf32>
    %c45 = arith.constant 45 : index
    %432 = memref.load %arg4[%c45] : memref<128xf32, #tpu.memory_space<smem>>
    %433 = vector.broadcast %432 : f32 to vector<8x128xf32>
    %434 = arith.mulf %433, %427 : vector<8x128xf32>
    %435 = arith.addf %417, %434 : vector<8x128xf32>
    %c77 = arith.constant 77 : index
    %436 = memref.load %arg4[%c77] : memref<128xf32, #tpu.memory_space<smem>>
    %437 = vector.broadcast %436 : f32 to vector<8x128xf32>
    %438 = arith.mulf %437, %427 : vector<8x128xf32>
    %439 = arith.addf %421, %438 : vector<8x128xf32>
    %c109 = arith.constant 109 : index
    %440 = memref.load %arg4[%c109] : memref<128xf32, #tpu.memory_space<smem>>
    %441 = vector.broadcast %440 : f32 to vector<8x128xf32>
    %442 = arith.mulf %441, %427 : vector<8x128xf32>
    %443 = arith.addf %425, %442 : vector<8x128xf32>
    %c1_117 = arith.constant 1 : index
    %c0_118 = arith.constant 0 : index
    %c120_119 = arith.constant 120 : index
    %444 = vector.load %arg10[%c1_117, %c0_118, %c120_119] : memref<4x8x256xf32, #tpu.memory_space<vmem>>, vector<1x8x128xf32>
    %445 = vector.shape_cast %444 : vector<1x8x128xf32> to vector<8x128xf32>
    %c14_120 = arith.constant 14 : index
    %446 = memref.load %arg4[%c14_120] : memref<128xf32, #tpu.memory_space<smem>>
    %447 = vector.broadcast %446 : f32 to vector<8x128xf32>
    %448 = arith.mulf %447, %445 : vector<8x128xf32>
    %449 = arith.addf %431, %448 : vector<8x128xf32>
    %c46 = arith.constant 46 : index
    %450 = memref.load %arg4[%c46] : memref<128xf32, #tpu.memory_space<smem>>
    %451 = vector.broadcast %450 : f32 to vector<8x128xf32>
    %452 = arith.mulf %451, %445 : vector<8x128xf32>
    %453 = arith.addf %435, %452 : vector<8x128xf32>
    %c78 = arith.constant 78 : index
    %454 = memref.load %arg4[%c78] : memref<128xf32, #tpu.memory_space<smem>>
    %455 = vector.broadcast %454 : f32 to vector<8x128xf32>
    %456 = arith.mulf %455, %445 : vector<8x128xf32>
    %457 = arith.addf %439, %456 : vector<8x128xf32>
    %c110 = arith.constant 110 : index
    %458 = memref.load %arg4[%c110] : memref<128xf32, #tpu.memory_space<smem>>
    %459 = vector.broadcast %458 : f32 to vector<8x128xf32>
    %460 = arith.mulf %459, %445 : vector<8x128xf32>
    %461 = arith.addf %443, %460 : vector<8x128xf32>
    %c1_121 = arith.constant 1 : index
    %c0_122 = arith.constant 0 : index
    %c128_123 = arith.constant 128 : index
    %462 = vector.load %arg10[%c1_121, %c0_122, %c128_123] : memref<4x8x256xf32, #tpu.memory_space<vmem>>, vector<1x8x128xf32>
    %463 = vector.shape_cast %462 : vector<1x8x128xf32> to vector<8x128xf32>
    %c15_124 = arith.constant 15 : index
    %464 = memref.load %arg4[%c15_124] : memref<128xf32, #tpu.memory_space<smem>>
    %465 = vector.broadcast %464 : f32 to vector<8x128xf32>
    %466 = arith.mulf %465, %463 : vector<8x128xf32>
    %467 = arith.addf %449, %466 : vector<8x128xf32>
    %c47 = arith.constant 47 : index
    %468 = memref.load %arg4[%c47] : memref<128xf32, #tpu.memory_space<smem>>
    %469 = vector.broadcast %468 : f32 to vector<8x128xf32>
    %470 = arith.mulf %469, %463 : vector<8x128xf32>
    %471 = arith.addf %453, %470 : vector<8x128xf32>
    %c79 = arith.constant 79 : index
    %472 = memref.load %arg4[%c79] : memref<128xf32, #tpu.memory_space<smem>>
    %473 = vector.broadcast %472 : f32 to vector<8x128xf32>
    %474 = arith.mulf %473, %463 : vector<8x128xf32>
    %475 = arith.addf %457, %474 : vector<8x128xf32>
    %c111 = arith.constant 111 : index
    %476 = memref.load %arg4[%c111] : memref<128xf32, #tpu.memory_space<smem>>
    %477 = vector.broadcast %476 : f32 to vector<8x128xf32>
    %478 = arith.mulf %477, %463 : vector<8x128xf32>
    %479 = arith.addf %461, %478 : vector<8x128xf32>
    %c2_125 = arith.constant 2 : index
    %c0_126 = arith.constant 0 : index
    %c72_127 = arith.constant 72 : index
    %480 = vector.load %arg10[%c2_125, %c0_126, %c72_127] : memref<4x8x256xf32, #tpu.memory_space<vmem>>, vector<1x8x128xf32>
    %481 = vector.shape_cast %480 : vector<1x8x128xf32> to vector<8x128xf32>
    %c16_128 = arith.constant 16 : index
    %482 = memref.load %arg4[%c16_128] : memref<128xf32, #tpu.memory_space<smem>>
    %483 = vector.broadcast %482 : f32 to vector<8x128xf32>
    %484 = arith.mulf %483, %481 : vector<8x128xf32>
    %485 = arith.addf %467, %484 : vector<8x128xf32>
    %c48 = arith.constant 48 : index
    %486 = memref.load %arg4[%c48] : memref<128xf32, #tpu.memory_space<smem>>
    %487 = vector.broadcast %486 : f32 to vector<8x128xf32>
    %488 = arith.mulf %487, %481 : vector<8x128xf32>
    %489 = arith.addf %471, %488 : vector<8x128xf32>
    %c80_129 = arith.constant 80 : index
    %490 = memref.load %arg4[%c80_129] : memref<128xf32, #tpu.memory_space<smem>>
    %491 = vector.broadcast %490 : f32 to vector<8x128xf32>
    %492 = arith.mulf %491, %481 : vector<8x128xf32>
    %493 = arith.addf %475, %492 : vector<8x128xf32>
    %c112_130 = arith.constant 112 : index
    %494 = memref.load %arg4[%c112_130] : memref<128xf32, #tpu.memory_space<smem>>
    %495 = vector.broadcast %494 : f32 to vector<8x128xf32>
    %496 = arith.mulf %495, %481 : vector<8x128xf32>
    %497 = arith.addf %479, %496 : vector<8x128xf32>
    %c2_131 = arith.constant 2 : index
    %c0_132 = arith.constant 0 : index
    %c80_133 = arith.constant 80 : index
    %498 = vector.load %arg10[%c2_131, %c0_132, %c80_133] : memref<4x8x256xf32, #tpu.memory_space<vmem>>, vector<1x8x128xf32>
    %499 = vector.shape_cast %498 : vector<1x8x128xf32> to vector<8x128xf32>
    %c17_134 = arith.constant 17 : index
    %500 = memref.load %arg4[%c17_134] : memref<128xf32, #tpu.memory_space<smem>>
    %501 = vector.broadcast %500 : f32 to vector<8x128xf32>
    %502 = arith.mulf %501, %499 : vector<8x128xf32>
    %503 = arith.addf %485, %502 : vector<8x128xf32>
    %c49 = arith.constant 49 : index
    %504 = memref.load %arg4[%c49] : memref<128xf32, #tpu.memory_space<smem>>
    %505 = vector.broadcast %504 : f32 to vector<8x128xf32>
    %506 = arith.mulf %505, %499 : vector<8x128xf32>
    %507 = arith.addf %489, %506 : vector<8x128xf32>
    %c81 = arith.constant 81 : index
    %508 = memref.load %arg4[%c81] : memref<128xf32, #tpu.memory_space<smem>>
    %509 = vector.broadcast %508 : f32 to vector<8x128xf32>
    %510 = arith.mulf %509, %499 : vector<8x128xf32>
    %511 = arith.addf %493, %510 : vector<8x128xf32>
    %c113 = arith.constant 113 : index
    %512 = memref.load %arg4[%c113] : memref<128xf32, #tpu.memory_space<smem>>
    %513 = vector.broadcast %512 : f32 to vector<8x128xf32>
    %514 = arith.mulf %513, %499 : vector<8x128xf32>
    %515 = arith.addf %497, %514 : vector<8x128xf32>
    %c2_135 = arith.constant 2 : index
    %c0_136 = arith.constant 0 : index
    %c88_137 = arith.constant 88 : index
    %516 = vector.load %arg10[%c2_135, %c0_136, %c88_137] : memref<4x8x256xf32, #tpu.memory_space<vmem>>, vector<1x8x128xf32>
    %517 = vector.shape_cast %516 : vector<1x8x128xf32> to vector<8x128xf32>
    %c18_138 = arith.constant 18 : index
    %518 = memref.load %arg4[%c18_138] : memref<128xf32, #tpu.memory_space<smem>>
    %519 = vector.broadcast %518 : f32 to vector<8x128xf32>
    %520 = arith.mulf %519, %517 : vector<8x128xf32>
    %521 = arith.addf %503, %520 : vector<8x128xf32>
    %c50 = arith.constant 50 : index
    %522 = memref.load %arg4[%c50] : memref<128xf32, #tpu.memory_space<smem>>
    %523 = vector.broadcast %522 : f32 to vector<8x128xf32>
    %524 = arith.mulf %523, %517 : vector<8x128xf32>
    %525 = arith.addf %507, %524 : vector<8x128xf32>
    %c82 = arith.constant 82 : index
    %526 = memref.load %arg4[%c82] : memref<128xf32, #tpu.memory_space<smem>>
    %527 = vector.broadcast %526 : f32 to vector<8x128xf32>
    %528 = arith.mulf %527, %517 : vector<8x128xf32>
    %529 = arith.addf %511, %528 : vector<8x128xf32>
    %c114 = arith.constant 114 : index
    %530 = memref.load %arg4[%c114] : memref<128xf32, #tpu.memory_space<smem>>
    %531 = vector.broadcast %530 : f32 to vector<8x128xf32>
    %532 = arith.mulf %531, %517 : vector<8x128xf32>
    %533 = arith.addf %515, %532 : vector<8x128xf32>
    %c2_139 = arith.constant 2 : index
    %c0_140 = arith.constant 0 : index
    %c96_141 = arith.constant 96 : index
    %534 = vector.load %arg10[%c2_139, %c0_140, %c96_141] : memref<4x8x256xf32, #tpu.memory_space<vmem>>, vector<1x8x128xf32>
    %535 = vector.shape_cast %534 : vector<1x8x128xf32> to vector<8x128xf32>
    %c19_142 = arith.constant 19 : index
    %536 = memref.load %arg4[%c19_142] : memref<128xf32, #tpu.memory_space<smem>>
    %537 = vector.broadcast %536 : f32 to vector<8x128xf32>
    %538 = arith.mulf %537, %535 : vector<8x128xf32>
    %539 = arith.addf %521, %538 : vector<8x128xf32>
    %c51 = arith.constant 51 : index
    %540 = memref.load %arg4[%c51] : memref<128xf32, #tpu.memory_space<smem>>
    %541 = vector.broadcast %540 : f32 to vector<8x128xf32>
    %542 = arith.mulf %541, %535 : vector<8x128xf32>
    %543 = arith.addf %525, %542 : vector<8x128xf32>
    %c83 = arith.constant 83 : index
    %544 = memref.load %arg4[%c83] : memref<128xf32, #tpu.memory_space<smem>>
    %545 = vector.broadcast %544 : f32 to vector<8x128xf32>
    %546 = arith.mulf %545, %535 : vector<8x128xf32>
    %547 = arith.addf %529, %546 : vector<8x128xf32>
    %c115 = arith.constant 115 : index
    %548 = memref.load %arg4[%c115] : memref<128xf32, #tpu.memory_space<smem>>
    %549 = vector.broadcast %548 : f32 to vector<8x128xf32>
    %550 = arith.mulf %549, %535 : vector<8x128xf32>
    %551 = arith.addf %533, %550 : vector<8x128xf32>
    %c2_143 = arith.constant 2 : index
    %c0_144 = arith.constant 0 : index
    %c104_145 = arith.constant 104 : index
    %552 = vector.load %arg10[%c2_143, %c0_144, %c104_145] : memref<4x8x256xf32, #tpu.memory_space<vmem>>, vector<1x8x128xf32>
    %553 = vector.shape_cast %552 : vector<1x8x128xf32> to vector<8x128xf32>
    %c20_146 = arith.constant 20 : index
    %554 = memref.load %arg4[%c20_146] : memref<128xf32, #tpu.memory_space<smem>>
    %555 = vector.broadcast %554 : f32 to vector<8x128xf32>
    %556 = arith.mulf %555, %553 : vector<8x128xf32>
    %557 = arith.addf %539, %556 : vector<8x128xf32>
    %c52 = arith.constant 52 : index
    %558 = memref.load %arg4[%c52] : memref<128xf32, #tpu.memory_space<smem>>
    %559 = vector.broadcast %558 : f32 to vector<8x128xf32>
    %560 = arith.mulf %559, %553 : vector<8x128xf32>
    %561 = arith.addf %543, %560 : vector<8x128xf32>
    %c84 = arith.constant 84 : index
    %562 = memref.load %arg4[%c84] : memref<128xf32, #tpu.memory_space<smem>>
    %563 = vector.broadcast %562 : f32 to vector<8x128xf32>
    %564 = arith.mulf %563, %553 : vector<8x128xf32>
    %565 = arith.addf %547, %564 : vector<8x128xf32>
    %c116 = arith.constant 116 : index
    %566 = memref.load %arg4[%c116] : memref<128xf32, #tpu.memory_space<smem>>
    %567 = vector.broadcast %566 : f32 to vector<8x128xf32>
    %568 = arith.mulf %567, %553 : vector<8x128xf32>
    %569 = arith.addf %551, %568 : vector<8x128xf32>
    %c2_147 = arith.constant 2 : index
    %c0_148 = arith.constant 0 : index
    %c112_149 = arith.constant 112 : index
    %570 = vector.load %arg10[%c2_147, %c0_148, %c112_149] : memref<4x8x256xf32, #tpu.memory_space<vmem>>, vector<1x8x128xf32>
    %571 = vector.shape_cast %570 : vector<1x8x128xf32> to vector<8x128xf32>
    %c21_150 = arith.constant 21 : index
    %572 = memref.load %arg4[%c21_150] : memref<128xf32, #tpu.memory_space<smem>>
    %573 = vector.broadcast %572 : f32 to vector<8x128xf32>
    %574 = arith.mulf %573, %571 : vector<8x128xf32>
    %575 = arith.addf %557, %574 : vector<8x128xf32>
    %c53 = arith.constant 53 : index
    %576 = memref.load %arg4[%c53] : memref<128xf32, #tpu.memory_space<smem>>
    %577 = vector.broadcast %576 : f32 to vector<8x128xf32>
    %578 = arith.mulf %577, %571 : vector<8x128xf32>
    %579 = arith.addf %561, %578 : vector<8x128xf32>
    %c85 = arith.constant 85 : index
    %580 = memref.load %arg4[%c85] : memref<128xf32, #tpu.memory_space<smem>>
    %581 = vector.broadcast %580 : f32 to vector<8x128xf32>
    %582 = arith.mulf %581, %571 : vector<8x128xf32>
    %583 = arith.addf %565, %582 : vector<8x128xf32>
    %c117 = arith.constant 117 : index
    %584 = memref.load %arg4[%c117] : memref<128xf32, #tpu.memory_space<smem>>
    %585 = vector.broadcast %584 : f32 to vector<8x128xf32>
    %586 = arith.mulf %585, %571 : vector<8x128xf32>
    %587 = arith.addf %569, %586 : vector<8x128xf32>
    %c2_151 = arith.constant 2 : index
    %c0_152 = arith.constant 0 : index
    %c120_153 = arith.constant 120 : index
    %588 = vector.load %arg10[%c2_151, %c0_152, %c120_153] : memref<4x8x256xf32, #tpu.memory_space<vmem>>, vector<1x8x128xf32>
    %589 = vector.shape_cast %588 : vector<1x8x128xf32> to vector<8x128xf32>
    %c22_154 = arith.constant 22 : index
    %590 = memref.load %arg4[%c22_154] : memref<128xf32, #tpu.memory_space<smem>>
    %591 = vector.broadcast %590 : f32 to vector<8x128xf32>
    %592 = arith.mulf %591, %589 : vector<8x128xf32>
    %593 = arith.addf %575, %592 : vector<8x128xf32>
    %c54 = arith.constant 54 : index
    %594 = memref.load %arg4[%c54] : memref<128xf32, #tpu.memory_space<smem>>
    %595 = vector.broadcast %594 : f32 to vector<8x128xf32>
    %596 = arith.mulf %595, %589 : vector<8x128xf32>
    %597 = arith.addf %579, %596 : vector<8x128xf32>
    %c86 = arith.constant 86 : index
    %598 = memref.load %arg4[%c86] : memref<128xf32, #tpu.memory_space<smem>>
    %599 = vector.broadcast %598 : f32 to vector<8x128xf32>
    %600 = arith.mulf %599, %589 : vector<8x128xf32>
    %601 = arith.addf %583, %600 : vector<8x128xf32>
    %c118 = arith.constant 118 : index
    %602 = memref.load %arg4[%c118] : memref<128xf32, #tpu.memory_space<smem>>
    %603 = vector.broadcast %602 : f32 to vector<8x128xf32>
    %604 = arith.mulf %603, %589 : vector<8x128xf32>
    %605 = arith.addf %587, %604 : vector<8x128xf32>
    %c2_155 = arith.constant 2 : index
    %c0_156 = arith.constant 0 : index
    %c128_157 = arith.constant 128 : index
    %606 = vector.load %arg10[%c2_155, %c0_156, %c128_157] : memref<4x8x256xf32, #tpu.memory_space<vmem>>, vector<1x8x128xf32>
    %607 = vector.shape_cast %606 : vector<1x8x128xf32> to vector<8x128xf32>
    %c23_158 = arith.constant 23 : index
    %608 = memref.load %arg4[%c23_158] : memref<128xf32, #tpu.memory_space<smem>>
    %609 = vector.broadcast %608 : f32 to vector<8x128xf32>
    %610 = arith.mulf %609, %607 : vector<8x128xf32>
    %611 = arith.addf %593, %610 : vector<8x128xf32>
    %c55 = arith.constant 55 : index
    %612 = memref.load %arg4[%c55] : memref<128xf32, #tpu.memory_space<smem>>
    %613 = vector.broadcast %612 : f32 to vector<8x128xf32>
    %614 = arith.mulf %613, %607 : vector<8x128xf32>
    %615 = arith.addf %597, %614 : vector<8x128xf32>
    %c87 = arith.constant 87 : index
    %616 = memref.load %arg4[%c87] : memref<128xf32, #tpu.memory_space<smem>>
    %617 = vector.broadcast %616 : f32 to vector<8x128xf32>
    %618 = arith.mulf %617, %607 : vector<8x128xf32>
    %619 = arith.addf %601, %618 : vector<8x128xf32>
    %c119 = arith.constant 119 : index
    %620 = memref.load %arg4[%c119] : memref<128xf32, #tpu.memory_space<smem>>
    %621 = vector.broadcast %620 : f32 to vector<8x128xf32>
    %622 = arith.mulf %621, %607 : vector<8x128xf32>
    %623 = arith.addf %605, %622 : vector<8x128xf32>
    %c3_159 = arith.constant 3 : index
    %c0_160 = arith.constant 0 : index
    %c72_161 = arith.constant 72 : index
    %624 = vector.load %arg10[%c3_159, %c0_160, %c72_161] : memref<4x8x256xf32, #tpu.memory_space<vmem>>, vector<1x8x128xf32>
    %625 = vector.shape_cast %624 : vector<1x8x128xf32> to vector<8x128xf32>
    %c24_162 = arith.constant 24 : index
    %626 = memref.load %arg4[%c24_162] : memref<128xf32, #tpu.memory_space<smem>>
    %627 = vector.broadcast %626 : f32 to vector<8x128xf32>
    %628 = arith.mulf %627, %625 : vector<8x128xf32>
    %629 = arith.addf %611, %628 : vector<8x128xf32>
    %c56 = arith.constant 56 : index
    %630 = memref.load %arg4[%c56] : memref<128xf32, #tpu.memory_space<smem>>
    %631 = vector.broadcast %630 : f32 to vector<8x128xf32>
    %632 = arith.mulf %631, %625 : vector<8x128xf32>
    %633 = arith.addf %615, %632 : vector<8x128xf32>
    %c88_163 = arith.constant 88 : index
    %634 = memref.load %arg4[%c88_163] : memref<128xf32, #tpu.memory_space<smem>>
    %635 = vector.broadcast %634 : f32 to vector<8x128xf32>
    %636 = arith.mulf %635, %625 : vector<8x128xf32>
    %637 = arith.addf %619, %636 : vector<8x128xf32>
    %c120_164 = arith.constant 120 : index
    %638 = memref.load %arg4[%c120_164] : memref<128xf32, #tpu.memory_space<smem>>
    %639 = vector.broadcast %638 : f32 to vector<8x128xf32>
    %640 = arith.mulf %639, %625 : vector<8x128xf32>
    %641 = arith.addf %623, %640 : vector<8x128xf32>
    %c3_165 = arith.constant 3 : index
    %c0_166 = arith.constant 0 : index
    %c80_167 = arith.constant 80 : index
    %642 = vector.load %arg10[%c3_165, %c0_166, %c80_167] : memref<4x8x256xf32, #tpu.memory_space<vmem>>, vector<1x8x128xf32>
    %643 = vector.shape_cast %642 : vector<1x8x128xf32> to vector<8x128xf32>
    %c25_168 = arith.constant 25 : index
    %644 = memref.load %arg4[%c25_168] : memref<128xf32, #tpu.memory_space<smem>>
    %645 = vector.broadcast %644 : f32 to vector<8x128xf32>
    %646 = arith.mulf %645, %643 : vector<8x128xf32>
    %647 = arith.addf %629, %646 : vector<8x128xf32>
    %c57 = arith.constant 57 : index
    %648 = memref.load %arg4[%c57] : memref<128xf32, #tpu.memory_space<smem>>
    %649 = vector.broadcast %648 : f32 to vector<8x128xf32>
    %650 = arith.mulf %649, %643 : vector<8x128xf32>
    %651 = arith.addf %633, %650 : vector<8x128xf32>
    %c89 = arith.constant 89 : index
    %652 = memref.load %arg4[%c89] : memref<128xf32, #tpu.memory_space<smem>>
    %653 = vector.broadcast %652 : f32 to vector<8x128xf32>
    %654 = arith.mulf %653, %643 : vector<8x128xf32>
    %655 = arith.addf %637, %654 : vector<8x128xf32>
    %c121 = arith.constant 121 : index
    %656 = memref.load %arg4[%c121] : memref<128xf32, #tpu.memory_space<smem>>
    %657 = vector.broadcast %656 : f32 to vector<8x128xf32>
    %658 = arith.mulf %657, %643 : vector<8x128xf32>
    %659 = arith.addf %641, %658 : vector<8x128xf32>
    %c3_169 = arith.constant 3 : index
    %c0_170 = arith.constant 0 : index
    %c88_171 = arith.constant 88 : index
    %660 = vector.load %arg10[%c3_169, %c0_170, %c88_171] : memref<4x8x256xf32, #tpu.memory_space<vmem>>, vector<1x8x128xf32>
    %661 = vector.shape_cast %660 : vector<1x8x128xf32> to vector<8x128xf32>
    %c26_172 = arith.constant 26 : index
    %662 = memref.load %arg4[%c26_172] : memref<128xf32, #tpu.memory_space<smem>>
    %663 = vector.broadcast %662 : f32 to vector<8x128xf32>
    %664 = arith.mulf %663, %661 : vector<8x128xf32>
    %665 = arith.addf %647, %664 : vector<8x128xf32>
    %c58 = arith.constant 58 : index
    %666 = memref.load %arg4[%c58] : memref<128xf32, #tpu.memory_space<smem>>
    %667 = vector.broadcast %666 : f32 to vector<8x128xf32>
    %668 = arith.mulf %667, %661 : vector<8x128xf32>
    %669 = arith.addf %651, %668 : vector<8x128xf32>
    %c90 = arith.constant 90 : index
    %670 = memref.load %arg4[%c90] : memref<128xf32, #tpu.memory_space<smem>>
    %671 = vector.broadcast %670 : f32 to vector<8x128xf32>
    %672 = arith.mulf %671, %661 : vector<8x128xf32>
    %673 = arith.addf %655, %672 : vector<8x128xf32>
    %c122 = arith.constant 122 : index
    %674 = memref.load %arg4[%c122] : memref<128xf32, #tpu.memory_space<smem>>
    %675 = vector.broadcast %674 : f32 to vector<8x128xf32>
    %676 = arith.mulf %675, %661 : vector<8x128xf32>
    %677 = arith.addf %659, %676 : vector<8x128xf32>
    %c3_173 = arith.constant 3 : index
    %c0_174 = arith.constant 0 : index
    %c96_175 = arith.constant 96 : index
    %678 = vector.load %arg10[%c3_173, %c0_174, %c96_175] : memref<4x8x256xf32, #tpu.memory_space<vmem>>, vector<1x8x128xf32>
    %679 = vector.shape_cast %678 : vector<1x8x128xf32> to vector<8x128xf32>
    %c27_176 = arith.constant 27 : index
    %680 = memref.load %arg4[%c27_176] : memref<128xf32, #tpu.memory_space<smem>>
    %681 = vector.broadcast %680 : f32 to vector<8x128xf32>
    %682 = arith.mulf %681, %679 : vector<8x128xf32>
    %683 = arith.addf %665, %682 : vector<8x128xf32>
    %c59 = arith.constant 59 : index
    %684 = memref.load %arg4[%c59] : memref<128xf32, #tpu.memory_space<smem>>
    %685 = vector.broadcast %684 : f32 to vector<8x128xf32>
    %686 = arith.mulf %685, %679 : vector<8x128xf32>
    %687 = arith.addf %669, %686 : vector<8x128xf32>
    %c91 = arith.constant 91 : index
    %688 = memref.load %arg4[%c91] : memref<128xf32, #tpu.memory_space<smem>>
    %689 = vector.broadcast %688 : f32 to vector<8x128xf32>
    %690 = arith.mulf %689, %679 : vector<8x128xf32>
    %691 = arith.addf %673, %690 : vector<8x128xf32>
    %c123 = arith.constant 123 : index
    %692 = memref.load %arg4[%c123] : memref<128xf32, #tpu.memory_space<smem>>
    %693 = vector.broadcast %692 : f32 to vector<8x128xf32>
    %694 = arith.mulf %693, %679 : vector<8x128xf32>
    %695 = arith.addf %677, %694 : vector<8x128xf32>
    %c3_177 = arith.constant 3 : index
    %c0_178 = arith.constant 0 : index
    %c104_179 = arith.constant 104 : index
    %696 = vector.load %arg10[%c3_177, %c0_178, %c104_179] : memref<4x8x256xf32, #tpu.memory_space<vmem>>, vector<1x8x128xf32>
    %697 = vector.shape_cast %696 : vector<1x8x128xf32> to vector<8x128xf32>
    %c28_180 = arith.constant 28 : index
    %698 = memref.load %arg4[%c28_180] : memref<128xf32, #tpu.memory_space<smem>>
    %699 = vector.broadcast %698 : f32 to vector<8x128xf32>
    %700 = arith.mulf %699, %697 : vector<8x128xf32>
    %701 = arith.addf %683, %700 : vector<8x128xf32>
    %c60 = arith.constant 60 : index
    %702 = memref.load %arg4[%c60] : memref<128xf32, #tpu.memory_space<smem>>
    %703 = vector.broadcast %702 : f32 to vector<8x128xf32>
    %704 = arith.mulf %703, %697 : vector<8x128xf32>
    %705 = arith.addf %687, %704 : vector<8x128xf32>
    %c92 = arith.constant 92 : index
    %706 = memref.load %arg4[%c92] : memref<128xf32, #tpu.memory_space<smem>>
    %707 = vector.broadcast %706 : f32 to vector<8x128xf32>
    %708 = arith.mulf %707, %697 : vector<8x128xf32>
    %709 = arith.addf %691, %708 : vector<8x128xf32>
    %c124 = arith.constant 124 : index
    %710 = memref.load %arg4[%c124] : memref<128xf32, #tpu.memory_space<smem>>
    %711 = vector.broadcast %710 : f32 to vector<8x128xf32>
    %712 = arith.mulf %711, %697 : vector<8x128xf32>
    %713 = arith.addf %695, %712 : vector<8x128xf32>
    %c3_181 = arith.constant 3 : index
    %c0_182 = arith.constant 0 : index
    %c112_183 = arith.constant 112 : index
    %714 = vector.load %arg10[%c3_181, %c0_182, %c112_183] : memref<4x8x256xf32, #tpu.memory_space<vmem>>, vector<1x8x128xf32>
    %715 = vector.shape_cast %714 : vector<1x8x128xf32> to vector<8x128xf32>
    %c29_184 = arith.constant 29 : index
    %716 = memref.load %arg4[%c29_184] : memref<128xf32, #tpu.memory_space<smem>>
    %717 = vector.broadcast %716 : f32 to vector<8x128xf32>
    %718 = arith.mulf %717, %715 : vector<8x128xf32>
    %719 = arith.addf %701, %718 : vector<8x128xf32>
    %c61 = arith.constant 61 : index
    %720 = memref.load %arg4[%c61] : memref<128xf32, #tpu.memory_space<smem>>
    %721 = vector.broadcast %720 : f32 to vector<8x128xf32>
    %722 = arith.mulf %721, %715 : vector<8x128xf32>
    %723 = arith.addf %705, %722 : vector<8x128xf32>
    %c93 = arith.constant 93 : index
    %724 = memref.load %arg4[%c93] : memref<128xf32, #tpu.memory_space<smem>>
    %725 = vector.broadcast %724 : f32 to vector<8x128xf32>
    %726 = arith.mulf %725, %715 : vector<8x128xf32>
    %727 = arith.addf %709, %726 : vector<8x128xf32>
    %c125 = arith.constant 125 : index
    %728 = memref.load %arg4[%c125] : memref<128xf32, #tpu.memory_space<smem>>
    %729 = vector.broadcast %728 : f32 to vector<8x128xf32>
    %730 = arith.mulf %729, %715 : vector<8x128xf32>
    %731 = arith.addf %713, %730 : vector<8x128xf32>
    %c3_185 = arith.constant 3 : index
    %c0_186 = arith.constant 0 : index
    %c120_187 = arith.constant 120 : index
    %732 = vector.load %arg10[%c3_185, %c0_186, %c120_187] : memref<4x8x256xf32, #tpu.memory_space<vmem>>, vector<1x8x128xf32>
    %733 = vector.shape_cast %732 : vector<1x8x128xf32> to vector<8x128xf32>
    %c30_188 = arith.constant 30 : index
    %734 = memref.load %arg4[%c30_188] : memref<128xf32, #tpu.memory_space<smem>>
    %735 = vector.broadcast %734 : f32 to vector<8x128xf32>
    %736 = arith.mulf %735, %733 : vector<8x128xf32>
    %737 = arith.addf %719, %736 : vector<8x128xf32>
    %c62 = arith.constant 62 : index
    %738 = memref.load %arg4[%c62] : memref<128xf32, #tpu.memory_space<smem>>
    %739 = vector.broadcast %738 : f32 to vector<8x128xf32>
    %740 = arith.mulf %739, %733 : vector<8x128xf32>
    %741 = arith.addf %723, %740 : vector<8x128xf32>
    %c94 = arith.constant 94 : index
    %742 = memref.load %arg4[%c94] : memref<128xf32, #tpu.memory_space<smem>>
    %743 = vector.broadcast %742 : f32 to vector<8x128xf32>
    %744 = arith.mulf %743, %733 : vector<8x128xf32>
    %745 = arith.addf %727, %744 : vector<8x128xf32>
    %c126 = arith.constant 126 : index
    %746 = memref.load %arg4[%c126] : memref<128xf32, #tpu.memory_space<smem>>
    %747 = vector.broadcast %746 : f32 to vector<8x128xf32>
    %748 = arith.mulf %747, %733 : vector<8x128xf32>
    %749 = arith.addf %731, %748 : vector<8x128xf32>
    %c3_189 = arith.constant 3 : index
    %c0_190 = arith.constant 0 : index
    %c128_191 = arith.constant 128 : index
    %750 = vector.load %arg10[%c3_189, %c0_190, %c128_191] : memref<4x8x256xf32, #tpu.memory_space<vmem>>, vector<1x8x128xf32>
    %751 = vector.shape_cast %750 : vector<1x8x128xf32> to vector<8x128xf32>
    %c31_192 = arith.constant 31 : index
    %752 = memref.load %arg4[%c31_192] : memref<128xf32, #tpu.memory_space<smem>>
    %753 = vector.broadcast %752 : f32 to vector<8x128xf32>
    %754 = arith.mulf %753, %751 : vector<8x128xf32>
    %755 = arith.addf %737, %754 : vector<8x128xf32>
    %c63 = arith.constant 63 : index
    %756 = memref.load %arg4[%c63] : memref<128xf32, #tpu.memory_space<smem>>
    %757 = vector.broadcast %756 : f32 to vector<8x128xf32>
    %758 = arith.mulf %757, %751 : vector<8x128xf32>
    %759 = arith.addf %741, %758 : vector<8x128xf32>
    %c95 = arith.constant 95 : index
    %760 = memref.load %arg4[%c95] : memref<128xf32, #tpu.memory_space<smem>>
    %761 = vector.broadcast %760 : f32 to vector<8x128xf32>
    %762 = arith.mulf %761, %751 : vector<8x128xf32>
    %763 = arith.addf %745, %762 : vector<8x128xf32>
    %c127 = arith.constant 127 : index
    %764 = memref.load %arg4[%c127] : memref<128xf32, #tpu.memory_space<smem>>
    %765 = vector.broadcast %764 : f32 to vector<8x128xf32>
    %766 = arith.mulf %765, %751 : vector<8x128xf32>
    %767 = arith.addf %749, %766 : vector<8x128xf32>
    %c0_193 = arith.constant 0 : index
    %c0_194 = arith.constant 0 : index
    %c128_195 = arith.constant 128 : index
    %768 = vector.load %arg10[%c0_193, %c0_194, %c128_195] : memref<4x8x256xf32, #tpu.memory_space<vmem>>, vector<1x8x128xf32>
    %769 = vector.shape_cast %768 : vector<1x8x128xf32> to vector<8x128xf32>
    %770 = arith.addf %755, %769 : vector<8x128xf32>
    %cst_196 = arith.constant 0.000000e+00 : f32
    %771 = vector.broadcast %cst_196 : f32 to vector<8x128xf32>
    %772 = arith.maximumf %770, %771 : vector<8x128xf32>
    %c0_197 = arith.constant 0 : index
    %c0_198 = arith.constant 0 : index
    %c128_199 = arith.constant 128 : index
    %773 = vector.load %arg11[%c0_197, %c0_198, %c128_199] : memref<4x8x256xf32, #tpu.memory_space<vmem>>, vector<1x8x128xf32>
    %774 = vector.shape_cast %773 : vector<1x8x128xf32> to vector<8x128xf32>
    %775 = vector.shape_cast %772 : vector<8x128xf32> to vector<1x8x128xf32>
    tpu.vector_store %arg11[%c0_197, %c0_198, %c128_199], %775 {strides = array<i32>} : memref<4x8x256xf32, #tpu.memory_space<vmem>>, vector<1x8x128xf32>,
    %c1_200 = arith.constant 1 : index
    %c0_201 = arith.constant 0 : index
    %c128_202 = arith.constant 128 : index
    %776 = vector.load %arg10[%c1_200, %c0_201, %c128_202] : memref<4x8x256xf32, #tpu.memory_space<vmem>>, vector<1x8x128xf32>
    %777 = vector.shape_cast %776 : vector<1x8x128xf32> to vector<8x128xf32>
    %778 = arith.addf %759, %777 : vector<8x128xf32>
    %cst_203 = arith.constant 0.000000e+00 : f32
    %779 = vector.broadcast %cst_203 : f32 to vector<8x128xf32>
    %780 = arith.maximumf %778, %779 : vector<8x128xf32>
    %c1_204 = arith.constant 1 : index
    %c0_205 = arith.constant 0 : index
    %c128_206 = arith.constant 128 : index
    %781 = vector.load %arg11[%c1_204, %c0_205, %c128_206] : memref<4x8x256xf32, #tpu.memory_space<vmem>>, vector<1x8x128xf32>
    %782 = vector.shape_cast %781 : vector<1x8x128xf32> to vector<8x128xf32>
    %783 = vector.shape_cast %780 : vector<8x128xf32> to vector<1x8x128xf32>
    tpu.vector_store %arg11[%c1_204, %c0_205, %c128_206], %783 {strides = array<i32>} : memref<4x8x256xf32, #tpu.memory_space<vmem>>, vector<1x8x128xf32>,
    %c2_207 = arith.constant 2 : index
    %c0_208 = arith.constant 0 : index
    %c128_209 = arith.constant 128 : index
    %784 = vector.load %arg10[%c2_207, %c0_208, %c128_209] : memref<4x8x256xf32, #tpu.memory_space<vmem>>, vector<1x8x128xf32>
    %785 = vector.shape_cast %784 : vector<1x8x128xf32> to vector<8x128xf32>
    %786 = arith.addf %763, %785 : vector<8x128xf32>
    %cst_210 = arith.constant 0.000000e+00 : f32
    %787 = vector.broadcast %cst_210 : f32 to vector<8x128xf32>
    %788 = arith.maximumf %786, %787 : vector<8x128xf32>
    %c2_211 = arith.constant 2 : index
    %c0_212 = arith.constant 0 : index
    %c128_213 = arith.constant 128 : index
    %789 = vector.load %arg11[%c2_211, %c0_212, %c128_213] : memref<4x8x256xf32, #tpu.memory_space<vmem>>, vector<1x8x128xf32>
    %790 = vector.shape_cast %789 : vector<1x8x128xf32> to vector<8x128xf32>
    %791 = vector.shape_cast %788 : vector<8x128xf32> to vector<1x8x128xf32>
    tpu.vector_store %arg11[%c2_211, %c0_212, %c128_213], %791 {strides = array<i32>} : memref<4x8x256xf32, #tpu.memory_space<vmem>>, vector<1x8x128xf32>,
    %c3_214 = arith.constant 3 : index
    %c0_215 = arith.constant 0 : index
    %c128_216 = arith.constant 128 : index
    %792 = vector.load %arg10[%c3_214, %c0_215, %c128_216] : memref<4x8x256xf32, #tpu.memory_space<vmem>>, vector<1x8x128xf32>
    %793 = vector.shape_cast %792 : vector<1x8x128xf32> to vector<8x128xf32>
    %794 = arith.addf %767, %793 : vector<8x128xf32>
    %cst_217 = arith.constant 0.000000e+00 : f32
    %795 = vector.broadcast %cst_217 : f32 to vector<8x128xf32>
    %796 = arith.maximumf %794, %795 : vector<8x128xf32>
    %c3_218 = arith.constant 3 : index
    %c0_219 = arith.constant 0 : index
    %c128_220 = arith.constant 128 : index
    %797 = vector.load %arg11[%c3_218, %c0_219, %c128_220] : memref<4x8x256xf32, #tpu.memory_space<vmem>>, vector<1x8x128xf32>
    %798 = vector.shape_cast %797 : vector<1x8x128xf32> to vector<8x128xf32>
    %799 = vector.shape_cast %796 : vector<8x128xf32> to vector<1x8x128xf32>
    tpu.vector_store %arg11[%c3_218, %c0_219, %c128_220], %799 {strides = array<i32>} : memref<4x8x256xf32, #tpu.memory_space<vmem>>, vector<1x8x128xf32>,
    %cst_221 = arith.constant 0.000000e+00 : f32
    %800 = vector.broadcast %cst_221 : f32 to vector<8x128xf32>
    %cst_222 = arith.constant 0.000000e+00 : f32
    %801 = vector.broadcast %cst_222 : f32 to vector<8x128xf32>
    %cst_223 = arith.constant 0.000000e+00 : f32
    %802 = vector.broadcast %cst_223 : f32 to vector<8x128xf32>
    %cst_224 = arith.constant 0.000000e+00 : f32
    %803 = vector.broadcast %cst_224 : f32 to vector<8x128xf32>
    %c0_225 = arith.constant 0 : index
    %804 = memref.load %arg6[%c0_225] : memref<32xf32, #tpu.memory_space<smem>>
    %c0_226 = arith.constant 0 : index
    %c0_227 = arith.constant 0 : index
    %c72_228 = arith.constant 72 : index
    %805 = vector.load %arg11[%c0_226, %c0_227, %c72_228] : memref<4x8x256xf32, #tpu.memory_space<vmem>>, vector<1x8x128xf32>
    %806 = vector.shape_cast %805 : vector<1x8x128xf32> to vector<8x128xf32>
    %807 = vector.broadcast %804 : f32 to vector<8x128xf32>
    %808 = arith.mulf %807, %806 : vector<8x128xf32>
    %809 = arith.addf %800, %808 : vector<8x128xf32>
    %c1_229 = arith.constant 1 : index
    %810 = memref.load %arg6[%c1_229] : memref<32xf32, #tpu.memory_space<smem>>
    %c0_230 = arith.constant 0 : index
    %c0_231 = arith.constant 0 : index
    %c80_232 = arith.constant 80 : index
    %811 = vector.load %arg11[%c0_230, %c0_231, %c80_232] : memref<4x8x256xf32, #tpu.memory_space<vmem>>, vector<1x8x128xf32>
    %812 = vector.shape_cast %811 : vector<1x8x128xf32> to vector<8x128xf32>
    %813 = vector.broadcast %810 : f32 to vector<8x128xf32>
    %814 = arith.mulf %813, %812 : vector<8x128xf32>
    %815 = arith.addf %809, %814 : vector<8x128xf32>
    %c2_233 = arith.constant 2 : index
    %816 = memref.load %arg6[%c2_233] : memref<32xf32, #tpu.memory_space<smem>>
    %c0_234 = arith.constant 0 : index
    %c0_235 = arith.constant 0 : index
    %c88_236 = arith.constant 88 : index
    %817 = vector.load %arg11[%c0_234, %c0_235, %c88_236] : memref<4x8x256xf32, #tpu.memory_space<vmem>>, vector<1x8x128xf32>
    %818 = vector.shape_cast %817 : vector<1x8x128xf32> to vector<8x128xf32>
    %819 = vector.broadcast %816 : f32 to vector<8x128xf32>
    %820 = arith.mulf %819, %818 : vector<8x128xf32>
    %821 = arith.addf %815, %820 : vector<8x128xf32>
    %c3_237 = arith.constant 3 : index
    %822 = memref.load %arg6[%c3_237] : memref<32xf32, #tpu.memory_space<smem>>
    %c0_238 = arith.constant 0 : index
    %c0_239 = arith.constant 0 : index
    %c96_240 = arith.constant 96 : index
    %823 = vector.load %arg11[%c0_238, %c0_239, %c96_240] : memref<4x8x256xf32, #tpu.memory_space<vmem>>, vector<1x8x128xf32>
    %824 = vector.shape_cast %823 : vector<1x8x128xf32> to vector<8x128xf32>
    %825 = vector.broadcast %822 : f32 to vector<8x128xf32>
    %826 = arith.mulf %825, %824 : vector<8x128xf32>
    %827 = arith.addf %821, %826 : vector<8x128xf32>
    %c4_241 = arith.constant 4 : index
    %828 = memref.load %arg6[%c4_241] : memref<32xf32, #tpu.memory_space<smem>>
    %c0_242 = arith.constant 0 : index
    %c0_243 = arith.constant 0 : index
    %c104_244 = arith.constant 104 : index
    %829 = vector.load %arg11[%c0_242, %c0_243, %c104_244] : memref<4x8x256xf32, #tpu.memory_space<vmem>>, vector<1x8x128xf32>
    %830 = vector.shape_cast %829 : vector<1x8x128xf32> to vector<8x128xf32>
    %831 = vector.broadcast %828 : f32 to vector<8x128xf32>
    %832 = arith.mulf %831, %830 : vector<8x128xf32>
    %833 = arith.addf %827, %832 : vector<8x128xf32>
    %c5_245 = arith.constant 5 : index
    %834 = memref.load %arg6[%c5_245] : memref<32xf32, #tpu.memory_space<smem>>
    %c0_246 = arith.constant 0 : index
    %c0_247 = arith.constant 0 : index
    %c112_248 = arith.constant 112 : index
    %835 = vector.load %arg11[%c0_246, %c0_247, %c112_248] : memref<4x8x256xf32, #tpu.memory_space<vmem>>, vector<1x8x128xf32>
    %836 = vector.shape_cast %835 : vector<1x8x128xf32> to vector<8x128xf32>
    %837 = vector.broadcast %834 : f32 to vector<8x128xf32>
    %838 = arith.mulf %837, %836 : vector<8x128xf32>
    %839 = arith.addf %833, %838 : vector<8x128xf32>
    %c6_249 = arith.constant 6 : index
    %840 = memref.load %arg6[%c6_249] : memref<32xf32, #tpu.memory_space<smem>>
    %c0_250 = arith.constant 0 : index
    %c0_251 = arith.constant 0 : index
    %c120_252 = arith.constant 120 : index
    %841 = vector.load %arg11[%c0_250, %c0_251, %c120_252] : memref<4x8x256xf32, #tpu.memory_space<vmem>>, vector<1x8x128xf32>
    %842 = vector.shape_cast %841 : vector<1x8x128xf32> to vector<8x128xf32>
    %843 = vector.broadcast %840 : f32 to vector<8x128xf32>
    %844 = arith.mulf %843, %842 : vector<8x128xf32>
    %845 = arith.addf %839, %844 : vector<8x128xf32>
    %c7_253 = arith.constant 7 : index
    %846 = memref.load %arg6[%c7_253] : memref<32xf32, #tpu.memory_space<smem>>
    %c0_254 = arith.constant 0 : index
    %c0_255 = arith.constant 0 : index
    %c128_256 = arith.constant 128 : index
    %847 = vector.load %arg11[%c0_254, %c0_255, %c128_256] : memref<4x8x256xf32, #tpu.memory_space<vmem>>, vector<1x8x128xf32>
    %848 = vector.shape_cast %847 : vector<1x8x128xf32> to vector<8x128xf32>
    %849 = vector.broadcast %846 : f32 to vector<8x128xf32>
    %850 = arith.mulf %849, %848 : vector<8x128xf32>
    %851 = arith.addf %845, %850 : vector<8x128xf32>
    %c8_257 = arith.constant 8 : index
    %852 = memref.load %arg6[%c8_257] : memref<32xf32, #tpu.memory_space<smem>>
    %c1_258 = arith.constant 1 : index
    %c0_259 = arith.constant 0 : index
    %c72_260 = arith.constant 72 : index
    %853 = vector.load %arg11[%c1_258, %c0_259, %c72_260] : memref<4x8x256xf32, #tpu.memory_space<vmem>>, vector<1x8x128xf32>
    %854 = vector.shape_cast %853 : vector<1x8x128xf32> to vector<8x128xf32>
    %855 = vector.broadcast %852 : f32 to vector<8x128xf32>
    %856 = arith.mulf %855, %854 : vector<8x128xf32>
    %857 = arith.addf %801, %856 : vector<8x128xf32>
    %c9_261 = arith.constant 9 : index
    %858 = memref.load %arg6[%c9_261] : memref<32xf32, #tpu.memory_space<smem>>
    %c1_262 = arith.constant 1 : index
    %c0_263 = arith.constant 0 : index
    %c80_264 = arith.constant 80 : index
    %859 = vector.load %arg11[%c1_262, %c0_263, %c80_264] : memref<4x8x256xf32, #tpu.memory_space<vmem>>, vector<1x8x128xf32>
    %860 = vector.shape_cast %859 : vector<1x8x128xf32> to vector<8x128xf32>
    %861 = vector.broadcast %858 : f32 to vector<8x128xf32>
    %862 = arith.mulf %861, %860 : vector<8x128xf32>
    %863 = arith.addf %857, %862 : vector<8x128xf32>
    %c10_265 = arith.constant 10 : index
    %864 = memref.load %arg6[%c10_265] : memref<32xf32, #tpu.memory_space<smem>>
    %c1_266 = arith.constant 1 : index
    %c0_267 = arith.constant 0 : index
    %c88_268 = arith.constant 88 : index
    %865 = vector.load %arg11[%c1_266, %c0_267, %c88_268] : memref<4x8x256xf32, #tpu.memory_space<vmem>>, vector<1x8x128xf32>
    %866 = vector.shape_cast %865 : vector<1x8x128xf32> to vector<8x128xf32>
    %867 = vector.broadcast %864 : f32 to vector<8x128xf32>
    %868 = arith.mulf %867, %866 : vector<8x128xf32>
    %869 = arith.addf %863, %868 : vector<8x128xf32>
    %c11_269 = arith.constant 11 : index
    %870 = memref.load %arg6[%c11_269] : memref<32xf32, #tpu.memory_space<smem>>
    %c1_270 = arith.constant 1 : index
    %c0_271 = arith.constant 0 : index
    %c96_272 = arith.constant 96 : index
    %871 = vector.load %arg11[%c1_270, %c0_271, %c96_272] : memref<4x8x256xf32, #tpu.memory_space<vmem>>, vector<1x8x128xf32>
    %872 = vector.shape_cast %871 : vector<1x8x128xf32> to vector<8x128xf32>
    %873 = vector.broadcast %870 : f32 to vector<8x128xf32>
    %874 = arith.mulf %873, %872 : vector<8x128xf32>
    %875 = arith.addf %869, %874 : vector<8x128xf32>
    %c12_273 = arith.constant 12 : index
    %876 = memref.load %arg6[%c12_273] : memref<32xf32, #tpu.memory_space<smem>>
    %c1_274 = arith.constant 1 : index
    %c0_275 = arith.constant 0 : index
    %c104_276 = arith.constant 104 : index
    %877 = vector.load %arg11[%c1_274, %c0_275, %c104_276] : memref<4x8x256xf32, #tpu.memory_space<vmem>>, vector<1x8x128xf32>
    %878 = vector.shape_cast %877 : vector<1x8x128xf32> to vector<8x128xf32>
    %879 = vector.broadcast %876 : f32 to vector<8x128xf32>
    %880 = arith.mulf %879, %878 : vector<8x128xf32>
    %881 = arith.addf %875, %880 : vector<8x128xf32>
    %c13_277 = arith.constant 13 : index
    %882 = memref.load %arg6[%c13_277] : memref<32xf32, #tpu.memory_space<smem>>
    %c1_278 = arith.constant 1 : index
    %c0_279 = arith.constant 0 : index
    %c112_280 = arith.constant 112 : index
    %883 = vector.load %arg11[%c1_278, %c0_279, %c112_280] : memref<4x8x256xf32, #tpu.memory_space<vmem>>, vector<1x8x128xf32>
    %884 = vector.shape_cast %883 : vector<1x8x128xf32> to vector<8x128xf32>
    %885 = vector.broadcast %882 : f32 to vector<8x128xf32>
    %886 = arith.mulf %885, %884 : vector<8x128xf32>
    %887 = arith.addf %881, %886 : vector<8x128xf32>
    %c14_281 = arith.constant 14 : index
    %888 = memref.load %arg6[%c14_281] : memref<32xf32, #tpu.memory_space<smem>>
    %c1_282 = arith.constant 1 : index
    %c0_283 = arith.constant 0 : index
    %c120_284 = arith.constant 120 : index
    %889 = vector.load %arg11[%c1_282, %c0_283, %c120_284] : memref<4x8x256xf32, #tpu.memory_space<vmem>>, vector<1x8x128xf32>
    %890 = vector.shape_cast %889 : vector<1x8x128xf32> to vector<8x128xf32>
    %891 = vector.broadcast %888 : f32 to vector<8x128xf32>
    %892 = arith.mulf %891, %890 : vector<8x128xf32>
    %893 = arith.addf %887, %892 : vector<8x128xf32>
    %c15_285 = arith.constant 15 : index
    %894 = memref.load %arg6[%c15_285] : memref<32xf32, #tpu.memory_space<smem>>
    %c1_286 = arith.constant 1 : index
    %c0_287 = arith.constant 0 : index
    %c128_288 = arith.constant 128 : index
    %895 = vector.load %arg11[%c1_286, %c0_287, %c128_288] : memref<4x8x256xf32, #tpu.memory_space<vmem>>, vector<1x8x128xf32>
    %896 = vector.shape_cast %895 : vector<1x8x128xf32> to vector<8x128xf32>
    %897 = vector.broadcast %894 : f32 to vector<8x128xf32>
    %898 = arith.mulf %897, %896 : vector<8x128xf32>
    %899 = arith.addf %893, %898 : vector<8x128xf32>
    %c16_289 = arith.constant 16 : index
    %900 = memref.load %arg6[%c16_289] : memref<32xf32, #tpu.memory_space<smem>>
    %c2_290 = arith.constant 2 : index
    %c0_291 = arith.constant 0 : index
    %c72_292 = arith.constant 72 : index
    %901 = vector.load %arg11[%c2_290, %c0_291, %c72_292] : memref<4x8x256xf32, #tpu.memory_space<vmem>>, vector<1x8x128xf32>
    %902 = vector.shape_cast %901 : vector<1x8x128xf32> to vector<8x128xf32>
    %903 = vector.broadcast %900 : f32 to vector<8x128xf32>
    %904 = arith.mulf %903, %902 : vector<8x128xf32>
    %905 = arith.addf %802, %904 : vector<8x128xf32>
    %c17_293 = arith.constant 17 : index
    %906 = memref.load %arg6[%c17_293] : memref<32xf32, #tpu.memory_space<smem>>
    %c2_294 = arith.constant 2 : index
    %c0_295 = arith.constant 0 : index
    %c80_296 = arith.constant 80 : index
    %907 = vector.load %arg11[%c2_294, %c0_295, %c80_296] : memref<4x8x256xf32, #tpu.memory_space<vmem>>, vector<1x8x128xf32>
    %908 = vector.shape_cast %907 : vector<1x8x128xf32> to vector<8x128xf32>
    %909 = vector.broadcast %906 : f32 to vector<8x128xf32>
    %910 = arith.mulf %909, %908 : vector<8x128xf32>
    %911 = arith.addf %905, %910 : vector<8x128xf32>
    %c18_297 = arith.constant 18 : index
    %912 = memref.load %arg6[%c18_297] : memref<32xf32, #tpu.memory_space<smem>>
    %c2_298 = arith.constant 2 : index
    %c0_299 = arith.constant 0 : index
    %c88_300 = arith.constant 88 : index
    %913 = vector.load %arg11[%c2_298, %c0_299, %c88_300] : memref<4x8x256xf32, #tpu.memory_space<vmem>>, vector<1x8x128xf32>
    %914 = vector.shape_cast %913 : vector<1x8x128xf32> to vector<8x128xf32>
    %915 = vector.broadcast %912 : f32 to vector<8x128xf32>
    %916 = arith.mulf %915, %914 : vector<8x128xf32>
    %917 = arith.addf %911, %916 : vector<8x128xf32>
    %c19_301 = arith.constant 19 : index
    %918 = memref.load %arg6[%c19_301] : memref<32xf32, #tpu.memory_space<smem>>
    %c2_302 = arith.constant 2 : index
    %c0_303 = arith.constant 0 : index
    %c96_304 = arith.constant 96 : index
    %919 = vector.load %arg11[%c2_302, %c0_303, %c96_304] : memref<4x8x256xf32, #tpu.memory_space<vmem>>, vector<1x8x128xf32>
    %920 = vector.shape_cast %919 : vector<1x8x128xf32> to vector<8x128xf32>
    %921 = vector.broadcast %918 : f32 to vector<8x128xf32>
    %922 = arith.mulf %921, %920 : vector<8x128xf32>
    %923 = arith.addf %917, %922 : vector<8x128xf32>
    %c20_305 = arith.constant 20 : index
    %924 = memref.load %arg6[%c20_305] : memref<32xf32, #tpu.memory_space<smem>>
    %c2_306 = arith.constant 2 : index
    %c0_307 = arith.constant 0 : index
    %c104_308 = arith.constant 104 : index
    %925 = vector.load %arg11[%c2_306, %c0_307, %c104_308] : memref<4x8x256xf32, #tpu.memory_space<vmem>>, vector<1x8x128xf32>
    %926 = vector.shape_cast %925 : vector<1x8x128xf32> to vector<8x128xf32>
    %927 = vector.broadcast %924 : f32 to vector<8x128xf32>
    %928 = arith.mulf %927, %926 : vector<8x128xf32>
    %929 = arith.addf %923, %928 : vector<8x128xf32>
    %c21_309 = arith.constant 21 : index
    %930 = memref.load %arg6[%c21_309] : memref<32xf32, #tpu.memory_space<smem>>
    %c2_310 = arith.constant 2 : index
    %c0_311 = arith.constant 0 : index
    %c112_312 = arith.constant 112 : index
    %931 = vector.load %arg11[%c2_310, %c0_311, %c112_312] : memref<4x8x256xf32, #tpu.memory_space<vmem>>, vector<1x8x128xf32>
    %932 = vector.shape_cast %931 : vector<1x8x128xf32> to vector<8x128xf32>
    %933 = vector.broadcast %930 : f32 to vector<8x128xf32>
    %934 = arith.mulf %933, %932 : vector<8x128xf32>
    %935 = arith.addf %929, %934 : vector<8x128xf32>
    %c22_313 = arith.constant 22 : index
    %936 = memref.load %arg6[%c22_313] : memref<32xf32, #tpu.memory_space<smem>>
    %c2_314 = arith.constant 2 : index
    %c0_315 = arith.constant 0 : index
    %c120_316 = arith.constant 120 : index
    %937 = vector.load %arg11[%c2_314, %c0_315, %c120_316] : memref<4x8x256xf32, #tpu.memory_space<vmem>>, vector<1x8x128xf32>
    %938 = vector.shape_cast %937 : vector<1x8x128xf32> to vector<8x128xf32>
    %939 = vector.broadcast %936 : f32 to vector<8x128xf32>
    %940 = arith.mulf %939, %938 : vector<8x128xf32>
    %941 = arith.addf %935, %940 : vector<8x128xf32>
    %c23_317 = arith.constant 23 : index
    %942 = memref.load %arg6[%c23_317] : memref<32xf32, #tpu.memory_space<smem>>
    %c2_318 = arith.constant 2 : index
    %c0_319 = arith.constant 0 : index
    %c128_320 = arith.constant 128 : index
    %943 = vector.load %arg11[%c2_318, %c0_319, %c128_320] : memref<4x8x256xf32, #tpu.memory_space<vmem>>, vector<1x8x128xf32>
    %944 = vector.shape_cast %943 : vector<1x8x128xf32> to vector<8x128xf32>
    %945 = vector.broadcast %942 : f32 to vector<8x128xf32>
    %946 = arith.mulf %945, %944 : vector<8x128xf32>
    %947 = arith.addf %941, %946 : vector<8x128xf32>
    %c24_321 = arith.constant 24 : index
    %948 = memref.load %arg6[%c24_321] : memref<32xf32, #tpu.memory_space<smem>>
    %c3_322 = arith.constant 3 : index
    %c0_323 = arith.constant 0 : index
    %c72_324 = arith.constant 72 : index
    %949 = vector.load %arg11[%c3_322, %c0_323, %c72_324] : memref<4x8x256xf32, #tpu.memory_space<vmem>>, vector<1x8x128xf32>
    %950 = vector.shape_cast %949 : vector<1x8x128xf32> to vector<8x128xf32>
    %951 = vector.broadcast %948 : f32 to vector<8x128xf32>
    %952 = arith.mulf %951, %950 : vector<8x128xf32>
    %953 = arith.addf %803, %952 : vector<8x128xf32>
    %c25_325 = arith.constant 25 : index
    %954 = memref.load %arg6[%c25_325] : memref<32xf32, #tpu.memory_space<smem>>
    %c3_326 = arith.constant 3 : index
    %c0_327 = arith.constant 0 : index
    %c80_328 = arith.constant 80 : index
    %955 = vector.load %arg11[%c3_326, %c0_327, %c80_328] : memref<4x8x256xf32, #tpu.memory_space<vmem>>, vector<1x8x128xf32>
    %956 = vector.shape_cast %955 : vector<1x8x128xf32> to vector<8x128xf32>
    %957 = vector.broadcast %954 : f32 to vector<8x128xf32>
    %958 = arith.mulf %957, %956 : vector<8x128xf32>
    %959 = arith.addf %953, %958 : vector<8x128xf32>
    %c26_329 = arith.constant 26 : index
    %960 = memref.load %arg6[%c26_329] : memref<32xf32, #tpu.memory_space<smem>>
    %c3_330 = arith.constant 3 : index
    %c0_331 = arith.constant 0 : index
    %c88_332 = arith.constant 88 : index
    %961 = vector.load %arg11[%c3_330, %c0_331, %c88_332] : memref<4x8x256xf32, #tpu.memory_space<vmem>>, vector<1x8x128xf32>
    %962 = vector.shape_cast %961 : vector<1x8x128xf32> to vector<8x128xf32>
    %963 = vector.broadcast %960 : f32 to vector<8x128xf32>
    %964 = arith.mulf %963, %962 : vector<8x128xf32>
    %965 = arith.addf %959, %964 : vector<8x128xf32>
    %c27_333 = arith.constant 27 : index
    %966 = memref.load %arg6[%c27_333] : memref<32xf32, #tpu.memory_space<smem>>
    %c3_334 = arith.constant 3 : index
    %c0_335 = arith.constant 0 : index
    %c96_336 = arith.constant 96 : index
    %967 = vector.load %arg11[%c3_334, %c0_335, %c96_336] : memref<4x8x256xf32, #tpu.memory_space<vmem>>, vector<1x8x128xf32>
    %968 = vector.shape_cast %967 : vector<1x8x128xf32> to vector<8x128xf32>
    %969 = vector.broadcast %966 : f32 to vector<8x128xf32>
    %970 = arith.mulf %969, %968 : vector<8x128xf32>
    %971 = arith.addf %965, %970 : vector<8x128xf32>
    %c28_337 = arith.constant 28 : index
    %972 = memref.load %arg6[%c28_337] : memref<32xf32, #tpu.memory_space<smem>>
    %c3_338 = arith.constant 3 : index
    %c0_339 = arith.constant 0 : index
    %c104_340 = arith.constant 104 : index
    %973 = vector.load %arg11[%c3_338, %c0_339, %c104_340] : memref<4x8x256xf32, #tpu.memory_space<vmem>>, vector<1x8x128xf32>
    %974 = vector.shape_cast %973 : vector<1x8x128xf32> to vector<8x128xf32>
    %975 = vector.broadcast %972 : f32 to vector<8x128xf32>
    %976 = arith.mulf %975, %974 : vector<8x128xf32>
    %977 = arith.addf %971, %976 : vector<8x128xf32>
    %c29_341 = arith.constant 29 : index
    %978 = memref.load %arg6[%c29_341] : memref<32xf32, #tpu.memory_space<smem>>
    %c3_342 = arith.constant 3 : index
    %c0_343 = arith.constant 0 : index
    %c112_344 = arith.constant 112 : index
    %979 = vector.load %arg11[%c3_342, %c0_343, %c112_344] : memref<4x8x256xf32, #tpu.memory_space<vmem>>, vector<1x8x128xf32>
    %980 = vector.shape_cast %979 : vector<1x8x128xf32> to vector<8x128xf32>
    %981 = vector.broadcast %978 : f32 to vector<8x128xf32>
    %982 = arith.mulf %981, %980 : vector<8x128xf32>
    %983 = arith.addf %977, %982 : vector<8x128xf32>
    %c30_345 = arith.constant 30 : index
    %984 = memref.load %arg6[%c30_345] : memref<32xf32, #tpu.memory_space<smem>>
    %c3_346 = arith.constant 3 : index
    %c0_347 = arith.constant 0 : index
    %c120_348 = arith.constant 120 : index
    %985 = vector.load %arg11[%c3_346, %c0_347, %c120_348] : memref<4x8x256xf32, #tpu.memory_space<vmem>>, vector<1x8x128xf32>
    %986 = vector.shape_cast %985 : vector<1x8x128xf32> to vector<8x128xf32>
    %987 = vector.broadcast %984 : f32 to vector<8x128xf32>
    %988 = arith.mulf %987, %986 : vector<8x128xf32>
    %989 = arith.addf %983, %988 : vector<8x128xf32>
    %c31_349 = arith.constant 31 : index
    %990 = memref.load %arg6[%c31_349] : memref<32xf32, #tpu.memory_space<smem>>
    %c3_350 = arith.constant 3 : index
    %c0_351 = arith.constant 0 : index
    %c128_352 = arith.constant 128 : index
    %991 = vector.load %arg11[%c3_350, %c0_351, %c128_352] : memref<4x8x256xf32, #tpu.memory_space<vmem>>, vector<1x8x128xf32>
    %992 = vector.shape_cast %991 : vector<1x8x128xf32> to vector<8x128xf32>
    %993 = vector.broadcast %990 : f32 to vector<8x128xf32>
    %994 = arith.mulf %993, %992 : vector<8x128xf32>
    %995 = arith.addf %989, %994 : vector<8x128xf32>
    %996 = arith.addf %851, %899 : vector<8x128xf32>
    %997 = arith.addf %947, %995 : vector<8x128xf32>
    %998 = arith.addf %996, %997 : vector<8x128xf32>
    %c0_353 = arith.constant 0 : index
    %999 = memref.load %arg7[%c0_353] : memref<1xf32, #tpu.memory_space<smem>>
    %1000 = vector.broadcast %999 : f32 to vector<8x128xf32>
    %1001 = arith.addf %998, %1000 : vector<8x128xf32>
    %1002 = arith.addf %1001, %0 : vector<8x128xf32>
    %cst_354 = arith.constant 1.000000e+00 : f32
    %1003 = vector.broadcast %cst_354 : f32 to vector<8x128xf32>
    %1004 = arith.subf %1002, %1003 : vector<8x128xf32>
    %cst_355 = arith.constant 0.000000e+00 : f32
    %1005 = vector.broadcast %cst_355 : f32 to vector<8x128xf32>
    %1006 = arith.cmpf oge, %1004, %1005 : vector<8x128xf32>
    %1007 = arith.extui %1006 : vector<8x128xi1> to vector<8x128xi32>
    %1008 = arith.sitofp %1007 : vector<8x128xi32> to vector<8x128xf32>
    %c0_356 = arith.constant 0 : index
    %c0_357 = arith.constant 0 : index
    %1009 = vector.load %arg8[%c0_356, %c0_357] : memref<8x128xf32, #tpu.memory_space<vmem>>, vector<8x128xf32>
    tpu.vector_store %arg8[%c0_356, %c0_357], %1008 {strides = array<i32>} : memref<8x128xf32, #tpu.memory_space<vmem>>, vector<8x128xf32>,
    return
  }
  func.func @transform_0(%arg0: i32) -> (i32, i32) {
    %c0_i32 = arith.constant 0 : i32
    %c0_i32_0 = arith.constant 0 : i32
    return %arg0, %c0_i32 : i32, i32
  }
  func.func @transform_1(%arg0: i32) -> i32 {
    %c0_i32 = arith.constant 0 : i32
    %c0_i32_0 = arith.constant 0 : i32
    return %c0_i32 : i32
  }
  func.func @transform_2(%arg0: i32) -> i32 {
    %c0_i32 = arith.constant 0 : i32
    %c0_i32_0 = arith.constant 0 : i32
    return %c0_i32 : i32
  }
  func.func @transform_3(%arg0: i32) -> i32 {
    %c0_i32 = arith.constant 0 : i32
    %c0_i32_0 = arith.constant 0 : i32
    return %c0_i32 : i32
  }
  func.func @transform_4(%arg0: i32) -> i32 {
    %c0_i32 = arith.constant 0 : i32
    %c0_i32_0 = arith.constant 0 : i32
    return %c0_i32 : i32
  }
  func.func @transform_5(%arg0: i32) -> i32 {
    %c0_i32 = arith.constant 0 : i32
    %c0_i32_0 = arith.constant 0 : i32
    return %c0_i32 : i32
  }
  func.func @transform_6(%arg0: i32) -> i32 {
    %c0_i32 = arith.constant 0 : i32
    %c0_i32_0 = arith.constant 0 : i32
    return %c0_i32 : i32
  }
  func.func @transform_7(%arg0: i32) -> (i32, i32) {
    %c0_i32 = arith.constant 0 : i32
    %c0_i32_0 = arith.constant 0 : i32
    return %arg0, %c0_i32 : i32, i32
  }
}

</mosaic_0001>

<bundles_post_ra>
// kernel: tpu_custom_call.1
= control target key start
LH: loop header
LB: loop body
LE: loop exit
PB: predicated region body
PF: predicated region fallthrough
CT: control target
= control target key end

     0   :  { %s5827_s0 = inlined_call_operand.hbm [shape: f32[8,128], index: 0, kind: input, shape index: {}]   ;;  %s5828_s1 = inlined_call_operand.vmem [shape: f32[32], index: 1, kind: input, shape index: {}]   ;;  %s5829_s2 = inlined_call_operand.vmem [shape: f32[4], index: 2, kind: input, shape index: {}]   ;;  %s5830_s3 = inlined_call_operand.vmem [shape: f32[128], index: 3, kind: input, shape index: {}]   ;;  %s5831_s4 = inlined_call_operand.vmem [shape: f32[4], index: 4, kind: input, shape index: {}]   ;;  %s5832_s5 = inlined_call_operand.vmem [shape: f32[32], index: 5, kind: input, shape index: {}]   ;;  %s5833_s6 = inlined_call_operand.<no memory space> [shape: f32[1], index: 6, kind: input, shape index: {}]   ;;  %s5834_s7 = inlined_call_operand.hbm [shape: f32[8,128], index: 7, kind: output, shape index: {}]  }
   0x1   :  { %6017 = sst [smem:[#allocation179_spill]] %s5833_s6 }
   0x2   :  { %6018 = sst [smem:[#allocation180_spill]] %s5834_s7 }
   0x3   :  { %13 = vsyncpa [#allocation7], 0 }
   0x4   :  { %14 = vsyncpa [#allocation9], 0 }
   0x5   :  { %15 = vsyncpa [#allocation12], 0 }
   0x6   :  { %16 = vsyncpa [#allocation15], 0  ;;  %s44_s26 = sshll.u32 %s5829_s2, 4  ;;  %s45_s26 = int_to_ptr.vmem [resolvable:$true] %s44_s26 }
   0x7   :  { %17 = vsyncpa [#allocation8], 0  ;;  %s64_s29 = sshll.u32 %s5831_s4, 4  ;;  %s3056_s30 = scalar_lea.vmem %s45_s26, 16  ;;  %s65_s29 = int_to_ptr.vmem [resolvable:$true] %s64_s29 }
   0x8   :  { %p3057_p0 = scmp.ne.s32.totalorder %s45_s26, %s3056_s30  ;;  %p3061_p1 = scmp.lt.s32.totalorder %s45_s26, %s45_s26 }
   0x9   :  { %p3062_p2 = scmp.lt.s32.totalorder %s3056_s30, %s3056_s30 }
   0xb   :  { %p3063_p3 = por %p3062_p2, %p3061_p1 }
   0xd   :  { %p3064_p4 = pnand %p3063_p3, %p3057_p0 }
   0xf   :  { %3067 = shalt.err (!%p3064_p4)
}
  0x10   :  { %s3166_s8 = smov [#allocation11]   ;;  %s3068_s9 = scalar_lea.vmem %s65_s29, 16 }
  0x11   :  { %47 = dma.vmem_to_smem %s45_s26, 16, %s3166_s8, [#allocation12]  }
  0x12   :  { %p3069_p5 = scmp.ne.s32.totalorder %s65_s29, %s3068_s9  ;;  %p3073_p6 = scmp.lt.s32.totalorder %s65_s29, %s65_s29 }
  0x13   :  { %p3074_p7 = scmp.lt.s32.totalorder %s3068_s9, %s3068_s9 }
  0x15   :  { %p3075_p8 = por %p3074_p7, %p3073_p6 }
  0x17   :  { %p3076_p9 = pnand %p3075_p8, %p3069_p5 }
  0x19   :  { %3079 = shalt.err (!%p3076_p9)
}
  0x1a   :  { %s3167_s2 = smov [#allocation14]   ;;  %s34_s11 = sshll.u32 %s5828_s1, 4  ;;  %s35_s11 = int_to_ptr.vmem [resolvable:$true] %s34_s11 }
  0x1b   :  { %67 = dma.vmem_to_smem %s65_s29, 16, %s3167_s2, [#allocation15]  }
  0x1c   :  { %s3168_s12 = smov [#allocation6]  }
  0x1d   :  { %s24_s13 = sshll.u32 %s3168_s12, 4  ;;  %s25_s13 = int_to_ptr.vmem [resolvable:$true] %s24_s13 }
  0x1e   :  { %s3088_s14 = scalar_lea.vmem %s25_s13, 128  ;;  %p3093_p11 = scmp.lt.s32.totalorder %s25_s13, %s25_s13 }
  0x1f   :  { %p3089_p10 = scmp.ne.s32.totalorder %s25_s13, %s3088_s14  ;;  %p3094_p12 = scmp.lt.s32.totalorder %s3088_s14, %s3088_s14 }
  0x21   :  { %p3095_p13 = por %p3094_p12, %p3093_p11 }
  0x23   :  { %p3096_p0 = pnand %p3095_p13, %p3089_p10 }
  0x25   :  { %3099 = shalt.err (!%p3096_p0)
}
  0x26   :  { %27 = dma.hbm_to_vmem [thread:$0]  %s5827_s0, 128, %s25_s13, [#allocation7]  }
  0x27   :  { %s3100_s17 = scalar_lea.vmem %s35_s11, 16  ;;  %p3105_p2 = scmp.lt.s32.totalorder %s35_s11, %s35_s11 }
  0x28   :  { %p3101_p1 = scmp.ne.s32.totalorder %s35_s11, %s3100_s17  ;;  %p3106_p3 = scmp.lt.s32.totalorder %s3100_s17, %s3100_s17 }
  0x2a   :  { %p3107_p4 = por %p3106_p3, %p3105_p2 }
  0x2c   :  { %p3108_p5 = pnand %p3107_p4, %p3101_p1 }
  0x2e   :  { %3111 = shalt.err (!%p3108_p5)
}
  0x2f   :  { %s3169_s1 = smov [#allocation10]   ;;  %s54_s20 = sshll.u32 %s5830_s3, 4  ;;  %s55_s20 = int_to_ptr.vmem [resolvable:$true] %s54_s20 }
  0x30   :  { %37 = dma.vmem_to_smem %s35_s11, 16, %s3169_s1, [#allocation9]  }
  0x31   :  { %s74_s23 = sshll.u32 %s5832_s5, 4  ;;  %s3112_s24 = scalar_lea.vmem %s55_s20, 16  ;;  %s75_s23 = int_to_ptr.vmem [resolvable:$true] %s74_s23 }
  0x32   :  { %p3113_p6 = scmp.ne.s32.totalorder %s55_s20, %s3112_s24  ;;  %p3117_p7 = scmp.lt.s32.totalorder %s55_s20, %s55_s20 }
  0x33   :  { %p3118_p8 = scmp.lt.s32.totalorder %s3112_s24, %s3112_s24 }
  0x35   :  { %p3119_p9 = por %p3118_p8, %p3117_p7 }
  0x37   :  { %p3120_p10 = pnand %p3119_p9, %p3113_p6 }
  0x39   :  { %3123 = shalt.err (!%p3120_p10)
}
  0x3a   :  { %s3170_s0 = smov [#allocation13]   ;;  %s3124_s25 = scalar_lea.vmem %s75_s23, 16 }
  0x3b   :  { %57 = dma.vmem_to_smem %s55_s20, 16, %s3170_s0, [#allocation12]  }
  0x3c   :  { %p3125_p11 = scmp.ne.s32.totalorder %s75_s23, %s3124_s25  ;;  %p3129_p12 = scmp.lt.s32.totalorder %s75_s23, %s75_s23 }
  0x3d   :  { %p3130_p13 = scmp.lt.s32.totalorder %s3124_s25, %s3124_s25 }
  0x3f   :  { %p3131_p0 = por %p3130_p13, %p3129_p12 }
  0x41   :  { %p3132_p1 = pnand %p3131_p0, %p3125_p11 }
  0x43   :  { %3135 = shalt.err (!%p3132_p1)
}
  0x44   :  { %s3171_s3 = smov [#allocation16]  }
  0x45   :  { %77 = dma.vmem_to_smem %s75_s23, 16, %s3171_s3, [#allocation15]  }
  0x46   :  { %3156 = dma.done.wait [#allocation7], 128  }
  0x47   :  { %3157 = vsyncadd [#allocation7], 4294967168 }
  0x48   :  { %3158 = dma.done.wait [#allocation9], 16  }
  0x49   :  { %3159 = vsyncadd [#allocation9], 4294967280 }
  0x4a   :  { %3160 = dma.done.wait [#allocation12], 32  }
  0x4b   :  { %3161 = vsyncadd [#allocation12], 4294967264 }
  0x4c   :  { %3162 = dma.done.wait [#allocation15], 32  }
  0x4d   :  { %3163 = vsyncadd [#allocation15], 4294967264 }
  0x4e   :  { %98 = sfence }
  0x4f   :  { %s2842_s5 = sld [smem:[#allocation10 + $0x9]]  ;;  %v3240_v1 = vld [vmem:[#allocation6] sm:$0xff]  ;;  %s5853_s29 = smov 120   ;;  %vm160_vm0 = vcmask 982016   ;;  %vm221_vm1 = vcmask 916480   ;;  %vm282_vm2 = vcmask 850944  }
  0x50   :  { %s2841_s26 = sld [smem:[#allocation10 + $0x1]]  ;;  %s5851_s4 = smov 112   ;;  %vm343_vm3 = vcmask 785408   ;;  %vm404_vm4 = vcmask 719872   ;;  %vm465_vm5 = vcmask 654336   ;;  %vm558_vm6 = vcmask 457728  }
  0x51   :  { %s2843_s27 = sld [smem:[#allocation10 + $0x11]]  ;;  %s5847_s14 = smov 104  }
  0x52   :  { %s2844_s28 = sld [smem:[#allocation10 + $0x19]]  ;;  %s5843_s18 = smov 96  }
  0x53   :  { %s2845_s30 = sld [smem:[#allocation10 + $0x2]]  ;;  %s5849_s23 = smov 88  }
  0x54   :  { %s2846_s8 = sld [smem:[#allocation10 + $0xa]]  ;;  %s6027_s7 = smov 120  }
  0x55   :  { %v167_v0 = vstv %s2842_s5  ;;  %s2847_s9 = sld [smem:[#allocation10 + $0x12]]  ;;  %s5855_s5 = smov 80  }
  0x56   :  { %v168_v2 = vmul.f32 0.0, %v167_v0  ;;  %v151_v3 = vstv %s2841_s26  ;;  %v169_v5 = vmul.f32 %v167_v0, %v3240_v1  ;;  %s2848_s2 = sld [smem:[#allocation10 + $0x1a]] }
  0x57   :  { %v152_v4 = vmul.f32 0.0, %v151_v3  ;;  %v153_v6 = vmul.f32 %v151_v3, %v3240_v1  ;;  %v182_v7 = vstv %s2843_s27  ;;  %s2849_s10 = sld [smem:[#allocation10 + $0x3]] }
  0x58   :  { %172 = vrot.lane.b32.xlu1 %v168_v2, %s5853_s29  ;;  %v184_v8 = vmul.f32 %v182_v7, %v3240_v1  ;;  %v183_v9 = vmul.f32 0.0, %v182_v7  ;;  %v197_v10 = vstv %s2844_s28  ;;  %s2850_s11 = sld [smem:[#allocation10 + $0xb]] }
  0x59   :  { %156 = vrot.lane.b32.xlu0 %v152_v4, %s5853_s29  ;;  %v199_v11 = vmul.f32 %v197_v10, %v3240_v1  ;;  %v198_v12 = vmul.f32 0.0, %v197_v10  ;;  %v212_v13 = vstv %s2845_s30  ;;  %s2851_s12 = sld [smem:[#allocation10 + $0x13]] }
  0x5a   :  { %v214_v14 = vmul.f32 %v212_v13, %v3240_v1  ;;  %v213_v15 = vmul.f32 0.0, %v212_v13  ;;  %v228_v16 = vstv %s2846_s8  ;;  %s2852_s13 = sld [smem:[#allocation10 + $0x1b]] }
  0x5b   :  { %v230_v17 = vmul.f32 %v228_v16, %v3240_v1  ;;  %v229_v18 = vmul.f32 0.0, %v228_v16  ;;  %v243_v19 = vstv %s2847_s9  ;;  %s2853_s15 = sld [smem:[#allocation10 + $0x4]] }
  0x5c   :  { %174 = vrot.lane.b32.xlu1 %v169_v5, %s5853_s29  ;;  %v245_v20 = vmul.f32 %v243_v19, %v3240_v1  ;;  %v244_v21 = vmul.f32 0.0, %v243_v19  ;;  %v258_v22 = vstv %s2848_s2  ;;  %s2854_s16 = sld [smem:[#allocation10 + $0xc]]  ;;  %s5845_s2 = smov 72  }
  0x5d   :  { %158 = vrot.lane.b32.xlu0 %v153_v6, %s5853_s29  ;;  %v260_v23 = vmul.f32 %v258_v22, %v3240_v1  ;;  %v259_v24 = vmul.f32 0.0, %v258_v22  ;;  %v273_v25 = vstv %s2849_s10  ;;  %s2855_s17 = sld [smem:[#allocation10 + $0x14]] }
  0x5e   :  { %v275_v26 = vmul.f32 %v273_v25, %v3240_v1  ;;  %v274_v27 = vmul.f32 0.0, %v273_v25  ;;  %v289_v28 = vstv %s2850_s11  ;;  %s2856_s1 = sld [smem:[#allocation10 + $0x1c]] }
  0x5f   :  { %v291_v29 = vmul.f32 %v289_v28, %v3240_v1  ;;  %v290_v30 = vmul.f32 0.0, %v289_v28  ;;  %v304_v31 = vstv %s2851_s12  ;;  %s2857_s19 = sld [smem:[#allocation10 + $0x5]] }
  0x60   :  { %189 = vrot.lane.b32.xlu1 %v184_v8, %s5853_s29  ;;  %v306_v32 = vmul.f32 %v304_v31, %v3240_v1  ;;  %v305_v33 = vmul.f32 0.0, %v304_v31  ;;  %v319_v34 = vstv %s2852_s13  ;;  %s2858_s20 = sld [smem:[#allocation10 + $0xd]] }
  0x61   :  { %187 = vrot.lane.b32.xlu0 %v183_v9, %s5853_s29  ;;  %v321_v35 = vmul.f32 %v319_v34, %v3240_v1  ;;  %v320_v36 = vmul.f32 0.0, %v319_v34  ;;  %v334_v37 = vstv %s2853_s15  ;;  %s2859_s21 = sld [smem:[#allocation10 + $0x15]] }
  0x62   :  { %v336_v38 = vmul.f32 %v334_v37, %v3240_v1  ;;  %v335_v39 = vmul.f32 0.0, %v334_v37  ;;  %v350_v40 = vstv %s2854_s16  ;;  %s2860_s22 = sld [smem:[#allocation10 + $0x1d]] }
  0x63   :  { %v352_v41 = vmul.f32 %v350_v40, %v3240_v1  ;;  %v351_v42 = vmul.f32 0.0, %v350_v40  ;;  %v365_v43 = vstv %s2855_s17  ;;  %s2861_s24 = sld [smem:[#allocation10 + $0x6]] }
  0x64   :  { %204 = vrot.lane.b32.xlu1 %v199_v11, %s5853_s29  ;;  %v367_v44 = vmul.f32 %v365_v43, %v3240_v1  ;;  %v366_v45 = vmul.f32 0.0, %v365_v43  ;;  %v380_v46 = vstv %s2856_s1  ;;  %s2862_s0 = sld [smem:[#allocation10 + $0xe]] }
  0x65   :  { %202 = vrot.lane.b32.xlu0 %v198_v12, %s5853_s29  ;;  %v382_v47 = vmul.f32 %v380_v46, %v3240_v1  ;;  %v381_v48 = vmul.f32 0.0, %v380_v46  ;;  %v395_v49 = vstv %s2857_s19  ;;  %s2863_s25 = sld [smem:[#allocation10 + $0x16]] }
  0x66   :  { %v397_v50 = vmul.f32 %v395_v49, %v3240_v1  ;;  %v396_v51 = vmul.f32 0.0, %v395_v49  ;;  %v411_v52 = vstv %s2858_s20  ;;  %s2864_s3 = sld [smem:[#allocation10 + $0x1e]] }
  0x67   :  { %v413_v53 = vmul.f32 %v411_v52, %v3240_v1  ;;  %v412_v54 = vmul.f32 0.0, %v411_v52  ;;  %v426_v55 = vstv %s2859_s21  ;;  %s2866_s26 = sld [smem:[#allocation10 + $0xf]] }
  0x68   :  { %219 = vrot.lane.b32.xlu1 %v214_v14, %s5851_s4  ;;  %v428_v56 = vmul.f32 %v426_v55, %v3240_v1  ;;  %v427_v57 = vmul.f32 0.0, %v426_v55  ;;  %v441_v58 = vstv %s2860_s22  ;;  %s2865_s27 = sld [smem:[#allocation10 + $0x7]]  ;;  %s5841_s22 = smov 56  }
  0x69   :  { %217 = vrot.lane.b32.xlu0 %v213_v15, %s5851_s4  ;;  %v443_v59 = vmul.f32 %v441_v58, %v3240_v1  ;;  %v442_v60 = vmul.f32 0.0, %v441_v58  ;;  %v456_v61 = vstv %s2861_s24  ;;  %s2868_s28 = sld [smem:[#allocation10 + $0x1f]] }
  0x6a   :  { %v458_v62 = vmul.f32 %v456_v61, %v3240_v1  ;;  %v457_v63 = vmul.f32 0.0, %v456_v61  ;;  %v472_v0 = vstv %s2862_s0  ;;  %s2867_s30 = sld [smem:[#allocation10 + $0x17]] }
  0x6b   :  { %v474_v2 = vmul.f32 %v472_v0, %v3240_v1  ;;  %v473_v3 = vmul.f32 0.0, %v472_v0  ;;  %v487_v4 = vstv %s2863_s25  ;;  %s3312_s8 = sld [smem:[#allocation13 + $0x1]] }
  0x6c   :  { %235 = vrot.lane.b32.xlu1 %v230_v17, %s5851_s4  ;;  %v489_v5 = vmul.f32 %v487_v4, %v3240_v1  ;;  %v488_v6 = vmul.f32 0.0, %v487_v4  ;;  %v502_v7 = vstv %s2864_s3  ;;  %s3318_s9 = sld [smem:[#allocation13 + $0x21]] }
  0x6d   :  { %233 = vrot.lane.b32.xlu0 %v229_v18, %s5851_s4  ;;  %v504_v8 = vmul.f32 %v502_v7, %v3240_v1  ;;  %v503_v9 = vmul.f32 0.0, %v502_v7  ;;  %v526_v10 = vstv %s2866_s26  ;;  %s3325_s10 = sld [smem:[#allocation13 + $0x41]] }
  0x6e   :  { %v517_v11 = vstv %s2865_s27  ;;  %v527_v12 = vmul.f32 %v526_v10, %v3240_v1  ;;  %s3332_s11 = sld [smem:[#allocation13 + $0x61]] }
  0x6f   :  { %v518_v13 = vmul.f32 %v517_v11, %v3240_v1  ;;  %v544_v14 = vstv %s2868_s28  ;;  %s3338_s12 = sld [smem:[#allocation13 + $0x2]] }
  0x70   :  { %250 = vrot.lane.b32.xlu1 %v245_v20, %s5851_s4  ;;  %v535_v15 = vstv %s2867_s30  ;;  %v545_v16 = vmul.f32 %v544_v14, %v3240_v1  ;;  %s126_s13 = sld [smem:[#allocation10]] }
  0x71   :  { %248 = vrot.lane.b32.xlu0 %v244_v21, %s5851_s4  ;;  %v536_v17 = vmul.f32 %v535_v15, %v3240_v1  ;;  %v5839_v18 = vstv %s3312_s8  ;;  %s2838_s15 = sld [smem:[#allocation10 + $0x8]] }
  0x72   :  { %v625_v19 = vmul.f32 0.0, %v5839_v18  ;;  %v5838_v20 = vstv %s3318_s9  ;;  %s2839_s16 = sld [smem:[#allocation10 + $0x10]] }
  0x73   :  { %v640_v21 = vmul.f32 0.0, %v5838_v20  ;;  %v5837_v22 = vstv %s3325_s10  ;;  %s2840_s17 = sld [smem:[#allocation10 + $0x18]] }
  0x74   :  { %265 = vrot.lane.b32.xlu1 %v260_v23, %s5851_s4  ;;  %v655_v23 = vmul.f32 0.0, %v5837_v22  ;;  %s116_s1 = sld [smem:[#allocation11]] }
  0x75   :  { %263 = vrot.lane.b32.xlu0 %v259_v24, %s5851_s4  ;;  %v5836_v24 = vstv %s3332_s11  ;;  %s3424_s19 = sld [smem:[#allocation11 + $0x1]] }
  0x76   :  { %v670_v25 = vmul.f32 0.0, %v5836_v24  ;;  %s3428_s20 = sld [smem:[#allocation11 + $0x2]] }
  0x77   :  { %s3432_s21 = sld [smem:[#allocation11 + $0x3]] }
  0x78   :  { %280 = vrot.lane.b32.xlu1 %v275_v26, %s5847_s14  ;;  %s3535_s24 = sld [smem:[#allocation13 + $0x22]] }
  0x79   :  { %278 = vrot.lane.b32.xlu0 %v274_v27, %s5847_s14  ;;  %v5835_v27 = vstv %s3338_s12  ;;  %v145_v10 = vstv %s2840_s17  ;;  %s3546_s0 = sld [smem:[#allocation13 + $0x42]] }
  0x7a   :  { %s3552_s25 = sld [smem:[#allocation13 + $0x62]] }
  0x7b   :  { %s3559_s3 = sld [smem:[#allocation13 + $0x3]] }
  0x7c   :  { %296 = vrot.lane.b32.xlu1 %v291_v29, %s5847_s14  ;;  %v685_v29 = vmul.f32 0.0, %v5835_v27  ;;  %s3565_s26 = sld [smem:[#allocation13 + $0x23]] }
  0x7d   :  { %294 = vrot.lane.b32.xlu0 %v290_v30, %s5847_s14  ;;  %v123_v27 = vstv %s3432_s21  ;;  %s3571_s27 = sld [smem:[#allocation13 + $0x43]] }
  0x7e   :  { %s3577_s28 = sld [smem:[#allocation13 + $0x63]] }
  0x7f   :  { %s3583_s30 = sld [smem:[#allocation13 + $0x4]] }
  0x80   :  { %311 = vrot.lane.b32.xlu1 %v306_v32, %s5847_s14  ;;  %s3607_s17 = sld [smem:[#allocation13 + $0x5]] }
  0x81   :  { %309 = vrot.lane.b32.xlu0 %v305_v33, %s5847_s14  ;;  %s3631_s21 = sld [smem:[#allocation13 + $0x6]] }
  0x82   :  { %s3683_s6 = sld [smem:[#allocation13 + $0xa]] }
  0x84   :  { %326 = vrot.lane.b32.xlu1 %v321_v35, %s5847_s14 }
  0x85   :  { %324 = vrot.lane.b32.xlu0 %v320_v36, %s5847_s14 }
  0x88   :  { %341 = vrot.lane.b32.xlu1 %v336_v38, %s5843_s18  ;;  %6028 = sst [smem:[#allocation29_spill]] %s3683_s6 }
  0x89   :  { %339 = vrot.lane.b32.xlu0 %v335_v39, %s5843_s18 }
  0x8c   :  { %357 = vrot.lane.b32.xlu1 %v352_v41, %s5843_s18 }
  0x8d   :  { %355 = vrot.lane.b32.xlu0 %v351_v42, %s5843_s18 }
  0x90   :  { %372 = vrot.lane.b32.xlu1 %v367_v44, %s5843_s18 }
  0x91   :  { %370 = vrot.lane.b32.xlu0 %v366_v45, %s5843_s18 }
  0x94   :  { %387 = vrot.lane.b32.xlu1 %v382_v47, %s5843_s18 }
  0x95   :  { %385 = vrot.lane.b32.xlu0 %v381_v48, %s5843_s18 }
  0x98   :  { %402 = vrot.lane.b32.xlu1 %v397_v50, %s5849_s23 }
  0x99   :  { %400 = vrot.lane.b32.xlu0 %v396_v51, %s5849_s23 }
  0x9c   :  { %418 = vrot.lane.b32.xlu1 %v413_v53, %s5849_s23 }
  0x9d   :  { %416 = vrot.lane.b32.xlu0 %v412_v54, %s5849_s23 }
  0xa0   :  { %433 = vrot.lane.b32.xlu1 %v428_v56, %s5849_s23 }
  0xa1   :  { %431 = vrot.lane.b32.xlu0 %v427_v57, %s5849_s23 }
  0xa4   :  { %448 = vrot.lane.b32.xlu1 %v443_v59, %s5849_s23 }
  0xa5   :  { %446 = vrot.lane.b32.xlu0 %v442_v60, %s5849_s23 }
  0xa8   :  { %463 = vrot.lane.b32.xlu1 %v458_v62, %s5855_s5 }
  0xa9   :  { %461 = vrot.lane.b32.xlu0 %v457_v63, %s5855_s5 }
  0xac   :  { %479 = vrot.lane.b32.xlu1 %v474_v2, %s5855_s5 }
  0xad   :  { %477 = vrot.lane.b32.xlu0 %v473_v3, %s5855_s5  ;;  %v127_v3 = vstv %s126_s13  ;;  %s3589_s13 = sld [smem:[#allocation13 + $0x24]] }
  0xae   :  { %v128_v7 = vmul.f32 0.0, %v127_v3 }
  0xb0   :  { %494 = vrot.lane.b32.xlu1 %v489_v5, %s5855_s5  ;;  %v133_v5 = vstv %s2838_s15  ;;  %s3595_s15 = sld [smem:[#allocation13 + $0x44]] }
  0xb1   :  { %492 = vrot.lane.b32.xlu0 %v488_v6, %s5855_s5  ;;  %v135_v11 = vmul.f32 %v133_v5, %v3240_v1 }
  0xb4   :  { %509 = vrot.lane.b32.xlu1 %v504_v8, %s5855_s5  ;;  %v129_v8 = vmul.f32 %v127_v3, %v3240_v1  ;;  %v121_v3 = vstv %s3428_s20  ;;  %s3625_s20 = sld [smem:[#allocation13 + $0x65]] }
  0xb5   :  { %507 = vrot.lane.b32.xlu0 %v503_v9, %s5855_s5  ;;  %v139_v9 = vstv %s2839_s16  ;;  %s3601_s16 = sld [smem:[#allocation13 + $0x64]] }
  0xb6   :  { %v141_v14 = vmul.f32 %v139_v9, %v3240_v1 }
  0xb8   :  { %529 = vrot.lane.b32.xlu1 %v527_v12, %s5845_s2  ;;  %v117_v12 = vstv %s116_s1  ;;  %v143_v20 = vadd.f32 %v141_v14, %v121_v3  ;;  %s3613_s1 = sld [smem:[#allocation13 + $0x25]] }
  0xb9   :  { %520 = vrot.lane.b32.xlu0 %v518_v13, %s5845_s2  ;;  %v134_v13 = vmul.f32 0.0, %v133_v5 }
  0xbc   :  { %547 = vrot.lane.b32.xlu1 %v545_v16, %s5845_s2  ;;  %v119_v16 = vstv %s3424_s19  ;;  %s3619_s19 = sld [smem:[#allocation13 + $0x45]] }
  0xbd   :  { %538 = vrot.lane.b32.xlu0 %v536_v17, %s5845_s2  ;;  %v140_v17 = vmul.f32 0.0, %v139_v9  ;;  %v137_v24 = vadd.f32 %v135_v11, %v119_v16  ;;  %v136_v22 = vadd.f32 %v134_v13, %v119_v16  ;;  %s3649_s2 = sld [smem:[#allocation13 + $0x66]] }
  0xc1   :  { %629 = vrot.lane.b32.xlu0 %v625_v19, %s5853_s29  ;;  %v147_v19 = vmul.f32 %v145_v10, %v3240_v1 }
  0xc3   :  { %v149_v9 = vadd.f32 %v147_v19, %v123_v27 }
  0xc5   :  { %644 = vrot.lane.b32.xlu0 %v640_v21, %s5853_s29  ;;  %v146_v21 = vmul.f32 0.0, %v145_v10 }
  0xc9   :  { %659 = vrot.lane.b32.xlu0 %v655_v23, %s5853_s29 }
  0xca   :  { %v3347_v26 = vpop.permute.xlu1 %172 }
  0xcb   :  { %v3350_v28 = vpop.permute.xlu0 %156 }
  0xcd   :  { %674 = vrot.lane.b32.xlu0 %v670_v25, %s5853_s29  ;;  %v130_v25 = vadd.f32 %v128_v7, %v117_v12  ;;  %s3675_s29 = sld [smem:[#allocation13 + $0x69]] }
  0xce   :  { %v3355_v30 = vpop.permute.xlu1 %174 }
  0xcf   :  { %v3357_v31 = vpop.permute.xlu0 %158  ;;  %v180_v11 = vadd.f32 %v3355_v30, %v137_v24 }
  0xd0   :  { %v161_v5 = vsel %vm160_vm0, %v3350_v28, %v3357_v31 }
  0xd1   :  { %689 = vrot.lane.b32.xlu0 %v685_v29, %s5851_s4  ;;  %v131_v29 = vadd.f32 %v129_v8, %v117_v12  ;;  %v176_v8 = vsel %vm160_vm0, %v3347_v26, %v3355_v30  ;;  %v164_v10 = vadd.f32 %v161_v5, %v130_v25 }
  0xd2   :  { %v3360_v32 = vpop.permute.xlu1 %189  ;;  %v179_v24 = vadd.f32 %v176_v8, %v136_v22 }
  0xd3   :  { %v3362_v33 = vpop.permute.xlu0 %187  ;;  %v165_v28 = vadd.f32 %v3357_v31, %v131_v29  ;;  %v195_v30 = vadd.f32 %v3360_v32, %v143_v20  ;;  %6026 = sst [smem:[#allocation28_spill]] %s3675_s29 }
  0xd4   :  { %v191_v12 = vsel %vm160_vm0, %v3362_v33, %v3360_v32 }
  0xd6   :  { %v3364_v34 = vpop.permute.xlu1 %204 }
  0xd7   :  { %v3366_v35 = vpop.permute.xlu0 %202 }
  0xda   :  { %v3368_v36 = vpop.permute.xlu1 %219 }
  0xdb   :  { %v3370_v37 = vpop.permute.xlu0 %217  ;;  %v226_v26 = vadd.f32 %v3368_v36, %v165_v28 }
  0xdc   :  { %v222_v1 = vsel %vm221_vm1, %v3370_v37, %v3368_v36  ;;  %v206_v37 = vsel %vm160_vm0, %v3366_v35, %v3364_v34  ;;  %v210_v35 = vadd.f32 %v3364_v34, %v149_v9 }
  0xdd   :  { %v225_v13 = vadd.f32 %v222_v1, %v164_v10 }
  0xde   :  { %v3372_v38 = vpop.permute.xlu1 %235 }
  0xdf   :  { %v3374_v39 = vpop.permute.xlu0 %233  ;;  %v241_v22 = vadd.f32 %v3372_v38, %v180_v11 }
  0xe0   :  { %v237_v33 = vsel %vm221_vm1, %v3374_v39, %v3372_v38 }
  0xe1   :  { %v240_v39 = vadd.f32 %v237_v33, %v179_v24 }
  0xe2   :  { %v3376_v40 = vpop.permute.xlu1 %250 }
  0xe3   :  { %v3378_v41 = vpop.permute.xlu0 %248 }
  0xe6   :  { %v3380_v42 = vpop.permute.xlu1 %265 }
  0xe7   :  { %v3382_v43 = vpop.permute.xlu0 %263 }
  0xea   :  { %v3384_v44 = vpop.permute.xlu1 %280 }
  0xeb   :  { %v3386_v45 = vpop.permute.xlu0 %278  ;;  %v287_v36 = vadd.f32 %v3384_v44, %v226_v26 }
  0xee   :  { %v3388_v46 = vpop.permute.xlu1 %296 }
  0xef   :  { %v3390_v47 = vpop.permute.xlu0 %294  ;;  %v302_v38 = vadd.f32 %v3388_v46, %v241_v22 }
  0xf0   :  { %v298_v20 = vsel %vm282_vm2, %v3390_v47, %v3388_v46  ;;  %v267_v46 = vsel %vm221_vm1, %v3382_v43, %v3380_v42 }
  0xf1   :  { %v301_v25 = vadd.f32 %v298_v20, %v240_v39 }
  0xf2   :  { %v3392_v48 = vpop.permute.xlu1 %311 }
  0xf3   :  { %v3394_v49 = vpop.permute.xlu0 %309 }
  0xf6   :  { %v3396_v50 = vpop.permute.xlu1 %326 }
  0xf7   :  { %v3398_v51 = vpop.permute.xlu0 %324 }
  0xfa   :  { %v3400_v52 = vpop.permute.xlu1 %341 }
  0xfb   :  { %v3402_v53 = vpop.permute.xlu0 %339  ;;  %v348_v34 = vadd.f32 %v3400_v52, %v287_v36 }
  0xfe   :  { %v3404_v54 = vpop.permute.xlu1 %357 }
  0xff   :  { %v3406_v55 = vpop.permute.xlu0 %355 }
 0x100   :  { %v359_v47 = vsel %vm343_vm3, %v3406_v55, %v3404_v54 }
 0x101   :  { %v362_v5 = vadd.f32 %v359_v47, %v301_v25 }
 0x102   :  { %v3408_v56 = vpop.permute.xlu1 %372 }
 0x103   :  { %v3410_v57 = vpop.permute.xlu0 %370 }
 0x104   :  { %v374_v43 = vsel %vm343_vm3, %v3410_v57, %v3408_v56 }
 0x106   :  { %v3412_v58 = vpop.permute.xlu1 %387 }
 0x107   :  { %v3414_v59 = vpop.permute.xlu0 %385 }
 0x10a   :  { %v3416_v60 = vpop.permute.xlu1 %402 }
 0x10b   :  { %v3418_v61 = vpop.permute.xlu0 %400 }
 0x10c   :  { %v405_v32 = vsel %vm404_vm4, %v3418_v61, %v3416_v60 }
 0x10e   :  { %v3420_v62 = vpop.permute.xlu1 %418 }
 0x10f   :  { %v3422_v63 = vpop.permute.xlu0 %416 }
 0x112   :  { %v3426_v0 = vpop.permute.xlu1 %433 }
 0x113   :  { %v3430_v2 = vpop.permute.xlu0 %431 }
 0x116   :  { %v3434_v4 = vpop.permute.xlu1 %448 }
 0x117   :  { %6019 = vst [vmem:[#allocation23_spill] sm:$0xff] %v3434_v4  ;;  %v3436_v6 = vpop.permute.xlu0 %446  ;;  %v148_v4 = vadd.f32 %v146_v21, %v123_v27  ;;  %v283_v27 = vsel %vm282_vm2, %v3386_v45, %v3384_v44  ;;  %v344_v45 = vsel %vm343_vm3, %v3402_v53, %v3400_v52  ;;  %v252_v53 = vsel %vm221_vm1, %v3378_v41, %v3376_v40 }
 0x118   :  { %6020 = vst [vmem:[#allocation24_spill] sm:$0xff] %v3436_v6  ;;  %v142_v6 = vadd.f32 %v140_v17, %v121_v3  ;;  %v286_v17 = vadd.f32 %v283_v27, %v225_v13  ;;  %v313_v41 = vsel %vm282_vm2, %v3394_v49, %v3392_v48  ;;  %v409_v52 = vadd.f32 %v3416_v60, %v348_v34 }
 0x119   :  { %v209_v19 = vadd.f32 %v206_v37, %v148_v4  ;;  %v256_v4 = vadd.f32 %v3376_v40, %v195_v30  ;;  %v363_v3 = vadd.f32 %v3404_v54, %v302_v38  ;;  %v328_v60 = vsel %vm282_vm2, %v3398_v51, %v3396_v50 }
 0x11a   :  { %v3441_v15 = vpop.permute.xlu1 %463  ;;  %v194_v16 = vadd.f32 %v191_v12, %v142_v6  ;;  %v347_v44 = vadd.f32 %v344_v45, %v286_v17  ;;  %v435_v51 = vsel %vm404_vm4, %v3430_v2, %v3426_v0  ;;  %v729_v38 = vstv %s3552_s25  ;;  %s3822_s25 = sld [smem:[#allocation13 + $0xd]] }
 0x11b   :  { %v462_v23 = vpop.permute.xlu0 %461  ;;  %v317_v55 = vadd.f32 %v3392_v48, %v256_v4  ;;  %v470_v9 = vadd.f32 %v3441_v15, %v409_v52  ;;  %v270_v11 = vadd.f32 %v267_v46, %v209_v19  ;;  %v730_v47 = vmul.f32 0.0, %v729_v38 }
 0x11c   :  { %v466_v6 = vsel %vm465_vm5, %v462_v23, %v3441_v15  ;;  %v408_v29 = vadd.f32 %v405_v32, %v347_v44  ;;  %v255_v40 = vadd.f32 %v252_v53, %v194_v16  ;;  %v420_v23 = vsel %vm404_vm4, %v3422_v63, %v3420_v62 }
 0x11d   :  { %v424_v63 = vadd.f32 %v3420_v62, %v363_v3  ;;  %v423_v54 = vadd.f32 %v420_v23, %v362_v5  ;;  %v271_v15 = vadd.f32 %v3380_v42, %v210_v35  ;;  %v378_v12 = vadd.f32 %v3408_v56, %v317_v55 }
 0x11e   :  { %v3450_v18 = vpop.permute.xlu1 %479  ;;  %v469_v49 = vadd.f32 %v466_v6, %v408_v29  ;;  %v316_v1 = vadd.f32 %v313_v41, %v255_v40  ;;  %v331_v42 = vadd.f32 %v328_v60, %v270_v11  ;;  %v389_v56 = vsel %vm343_vm3, %v3414_v59, %v3412_v58  ;;  %v6021_v33 = vld [vmem:[#allocation23_spill] sm:$0xff] }
 0x11f   :  { %v478_v7 = vpop.permute.xlu0 %477  ;;  %v485_v37 = vadd.f32 %v3450_v18, %v424_v63  ;;  %v332_v62 = vadd.f32 %v3396_v50, %v271_v15  ;;  %v6022_v45 = vld [vmem:[#allocation24_spill] sm:$0xff]  ;;  %v699_v32 = vstv %s3535_s24  ;;  %v714_v44 = vstv %s3546_s0  ;;  %s3810_s24 = sld [smem:[#allocation13 + $0x6c]]  ;;  %s6040_s0 = smov 96  }
 0x120   :  { %v481_v48 = vsel %vm465_vm5, %v478_v7, %v3450_v18  ;;  %v377_v57 = vadd.f32 %v374_v43, %v316_v1  ;;  %v439_v18 = vadd.f32 %v3426_v0, %v378_v12  ;;  %v450_v50 = vsel %vm404_vm4, %v6022_v45, %v6021_v33 }
 0x121   :  { %v484_v7 = vadd.f32 %v481_v48, %v423_v54  ;;  %v393_v30 = vadd.f32 %v3412_v58, %v332_v62  ;;  %v392_v35 = vadd.f32 %v389_v56, %v331_v42  ;;  %v700_v34 = vmul.f32 0.0, %v699_v32 }
 0x122   :  { %v3470_v31 = vpop.permute.xlu1 %494  ;;  %v438_v26 = vadd.f32 %v435_v51, %v377_v57  ;;  %v715_v4 = vmul.f32 0.0, %v714_v44  ;;  %v744_v6 = vstv %s3559_s3  ;;  %v774_v41 = vstv %s3571_s27  ;;  %s3834_s3 = sld [smem:[#allocation13 + $0x2d]] }
 0x123   :  { %v493_v14 = vpop.permute.xlu0 %492  ;;  %v500_v59 = vadd.f32 %v3470_v31, %v439_v18  ;;  %v454_v58 = vadd.f32 %v6021_v33, %v393_v30  ;;  %v775_v52 = vmul.f32 0.0, %v774_v41  ;;  %v789_v29 = vstv %s3577_s28  ;;  %s3858_s27 = sld [smem:[#allocation13 + $0x6d]] }
 0x124   :  { %v496_v2 = vsel %vm465_vm5, %v493_v14, %v3470_v31  ;;  %v453_v14 = vadd.f32 %v450_v50, %v392_v35  ;;  %v790_v40 = vmul.f32 0.0, %v789_v29  ;;  %v804_v46 = vstv %s3583_s30  ;;  %s3870_s28 = sld [smem:[#allocation13 + $0xe]] }
 0x125   :  { %v499_v36 = vadd.f32 %v496_v2, %v438_v26  ;;  %v805_v55 = vmul.f32 0.0, %v804_v46  ;;  %v819_v23 = vstv %s3589_s13  ;;  %v834_v5 = vstv %s3595_s15  ;;  %6039 = sst [smem:[#allocation32_spill]] %s3810_s24 }
 0x126   :  { %v510_v61 = vpop.permute.xlu1 %509  ;;  %v820_v3 = vmul.f32 0.0, %v819_v23  ;;  %v864_v60 = vstv %s3607_s17  ;;  %v879_v48 = vstv %s3613_s1  ;;  %v894_v63 = vstv %s3619_s19  ;;  %s3882_s30 = sld [smem:[#allocation13 + $0x2e]] }
 0x127   :  { %v508_v21 = vpop.permute.xlu0 %507  ;;  %v515_v20 = vadd.f32 %v510_v61, %v454_v58  ;;  %v865_v43 = vmul.f32 0.0, %v864_v60  ;;  %v895_v54 = vmul.f32 0.0, %v894_v63  ;;  %v924_v15 = vstv %s3631_s21  ;;  %s3894_s13 = sld [smem:[#allocation13 + $0x4e]] }
 0x128   :  { %v511_v0 = vsel %vm465_vm5, %v508_v21, %v510_v61  ;;  %v745_v61 = vmul.f32 0.0, %v744_v6  ;;  %v759_v21 = vstv %s3565_s26  ;;  %v925_v11 = vmul.f32 0.0, %v924_v15  ;;  %s3846_s26 = sld [smem:[#allocation13 + $0x4d]] }
 0x129   :  { %v514_v31 = vadd.f32 %v511_v0, %v453_v14  ;;  %v760_v25 = vmul.f32 0.0, %v759_v21  ;;  %v1091_v33 = vstv %s3675_s29  ;;  %v1106_v50 = vstv %s3683_s6  ;;  %s3713_s29 = sld [smem:[#allocation13 + $0xb]] }
 0x12a   :  { %v530_v27 = vpop.permute.xlu1 %529  ;;  %v1092_v45 = vmul.f32 0.0, %v1091_v33  ;;  %v1107_v35 = vmul.f32 0.0, %v1106_v50  ;;  %s2899_s6 = sld [smem:[#allocation13 + $0x7]] }
 0x12b   :  { %v521_v8 = vpop.permute.xlu0 %520  ;;  %v532_v13 = vadd.f32 %v530_v27, %v484_v7  ;;  %v533_v24 = vadd.f32 %v530_v27, %v485_v37  ;;  %v969_v37 = vstv %s3649_s2  ;;  %6042 = sst [smem:[#allocation33_spill]] %s3858_s27 }
 0x12c   :  { %v523_v10 = vadd.f32 %v521_v8, %v469_v49  ;;  %v524_v28 = vadd.f32 %v521_v8, %v470_v9  ;;  %v835_v9 = vmul.f32 0.0, %v834_v5  ;;  %v849_v49 = vstv %s3601_s16  ;;  %s3906_s15 = sld [smem:[#allocation13 + $0x6e]] }
 0x12d   :  { %v850_v1 = vmul.f32 0.0, %v849_v49  ;;  %v880_v8 = vmul.f32 0.0, %v879_v48  ;;  %v970_v7 = vmul.f32 0.0, %v969_v37  ;;  %s2931_s16 = sld [smem:[#allocation13 + $0xf]] }
 0x12e   :  { %554 = vrot.lane.b32.xlu0 %v523_v10, %s5841_s22  ;;  %556 = vrot.lane.b32.xlu1 %v524_v28, %s5841_s22  ;;  %v548_v22 = vpop.permute.xlu1 %547  ;;  %v909_v10 = vstv %s3625_s20  ;;  %s2933_s17 = sld [smem:[#allocation13 + $0x4f]] }
 0x12f   :  { %v539_v16 = vpop.permute.xlu0 %538  ;;  %v550_v39 = vadd.f32 %v548_v22, %v514_v31  ;;  %v551_v53 = vadd.f32 %v548_v22, %v515_v20  ;;  %v910_v28 = vmul.f32 0.0, %v909_v10  ;;  %v6032_v31 = vstv %s3312_s8  ;;  %s3741_s8 = sld [smem:[#allocation13 + $0x2b]] }
 0x130   :  { %v541_v17 = vadd.f32 %v539_v16, %v499_v36  ;;  %v542_v19 = vadd.f32 %v539_v16, %v500_v59  ;;  %s3941_s1 = sld [smem:[#allocation13 + $0x11]] }
 0x131   :  { %s3951_s19 = sld [smem:[#allocation13 + $0x31]] }
 0x132   :  { %564 = vrot.lane.b32.xlu0 %v532_v13, %s5841_s22  ;;  %566 = vrot.lane.b32.xlu1 %v533_v24, %s5841_s22  ;;  %s3962_s20 = sld [smem:[#allocation13 + $0x51]] }
 0x133   :  { %v3666_v62 = vpop.permute.xlu0 %629  ;;  %s2900_s21 = sld [smem:[#allocation13 + $0x27]] }
 0x134   :  { %s4008_s2 = sld [smem:[#allocation13 + $0x52]] }
 0x136   :  { %573 = vrot.lane.b32.xlu0 %v541_v17, %s5841_s22  ;;  %575 = vrot.lane.b32.xlu1 %v542_v19, %s5841_s22 }
 0x137   :  { %v3677_v18 = vpop.permute.xlu0 %644  ;;  %6051 = sst [smem:[#allocation39_spill]] %s3951_s19 }
 0x13a   :  { %582 = vrot.lane.b32.xlu0 %v550_v39, %s5841_s22  ;;  %584 = vrot.lane.b32.xlu1 %v551_v53, %s5841_s22  ;;  %s3637_s22 = sld [smem:[#allocation13 + $0x26]] }
 0x13b   :  { %v3688_v30 = vpop.permute.xlu0 %659 }
 0x13e   :  { %704 = vrot.lane.b32.xlu0 %v700_v34, %s5851_s4 }
 0x13f   :  { %v3699_v16 = vpop.permute.xlu0 %674 }
 0x140   :  { %v939_v12 = vstv %s3637_s22  ;;  %s2902_s22 = sld [smem:[#allocation13 + $0x67]] }
 0x141   :  { %v940_v51 = vmul.f32 0.0, %v939_v12 }
 0x142   :  { %719 = vrot.lane.b32.xlu0 %v715_v4, %s5851_s4  ;;  %v1166_v4 = vstv %s3713_s29  ;;  %s4156_s29 = sld [smem:[#allocation13 + $0x35]] }
 0x143   :  { %v3708_v36 = vpop.permute.xlu0 %689 }
 0x146   :  { %734 = vrot.lane.b32.xlu0 %v730_v47, %s5851_s4  ;;  %s3669_s4 = sld [smem:[#allocation13 + $0x49]]  ;;  %v6033_v47 = vstv %s3318_s9 }
 0x147   :  { %s3751_s9 = sld [smem:[#allocation13 + $0x4b]] }
 0x148   :  { %6081 = sst [smem:[#allocation28_spill]] %s4156_s29 }
 0x14a   :  { %749 = vrot.lane.b32.xlu0 %v745_v61, %s5847_s14 }
 0x14c   :  { %6025 = sst [smem:[#allocation27_spill]] %s3669_s4  ;;  %v1076_v13 = vstv %s3669_s4 }
 0x14d   :  { %v1077_v24 = vmul.f32 0.0, %v1076_v13  ;;  %s3705_s4 = sld [smem:[#allocation13 + $0x6a]] }
 0x14e   :  { %764 = vrot.lane.b32.xlu0 %v760_v25, %s5847_s14  ;;  %v1167_v25 = vmul.f32 0.0, %v1166_v4 }
 0x152   :  { %779 = vrot.lane.b32.xlu0 %v775_v52, %s5847_s14 }
 0x153   :  { %6030 = sst [smem:[#allocation31_spill]] %s3705_s4  ;;  %v1151_v17 = vstv %s3705_s4  ;;  %s6034_s4 = smov 104  }
 0x154   :  { %v1152_v53 = vmul.f32 0.0, %v1151_v17 }
 0x156   :  { %794 = vrot.lane.b32.xlu0 %v790_v40, %s5847_s14  ;;  %s3655_s14 = sld [smem:[#allocation13 + $0x9]]  ;;  %v984_v40 = vstv %s2899_s6  ;;  %s6036_s6 = smov 72  }
 0x15a   :  { %809 = vrot.lane.b32.xlu0 %v805_v55, %s5843_s18  ;;  %v6035_v55 = vstv %s3325_s10  ;;  %s3762_s10 = sld [smem:[#allocation13 + $0x6b]] }
 0x15c   :  { %6023 = sst [smem:[#allocation25_spill]] %s3655_s14  ;;  %v1046_v42 = vstv %s3655_s14  ;;  %s6031_s14 = smov 112  }
 0x15d   :  { %v1047_v56 = vmul.f32 0.0, %v1046_v42  ;;  %6061 = sst [smem:[#allocation25_spill]] %s4008_s2 }
 0x15e   :  { %824 = vrot.lane.b32.xlu0 %v820_v3, %s5843_s18 }
 0x162   :  { %839 = vrot.lane.b32.xlu0 %v835_v9, %s5843_s18 }
 0x166   :  { %854 = vrot.lane.b32.xlu0 %v850_v1, %s5843_s18  ;;  %s3643_s18 = sld [smem:[#allocation13 + $0x46]] }
 0x16a   :  { %869 = vrot.lane.b32.xlu0 %v865_v43, %s5849_s23 }
 0x16c   :  { %v954_v27 = vstv %s3643_s18  ;;  %s3998_s18 = sld [smem:[#allocation13 + $0x32]] }
 0x16d   :  { %v955_v57 = vmul.f32 0.0, %v954_v27 }
 0x16e   :  { %884 = vrot.lane.b32.xlu0 %v880_v8, %s5849_s23  ;;  %v6037_v8 = vstv %s3332_s11  ;;  %s3786_s11 = sld [smem:[#allocation13 + $0x2c]] }
 0x172   :  { %899 = vrot.lane.b32.xlu0 %v895_v54, %s5849_s23  ;;  %6058 = sst [smem:[#allocation46_spill]] %s3998_s18 }
 0x176   :  { %914 = vrot.lane.b32.xlu0 %v910_v28, %s5849_s23  ;;  %s3661_s23 = sld [smem:[#allocation13 + $0x29]] }
 0x17a   :  { %929 = vrot.lane.b32.xlu0 %v925_v11, %s5855_s5 }
 0x17c   :  { %6024 = sst [smem:[#allocation26_spill]] %s3661_s23  ;;  %v1061_v2 = vstv %s3661_s23 }
 0x17d   :  { %v1062_v26 = vmul.f32 0.0, %v1061_v2  ;;  %s3697_s23 = sld [smem:[#allocation13 + $0x4a]] }
 0x17e   :  { %944 = vrot.lane.b32.xlu0 %v940_v51, %s5855_s5  ;;  %v1181_v51 = vstv %s3741_s8  ;;  %s4170_s8 = sld [smem:[#allocation13 + $0x55]] }
 0x182   :  { %959 = vrot.lane.b32.xlu0 %v955_v57, %s5855_s5  ;;  %v6038_v57 = vstv %s3338_s12  ;;  %s3798_s12 = sld [smem:[#allocation13 + $0x4c]] }
 0x183   :  { %6029 = sst [smem:[#allocation30_spill]] %s3697_s23  ;;  %v1136_v58 = vstv %s3697_s23 }
 0x184   :  { %v1137_v14 = vmul.f32 0.0, %v1136_v58  ;;  %s2901_s23 = sld [smem:[#allocation13 + $0x47]] }
 0x186   :  { %974 = vrot.lane.b32.xlu0 %v970_v7, %s5855_s5  ;;  %s3691_s5 = sld [smem:[#allocation13 + $0x2a]] }
 0x18a   :  { %1051 = vrot.lane.b32.xlu0 %v1047_v56, %s6027_s7  ;;  %v1002_v43 = vstv %s2901_s23  ;;  %v1182_v56 = vmul.f32 0.0, %v1181_v51  ;;  %s3774_s23 = sld [smem:[#allocation13 + $0xc]] }
 0x18c   :  { %v1121_v59 = vstv %s3691_s5  ;;  %s4114_s5 = sld [smem:[#allocation13 + $0x54]] }
 0x18d   :  { %v1122_v0 = vmul.f32 0.0, %v1121_v59 }
 0x18e   :  { %1066 = vrot.lane.b32.xlu0 %v1062_v26, %s6027_s7 }
 0x192   :  { %1081 = vrot.lane.b32.xlu0 %v1077_v24, %s6027_s7  ;;  %v1196_v24 = vstv %s3751_s9  ;;  %s4184_s9 = sld [smem:[#allocation13 + $0x75]] }
 0x196   :  { %1096 = vrot.lane.b32.xlu0 %v1092_v45, %s6027_s7 }
 0x19a   :  { %1111 = vrot.lane.b32.xlu0 %v1107_v35, %s6031_s14  ;;  %v1197_v35 = vmul.f32 0.0, %v1196_v24 }
 0x19e   :  { %1126 = vrot.lane.b32.xlu0 %v1122_v0, %s6031_s14 }
 0x1a0   :  { %v555_v19 = vpop.permute.xlu0 %554  ;;  %v557_v22 = vpop.permute.xlu1 %556 }
 0x1a1   :  { %v3720_v20 = vsel %vm558_vm6, %v555_v19, %v557_v22 }
 0x1a2   :  { %1141 = vrot.lane.b32.xlu0 %v1137_v14, %s6031_s14  ;;  %v626_v39 = vmul.f32 %v6032_v31, %v3720_v20  ;;  %v641_v61 = vmul.f32 %v6033_v47, %v3720_v20  ;;  %v656_v3 = vmul.f32 %v6035_v55, %v3720_v20  ;;  %v985_v1 = vmul.f32 %v984_v40, %v3720_v20 }
 0x1a3   :  { %v671_v54 = vmul.f32 %v6037_v8, %v3720_v20  ;;  %v1003_v11 = vmul.f32 %v1002_v43, %v3720_v20  ;;  %v686_v7 = vmul.f32 %v6038_v57, %v3720_v20  ;;  %v701_v45 = vmul.f32 %v699_v32, %v3720_v20 }
 0x1a4   :  { %v3728_v34 = vpop.permute.xlu0 %564  ;;  %631 = vrot.lane.b32.xlu1 %v626_v39, %s6027_s7  ;;  %v1211_v14 = vstv %s3762_s10  ;;  %v716_v19 = vmul.f32 %v714_v44, %v3720_v20  ;;  %v1226_v31 = vstv %s3774_s23  ;;  %v731_v39 = vmul.f32 %v729_v38, %v3720_v20  ;;  %s4198_s10 = sld [smem:[#allocation13 + $0x16]] }
 0x1a5   :  { %v1212_v22 = vmul.f32 0.0, %v1211_v14  ;;  %v1241_v47 = vstv %s3786_s11  ;;  %v5898_v40 = vstv %s3798_s12  ;;  %v761_v55 = vmul.f32 %v759_v21, %v3720_v20  ;;  %s6085_s23 = sld [smem:[#allocation32_spill]] }
 0x1a6   :  { %1156 = vrot.lane.b32.xlu0 %v1152_v53, %s6031_s14  ;;  %v1227_v53 = vmul.f32 0.0, %v1226_v31  ;;  %v776_v43 = vmul.f32 %v774_v41, %v3720_v20  ;;  %s4226_s11 = sld [smem:[#allocation13 + $0x56]] }
 0x1a8   :  { %v3738_v52 = vpop.permute.xlu0 %573  ;;  %646 = vrot.lane.b32.xlu1 %v641_v61, %s6027_s7  ;;  %v746_v61 = vmul.f32 %v744_v6, %v3720_v20 }
 0x1aa   :  { %1171 = vrot.lane.b32.xlu0 %v1167_v25, %s6034_s4  ;;  %v1242_v25 = vmul.f32 0.0, %v1241_v47 }
 0x1ac   :  { %v3747_v9 = vpop.permute.xlu0 %582  ;;  %661 = vrot.lane.b32.xlu1 %v656_v3, %s6027_s7  ;;  %v1257_v3 = vmul.f32 0.0, %v5898_v40 }
 0x1ae   :  { %987 = vrot.lane.b32.xlu0 %v985_v1, %s6036_s6  ;;  %v5896_v1 = vstv %s3810_s24  ;;  %s6043_s24 = smov 88  }
 0x1af   :  { %v1272_v8 = vmul.f32 0.0, %v5896_v1 }
 0x1b0   :  { %v3757_v28 = vpop.permute.xlu0 %704  ;;  %676 = vrot.lane.b32.xlu1 %v671_v54, %s6027_s7  ;;  %v5894_v54 = vstv %s3822_s25 }
 0x1b1   :  { %v1287_v57 = vmul.f32 0.0, %v5894_v54 }
 0x1b2   :  { %1005 = vrot.lane.b32.xlu0 %v1003_v11, %s6036_s6  ;;  %v791_v11 = vmul.f32 %v789_v29, %v3720_v20 }
 0x1b4   :  { %v3770_v26 = vpop.permute.xlu0 %719  ;;  %691 = vrot.lane.b32.xlu1 %v686_v7, %s6031_s14  ;;  %v5892_v7 = vstv %s3834_s3 }
 0x1b6   :  { %1186 = vrot.lane.b32.xlu0 %v1182_v56, %s6034_s4  ;;  %v806_v56 = vmul.f32 %v804_v46, %v3720_v20 }
 0x1b8   :  { %v3782_v0 = vpop.permute.xlu0 %734  ;;  %706 = vrot.lane.b32.xlu1 %v701_v45, %s6031_s14  ;;  %v1302_v45 = vmul.f32 0.0, %v5892_v7 }
 0x1ba   :  { %1201 = vrot.lane.b32.xlu0 %v1197_v35, %s6034_s4  ;;  %v5890_v35 = vstv %s3846_s26 }
 0x1bc   :  { %v3794_v32 = vpop.permute.xlu0 %749  ;;  %721 = vrot.lane.b32.xlu1 %v716_v19, %s6031_s14  ;;  %v821_v19 = vmul.f32 %v819_v23, %v3720_v20 }
 0x1be   :  { %1216 = vrot.lane.b32.xlu0 %v1212_v22, %s6034_s4  ;;  %v1317_v22 = vmul.f32 0.0, %v5890_v35 }
 0x1c0   :  { %v3806_v44 = vpop.permute.xlu0 %764  ;;  %736 = vrot.lane.b32.xlu1 %v731_v39, %s6031_s14  ;;  %v5888_v39 = vstv %s3858_s27  ;;  %s6047_s27 = smov 80  }
 0x1c2   :  { %1231 = vrot.lane.b32.xlu0 %v1227_v53, %s6040_s0  ;;  %v836_v53 = vmul.f32 %v834_v5, %v3720_v20 }
 0x1c4   :  { %v3818_v38 = vpop.permute.xlu0 %779  ;;  %751 = vrot.lane.b32.xlu1 %v746_v61, %s6034_s4  ;;  %v1332_v61 = vmul.f32 0.0, %v5888_v39 }
 0x1c6   :  { %1246 = vrot.lane.b32.xlu0 %v1242_v25, %s6040_s0  ;;  %v5886_v25 = vstv %s3870_s28 }
 0x1c8   :  { %v3830_v6 = vpop.permute.xlu0 %794  ;;  %766 = vrot.lane.b32.xlu1 %v761_v55, %s6034_s4  ;;  %v851_v55 = vmul.f32 %v849_v49, %v3720_v20 }
 0x1ca   :  { %1261 = vrot.lane.b32.xlu0 %v1257_v3, %s6040_s0  ;;  %v1347_v3 = vmul.f32 0.0, %v5886_v25 }
 0x1cc   :  { %v3842_v21 = vpop.permute.xlu0 %809  ;;  %781 = vrot.lane.b32.xlu1 %v776_v43, %s6034_s4  ;;  %v5883_v43 = vstv %s3882_s30 }
 0x1ce   :  { %1276 = vrot.lane.b32.xlu0 %v1272_v8, %s6040_s0  ;;  %v866_v8 = vmul.f32 %v864_v60, %v3720_v20  ;;  %v5878_v60 = vstv %s3906_s15 }
 0x1d0   :  { %v3854_v41 = vpop.permute.xlu0 %824  ;;  %796 = vrot.lane.b32.xlu1 %v791_v11, %s6034_s4  ;;  %v1362_v11 = vmul.f32 0.0, %v5883_v43 }
 0x1d1   :  { %6041 = vst [vmem:[#allocation23_spill] sm:$0xff] %v3854_v41 }
 0x1d2   :  { %1291 = vrot.lane.b32.xlu0 %v1287_v57, %s6043_s24  ;;  %v5880_v57 = vstv %s3894_s13 }
 0x1d4   :  { %v3866_v29 = vpop.permute.xlu0 %839  ;;  %811 = vrot.lane.b32.xlu1 %v806_v56, %s6040_s0  ;;  %v881_v56 = vmul.f32 %v879_v48, %v3720_v20 }
 0x1d5   :  { %6044 = vst [vmem:[#allocation24_spill] sm:$0xff] %v3866_v29 }
 0x1d6   :  { %1306 = vrot.lane.b32.xlu0 %v1302_v45, %s6043_s24  ;;  %v1377_v45 = vmul.f32 0.0, %v5880_v57 }
 0x1d8   :  { %v3878_v46 = vpop.permute.xlu0 %854  ;;  %826 = vrot.lane.b32.xlu1 %v821_v19, %s6040_s0 }
 0x1d9   :  { %6045 = vst [vmem:[#allocation34_spill] sm:$0xff] %v3878_v46 }
 0x1da   :  { %1321 = vrot.lane.b32.xlu0 %v1317_v22, %s6043_s24  ;;  %v567_v22 = vpop.permute.xlu1 %566 }
 0x1db   :  { %v3939_v48 = vsel %vm558_vm6, %v3728_v34, %v567_v22  ;;  %v926_v34 = vmul.f32 %v924_v15, %v3720_v20  ;;  %v5874_v22 = vstv %s3941_s1 }
 0x1dc   :  { %v3890_v23 = vpop.permute.xlu0 %869  ;;  %841 = vrot.lane.b32.xlu1 %v836_v53, %s6040_s0  ;;  %v896_v53 = vmul.f32 %v894_v63, %v3720_v20  ;;  %v911_v63 = vmul.f32 %v909_v10, %v3720_v20  ;;  %v1108_v57 = vmul.f32 %v1106_v50, %v3939_v48  ;;  %v1123_v43 = vmul.f32 %v1121_v59, %v3939_v48 }
 0x1dd   :  { %v1138_v25 = vmul.f32 %v1136_v58, %v3939_v48  ;;  %v1153_v39 = vmul.f32 %v1151_v17, %v3939_v48  ;;  %v1168_v35 = vmul.f32 %v1166_v4, %v3939_v48  ;;  %v1183_v7 = vmul.f32 %v1181_v51, %v3939_v48 }
 0x1de   :  { %1336 = vrot.lane.b32.xlu0 %v1332_v61, %s6043_s24  ;;  %v1392_v61 = vmul.f32 0.0, %v5878_v60  ;;  %v1198_v54 = vmul.f32 %v1196_v24, %v3939_v48  ;;  %v1213_v1 = vmul.f32 %v1211_v14, %v3939_v48  ;;  %v1228_v40 = vmul.f32 %v1226_v31, %v3939_v48 }
 0x1e0   :  { %v3902_v5 = vpop.permute.xlu0 %884  ;;  %856 = vrot.lane.b32.xlu1 %v851_v55, %s6040_s0 }
 0x1e1   :  { %6046 = vst [vmem:[#allocation35_spill] sm:$0xff] %v3902_v5 }
 0x1e2   :  { %1351 = vrot.lane.b32.xlu0 %v1347_v3, %s6047_s27  ;;  %v1406_v3 = vstv %s2931_s16  ;;  %s3974_s16 = sld [smem:[#allocation13 + $0x71]] }
 0x1e4   :  { %v3914_v49 = vpop.permute.xlu0 %899  ;;  %871 = vrot.lane.b32.xlu1 %v866_v8, %s6043_s24 }
 0x1e5   :  { %6048 = vst [vmem:[#allocation36_spill] sm:$0xff] %v3914_v49 }
 0x1e6   :  { %1366 = vrot.lane.b32.xlu0 %v1362_v11, %s6047_s27  ;;  %v1407_v11 = vmul.f32 %v1406_v3, %v3939_v48  ;;  %v5868_v3 = vstv %s3951_s19  ;;  %s4128_s19 = sld [smem:[#allocation13 + $0x74]] }
 0x1e8   :  { %v3924_v19 = vpop.permute.xlu0 %914  ;;  %886 = vrot.lane.b32.xlu1 %v881_v56, %s6043_s24  ;;  %v1424_v56 = vstv %s2933_s17  ;;  %6054 = sst [smem:[#allocation42_spill]] %s3974_s16 }
 0x1e9   :  { %6049 = vst [vmem:[#allocation37_spill] sm:$0xff] %v3924_v19  ;;  %v1425_v10 = vmul.f32 %v1424_v56, %v3939_v48  ;;  %v5867_v56 = vstv %s3962_s20  ;;  %s3986_s17 = sld [smem:[#allocation13 + $0x12]] }
 0x1ea   :  { %1381 = vrot.lane.b32.xlu0 %v1377_v45, %s6047_s27 }
 0x1ec   :  { %v3934_v55 = vpop.permute.xlu0 %929  ;;  %901 = vrot.lane.b32.xlu1 %v896_v53, %s6043_s24  ;;  %v941_v53 = vmul.f32 %v939_v12, %v3720_v20  ;;  %v1484_v12 = vmul.f32 0.0, %v5868_v3 }
 0x1ee   :  { %1396 = vrot.lane.b32.xlu0 %v1392_v61, %s6047_s27  ;;  %v1469_v61 = vmul.f32 0.0, %v5874_v22 }
 0x1ef   :  { %6056 = sst [smem:[#allocation44_spill]] %s3986_s17  ;;  %v5871_v3 = vstv %s3986_s17 }
 0x1f0   :  { %v3947_v8 = vpop.permute.xlu0 %944  ;;  %916 = vrot.lane.b32.xlu1 %v911_v63, %s6043_s24  ;;  %v956_v63 = vmul.f32 %v954_v27, %v3720_v20  ;;  %v993_v27 = vstv %s2900_s21  ;;  %s4032_s17 = sld [smem:[#allocation13 + $0x13]] }
 0x1f1   :  { %6050 = vst [vmem:[#allocation38_spill] sm:$0xff] %v3947_v8  ;;  %s4142_s21 = sld [smem:[#allocation13 + $0x15]] }
 0x1f2   :  { %1409 = vrot.lane.b32.xlu0 %v1407_v11, %s6036_s6 }
 0x1f4   :  { %v3957_v45 = vpop.permute.xlu0 %959  ;;  %931 = vrot.lane.b32.xlu1 %v926_v34, %s6047_s27  ;;  %v971_v34 = vmul.f32 %v969_v37, %v3720_v20 }
 0x1f5   :  { %6052 = vst [vmem:[#allocation40_spill] sm:$0xff] %v3957_v45 }
 0x1f6   :  { %1427 = vrot.lane.b32.xlu0 %v1425_v10, %s6036_s6  ;;  %v1499_v10 = vmul.f32 0.0, %v5867_v56  ;;  %6066 = sst [smem:[#allocation26_spill]] %s4032_s17 }
 0x1f8   :  { %v3970_v15 = vpop.permute.xlu0 %974  ;;  %946 = vrot.lane.b32.xlu1 %v941_v53, %s6047_s27 }
 0x1f9   :  { %6053 = vst [vmem:[#allocation41_spill] sm:$0xff] %v3970_v15 }
 0x1fa   :  { %1473 = vrot.lane.b32.xlu0 %v1469_v61, %s6027_s7  ;;  %v5869_v61 = vstv %s3974_s16  ;;  %s4072_s16 = sld [smem:[#allocation13 + $0x73]] }
 0x1fb   :  { %v1514_v37 = vmul.f32 0.0, %v5869_v61  ;;  %v5873_v61 = vstv %s3998_s18  ;;  %s4044_s18 = sld [smem:[#allocation13 + $0x33]] }
 0x1fc   :  { %v3982_v11 = vpop.permute.xlu0 %1051  ;;  %961 = vrot.lane.b32.xlu1 %v956_v63, %s6047_s27  ;;  %v994_v63 = vmul.f32 %v993_v27, %v3720_v20 }
 0x1fd   :  { %6055 = vst [vmem:[#allocation43_spill] sm:$0xff] %v3982_v11 }
 0x1fe   :  { %1488 = vrot.lane.b32.xlu0 %v1484_v12, %s6027_s7  ;;  %v1011_v12 = vstv %s2902_s22  ;;  %s4018_s22 = sld [smem:[#allocation13 + $0x72]] }
 0x200   :  { %v3994_v53 = vpop.permute.xlu0 %1066  ;;  %976 = vrot.lane.b32.xlu1 %v971_v34, %s6047_s27  ;;  %v1012_v34 = vmul.f32 %v1011_v12, %v3720_v20  ;;  %v4026_v12 = vpop.permute.xlu1 %575 }
 0x201   :  { %6057 = vst [vmem:[#allocation45_spill] sm:$0xff] %v3994_v53  ;;  %6069 = sst [smem:[#allocation27_spill]] %s4044_s18 }
 0x202   :  { %1503 = vrot.lane.b32.xlu0 %v1499_v10, %s6027_s7  ;;  %v1529_v10 = vmul.f32 0.0, %v5871_v3 }
 0x204   :  { %v4004_v56 = vpop.permute.xlu0 %1081  ;;  %996 = vrot.lane.b32.xlu1 %v994_v63, %s6036_s6  ;;  %v1048_v63 = vmul.f32 %v1046_v42, %v3939_v48  ;;  %v5879_v22 = vstv %s4018_s22 }
 0x205   :  { %6060 = vst [vmem:[#allocation47_spill] sm:$0xff] %v4004_v56 }
 0x206   :  { %1518 = vrot.lane.b32.xlu0 %v1514_v37, %s6027_s7  ;;  %v1544_v37 = vmul.f32 0.0, %v5873_v61 }
 0x208   :  { %v4014_v27 = vpop.permute.xlu0 %1096  ;;  %1014 = vrot.lane.b32.xlu1 %v1012_v34, %s6036_s6  ;;  %v5876_v34 = vstv %s4008_s2  ;;  %s4058_s2 = sld [smem:[#allocation13 + $0x53]] }
 0x209   :  { %6063 = vst [vmem:[#allocation48_spill] sm:$0xff] %v4014_v27  ;;  %v1559_v42 = vmul.f32 0.0, %v5876_v34 }
 0x20a   :  { %1533 = vrot.lane.b32.xlu0 %v1529_v10, %s6031_s14  ;;  %v1063_v10 = vmul.f32 %v1061_v2, %v3939_v48  ;;  %v1574_v2 = vmul.f32 0.0, %v5879_v22 }
 0x20c   :  { %v4028_v3 = vpop.permute.xlu0 %1111  ;;  %1053 = vrot.lane.b32.xlu1 %v1048_v63, %s6027_s7  ;;  %v4046_v63 = vpop.permute.xlu1 %584 }
 0x20d   :  { %6065 = vst [vmem:[#allocation49_spill] sm:$0xff] %v4028_v3 }
 0x20e   :  { %1548 = vrot.lane.b32.xlu0 %v1544_v37, %s6031_s14  ;;  %v1078_v37 = vmul.f32 %v1076_v13, %v3939_v48 }
 0x210   :  { %v4040_v61 = vpop.permute.xlu0 %1126  ;;  %1068 = vrot.lane.b32.xlu1 %v1063_v10, %s6027_s7  ;;  %v5881_v10 = vstv %s4032_s17  ;;  %s4086_s17 = sld [smem:[#allocation13 + $0x14]] }
 0x211   :  { %6068 = vst [vmem:[#allocation50_spill] sm:$0xff] %v4040_v61  ;;  %v1589_v13 = vmul.f32 0.0, %v5881_v10 }
 0x212   :  { %1563 = vrot.lane.b32.xlu0 %v1559_v42, %s6031_s14  ;;  %v1093_v42 = vmul.f32 %v1091_v33, %v3939_v48 }
 0x214   :  { %v4054_v34 = vpop.permute.xlu0 %1141  ;;  %1083 = vrot.lane.b32.xlu1 %v1078_v37, %s6027_s7  ;;  %v5884_v37 = vstv %s4044_s18  ;;  %s4100_s18 = sld [smem:[#allocation13 + $0x34]] }
 0x215   :  { %6071 = vst [vmem:[#allocation51_spill] sm:$0xff] %v4054_v34  ;;  %v1604_v33 = vmul.f32 0.0, %v5884_v37 }
 0x216   :  { %1578 = vrot.lane.b32.xlu0 %v1574_v2, %s6031_s14  ;;  %v4061_v60 = vpop.permute.xlu1 %631 }
 0x218   :  { %v4068_v22 = vpop.permute.xlu0 %1156  ;;  %1098 = vrot.lane.b32.xlu1 %v1093_v42, %s6027_s7  ;;  %v5887_v42 = vstv %s4058_s2 }
 0x219   :  { %6072 = vst [vmem:[#allocation52_spill] sm:$0xff] %v4068_v22  ;;  %v1619_v50 = vmul.f32 0.0, %v5887_v42 }
 0x21a   :  { %1593 = vrot.lane.b32.xlu0 %v1589_v13, %s6034_s4  ;;  %v4075_v2 = vpop.permute.xlu1 %646 }
 0x21c   :  { %v4082_v10 = vpop.permute.xlu0 %1171  ;;  %1113 = vrot.lane.b32.xlu1 %v1108_v57, %s6031_s14  ;;  %v5889_v57 = vstv %s4072_s16 }
 0x21d   :  { %6074 = vst [vmem:[#allocation53_spill] sm:$0xff] %v4082_v10  ;;  %v1634_v59 = vmul.f32 0.0, %v5889_v57 }
 0x21e   :  { %1608 = vrot.lane.b32.xlu0 %v1604_v33, %s6034_s4  ;;  %v4089_v13 = vpop.permute.xlu1 %661 }
 0x220   :  { %v4096_v37 = vpop.permute.xlu0 %987  ;;  %1128 = vrot.lane.b32.xlu1 %v1123_v43, %s6031_s14  ;;  %v5891_v43 = vstv %s4086_s17 }
 0x221   :  { %6076 = vst [vmem:[#allocation54_spill] sm:$0xff] %v4096_v37  ;;  %v1649_v58 = vmul.f32 0.0, %v5891_v43 }
 0x222   :  { %1623 = vrot.lane.b32.xlu0 %v1619_v50, %s6034_s4  ;;  %v4103_v33 = vpop.permute.xlu1 %676 }
 0x224   :  { %v4110_v42 = vpop.permute.xlu0 %1005  ;;  %1143 = vrot.lane.b32.xlu1 %v1138_v25, %s6031_s14  ;;  %v5893_v25 = vstv %s4100_s18 }
 0x225   :  { %6077 = vst [vmem:[#allocation55_spill] sm:$0xff] %v4110_v42  ;;  %v1664_v17 = vmul.f32 0.0, %v5893_v25 }
 0x226   :  { %1638 = vrot.lane.b32.xlu0 %v1634_v59, %s6034_s4  ;;  %v4117_v50 = vpop.permute.xlu1 %691 }
 0x228   :  { %v4124_v57 = vpop.permute.xlu0 %1186  ;;  %1158 = vrot.lane.b32.xlu1 %v1153_v39, %s6031_s14  ;;  %v5895_v39 = vstv %s4114_s5 }
 0x229   :  { %6078 = vst [vmem:[#allocation56_spill] sm:$0xff] %v4124_v57  ;;  %v1679_v4 = vmul.f32 0.0, %v5895_v39  ;;  %v6093_v57 = vstv %s3822_s25  ;;  %s6097_s25 = sld [smem:[#allocation33_spill]] }
 0x22a   :  { %1653 = vrot.lane.b32.xlu0 %v1649_v58, %s6040_s0  ;;  %v4131_v59 = vpop.permute.xlu1 %706  ;;  %v1288_v22 = vmul.f32 %v6093_v57, %v3939_v48 }
 0x22c   :  { %v4138_v43 = vpop.permute.xlu0 %1201  ;;  %1173 = vrot.lane.b32.xlu1 %v1168_v35, %s6034_s4  ;;  %v5897_v35 = vstv %s4128_s19 }
 0x22d   :  { %6079 = vst [vmem:[#allocation57_spill] sm:$0xff] %v4138_v43  ;;  %v1694_v51 = vmul.f32 0.0, %v5897_v35 }
 0x22e   :  { %1668 = vrot.lane.b32.xlu0 %v1664_v17, %s6040_s0  ;;  %v4145_v58 = vpop.permute.xlu1 %721 }
 0x230   :  { %v4152_v25 = vpop.permute.xlu0 %1216  ;;  %1188 = vrot.lane.b32.xlu1 %v1183_v7, %s6034_s4  ;;  %v5899_v7 = vstv %s4142_s21 }
 0x231   :  { %6080 = vst [vmem:[#allocation58_spill] sm:$0xff] %v4152_v25  ;;  %v1709_v24 = vmul.f32 0.0, %v5899_v7 }
 0x232   :  { %1683 = vrot.lane.b32.xlu0 %v1679_v4, %s6040_s0  ;;  %v4159_v17 = vpop.permute.xlu1 %736 }
 0x234   :  { %v4166_v39 = vpop.permute.xlu0 %1231  ;;  %1203 = vrot.lane.b32.xlu1 %v1198_v54, %s6034_s4  ;;  %v5900_v54 = vstv %s4156_s29  ;;  %s4212_s29 = sld [smem:[#allocation13 + $0x36]] }
 0x235   :  { %6082 = vst [vmem:[#allocation59_spill] sm:$0xff] %v4166_v39  ;;  %v1724_v14 = vmul.f32 0.0, %v5900_v54 }
 0x236   :  { %1698 = vrot.lane.b32.xlu0 %v1694_v51, %s6040_s0  ;;  %v4173_v4 = vpop.permute.xlu1 %751 }
 0x238   :  { %v4180_v35 = vpop.permute.xlu0 %1246  ;;  %1218 = vrot.lane.b32.xlu1 %v1213_v1, %s6034_s4  ;;  %v5902_v1 = vstv %s4170_s8 }
 0x239   :  { %6083 = vst [vmem:[#allocation60_spill] sm:$0xff] %v4180_v35  ;;  %v1243_v35 = vmul.f32 %v1241_v47, %v3939_v48  ;;  %v1739_v31 = vmul.f32 0.0, %v5902_v1 }
 0x23a   :  { %1713 = vrot.lane.b32.xlu0 %v1709_v24, %s6043_s24  ;;  %v4187_v51 = vpop.permute.xlu1 %766  ;;  %6087 = sst [smem:[#allocation29_spill]] %s4212_s29 }
 0x23c   :  { %v4194_v7 = vpop.permute.xlu0 %1261  ;;  %1233 = vrot.lane.b32.xlu1 %v1228_v40, %s6040_s0  ;;  %v5903_v40 = vstv %s4184_s9 }
 0x23d   :  { %6084 = vst [vmem:[#allocation61_spill] sm:$0xff] %v4194_v7  ;;  %v6088_v7 = vstv %s3798_s12  ;;  %v1754_v47 = vmul.f32 0.0, %v5903_v40  ;;  %s4240_s12 = sld [smem:[#allocation13 + $0x76]] }
 0x23e   :  { %1728 = vrot.lane.b32.xlu0 %v1724_v14, %s6043_s24  ;;  %v4201_v24 = vpop.permute.xlu1 %781  ;;  %v1258_v25 = vmul.f32 %v6088_v7, %v3939_v48 }
 0x240   :  { %v4208_v54 = vpop.permute.xlu0 %1276  ;;  %1248 = vrot.lane.b32.xlu1 %v1243_v35, %s6040_s0  ;;  %v5904_v35 = vstv %s4198_s10 }
 0x241   :  { %6086 = vst [vmem:[#allocation62_spill] sm:$0xff] %v4208_v54  ;;  %v6090_v54 = vstv %s6085_s23  ;;  %v1769_v7 = vmul.f32 0.0, %v5904_v35  ;;  %s2963_s23 = sld [smem:[#allocation13 + $0x17]] }
 0x242   :  { %1743 = vrot.lane.b32.xlu0 %v1739_v31, %s6043_s24  ;;  %v4215_v14 = vpop.permute.xlu1 %796  ;;  %v1273_v43 = vmul.f32 %v6090_v54, %v3939_v48 }
 0x244   :  { %v4222_v1 = vpop.permute.xlu0 %1291  ;;  %1263 = vrot.lane.b32.xlu1 %v1258_v25, %s6040_s0  ;;  %v5905_v25 = vstv %s4212_s29  ;;  %s2965_s29 = sld [smem:[#allocation13 + $0x57]] }
 0x245   :  { %6089 = vst [vmem:[#allocation63_spill] sm:$0xff] %v4222_v1  ;;  %v1784_v54 = vmul.f32 0.0, %v5905_v25  ;;  %v5908_v25 = vstv %s4240_s12 }
 0x246   :  { %1758 = vrot.lane.b32.xlu0 %v1754_v47, %s6043_s24  ;;  %v4229_v31 = vpop.permute.xlu1 %811  ;;  %v1814_v27 = vmul.f32 0.0, %v5908_v25 }
 0x248   :  { %v4236_v40 = vpop.permute.xlu0 %1306  ;;  %1278 = vrot.lane.b32.xlu1 %v1273_v43, %s6040_s0  ;;  %v5907_v43 = vstv %s4226_s11 }
 0x249   :  { %6091 = vst [vmem:[#allocation64_spill] sm:$0xff] %v4236_v40  ;;  %v1799_v61 = vmul.f32 0.0, %v5907_v43  ;;  %v1828_v43 = vstv %s2963_s23  ;;  %s4321_s23 = sld [smem:[#allocation13 + $0x79]] }
 0x24a   :  { %1773 = vrot.lane.b32.xlu0 %v1769_v7, %s6047_s27  ;;  %v4243_v47 = vpop.permute.xlu1 %826  ;;  %v6096_v7 = vstv %s3834_s3  ;;  %s4282_s3 = sld [smem:[#allocation13 + $0x19]] }
 0x24b   :  { %6092 = vst [vmem:[#allocation65_spill] sm:$0xff] %v4243_v47  ;;  %v1303_v34 = vmul.f32 %v6096_v7, %v3939_v48 }
 0x24c   :  { %v4250_v35 = vpop.permute.xlu0 %1321  ;;  %1293 = vrot.lane.b32.xlu1 %v1288_v22, %s6043_s24 }
 0x24d   :  { %6094 = vst [vmem:[#allocation66_spill] sm:$0xff] %v4250_v35 }
 0x24e   :  { %1788 = vrot.lane.b32.xlu0 %v1784_v54, %s6047_s27  ;;  %v4255_v40 = vpop.permute.xlu1 %841  ;;  %v6100_v54 = vstv %s3846_s26  ;;  %s4294_s26 = sld [smem:[#allocation13 + $0x39]] }
 0x24f   :  { %6095 = vst [vmem:[#allocation67_spill] sm:$0xff] %v4255_v40  ;;  %v1318_v35 = vmul.f32 %v6100_v54, %v3939_v48  ;;  %v6102_v54 = vstv %s6097_s25  ;;  %s4335_s25 = sld [smem:[#allocation13 + $0x1a]] }
 0x250   :  { %v4262_v57 = vpop.permute.xlu0 %1336  ;;  %1308 = vrot.lane.b32.xlu1 %v1303_v34, %s6043_s24  ;;  %v4280_v34 = vsel %vm558_vm6, %v3738_v52, %v4026_v12  ;;  %v1333_v25 = vmul.f32 %v6102_v54, %v3939_v48  ;;  %v1846_v12 = vstv %s2965_s29  ;;  %s4307_s29 = sld [smem:[#allocation13 + $0x59]] }
 0x251   :  { %6098 = vst [vmem:[#allocation68_spill] sm:$0xff] %v4262_v57  ;;  %v1829_v52 = vmul.f32 %v1828_v43, %v4280_v34  ;;  %v5909_v43 = vstv %s4282_s3 }
 0x252   :  { %1803 = vrot.lane.b32.xlu0 %v1799_v61, %s6047_s27  ;;  %v4267_v22 = vpop.permute.xlu1 %856 }
 0x253   :  { %6099 = vst [vmem:[#allocation69_spill] sm:$0xff] %v4267_v22 }
 0x254   :  { %v4274_v7 = vpop.permute.xlu0 %1351  ;;  %1323 = vrot.lane.b32.xlu1 %v1318_v35, %s6043_s24  ;;  %v6105_v35 = vstv %s3870_s28  ;;  %s2932_s28 = sld [smem:[#allocation13 + $0x2f]] }
 0x255   :  { %6101 = vst [vmem:[#allocation70_spill] sm:$0xff] %v4274_v7  ;;  %v1348_v56 = vmul.f32 %v6105_v35, %v3939_v48  ;;  %v1891_v35 = vmul.f32 0.0, %v5909_v43  ;;  %6113 = sst [smem:[#allocation30_spill]] %s4335_s25 }
 0x256   :  { %1818 = vrot.lane.b32.xlu0 %v1814_v27, %s6047_s27  ;;  %v4285_v61 = vpop.permute.xlu1 %871 }
 0x258   :  { %v4290_v57 = vpop.permute.xlu0 %1366  ;;  %1338 = vrot.lane.b32.xlu1 %v1333_v25, %s6043_s24  ;;  %v1847_v25 = vmul.f32 %v1846_v12, %v4280_v34 }
 0x259   :  { %6103 = vst [vmem:[#allocation71_spill] sm:$0xff] %v4290_v57  ;;  %v6108_v57 = vstv %s3882_s30  ;;  %s2934_s30 = sld [smem:[#allocation13 + $0x6f]] }
 0x25a   :  { %1831 = vrot.lane.b32.xlu0 %v1829_v52, %s6036_s6  ;;  %v4297_v27 = vpop.permute.xlu1 %886  ;;  %v1363_v7 = vmul.f32 %v6108_v57, %v3939_v48 }
 0x25b   :  { %6104 = vst [vmem:[#allocation72_spill] sm:$0xff] %v4297_v27 }
 0x25c   :  { %v4302_v54 = vpop.permute.xlu0 %1381  ;;  %1353 = vrot.lane.b32.xlu1 %v1348_v56, %s6047_s27  ;;  %v5910_v56 = vstv %s4294_s26 }
 0x25d   :  { %6106 = vst [vmem:[#allocation73_spill] sm:$0xff] %v4302_v54  ;;  %v1906_v43 = vmul.f32 0.0, %v5910_v56  ;;  %v1415_v56 = vstv %s2932_s28  ;;  %s6121_s28 = sld [smem:[#allocation39_spill]] }
 0x25e   :  { %1849 = vrot.lane.b32.xlu0 %v1847_v25, %s6036_s6  ;;  %v4310_v52 = vpop.permute.xlu1 %901  ;;  %v6111_v25 = vstv %s3894_s13  ;;  %s4349_s13 = sld [smem:[#allocation13 + $0x3a]] }
 0x25f   :  { %6107 = vst [vmem:[#allocation74_spill] sm:$0xff] %v4310_v52  ;;  %v1378_v57 = vmul.f32 %v6111_v25, %v3939_v48 }
 0x260   :  { %v4317_v54 = vpop.permute.xlu0 %1396  ;;  %1368 = vrot.lane.b32.xlu1 %v1363_v7, %s6047_s27  ;;  %v5912_v7 = vstv %s4307_s29 }
 0x261   :  { %6109 = vst [vmem:[#allocation75_spill] sm:$0xff] %v4317_v54  ;;  %v6114_v54 = vstv %s3906_s15  ;;  %v1921_v25 = vmul.f32 0.0, %v5912_v7  ;;  %v1433_v7 = vstv %s2934_s30  ;;  %s4361_s15 = sld [smem:[#allocation13 + $0x5a]] }
 0x262   :  { %1895 = vrot.lane.b32.xlu0 %v1891_v35, %s6027_s7  ;;  %v4324_v12 = vpop.permute.xlu1 %916  ;;  %v1393_v1 = vmul.f32 %v6114_v54, %v3939_v48  ;;  %s4373_s30 = sld [smem:[#allocation13 + $0x7a]] }
 0x263   :  { %6110 = vst [vmem:[#allocation76_spill] sm:$0xff] %v4324_v12  ;;  %v6129_v42 = vstv %s6121_s28  ;;  %s6133_s28 = sld [smem:[#allocation44_spill]] }
 0x264   :  { %v4331_v53 = vpop.permute.xlu0 %1409  ;;  %1383 = vrot.lane.b32.xlu1 %v1378_v57, %s6047_s27  ;;  %v5914_v57 = vstv %s4321_s23  ;;  %6116 = sst [smem:[#allocation31_spill]] %s4349_s13  ;;  %v1485_v3 = vmul.f32 %v6129_v42, %v4280_v34 }
 0x265   :  { %6112 = vst [vmem:[#allocation77_spill] sm:$0xff] %v4331_v53  ;;  %v1416_v53 = vmul.f32 %v1415_v56, %v3939_v48  ;;  %v1936_v54 = vmul.f32 0.0, %v5914_v57 }
 0x266   :  { %1910 = vrot.lane.b32.xlu0 %v1906_v43, %s6027_s7  ;;  %v4338_v35 = vpop.permute.xlu1 %931 }
 0x267   :  { %6119 = sst [smem:[#allocation32_spill]] %s4361_s15 }
 0x268   :  { %v4345_v39 = vpop.permute.xlu0 %1427  ;;  %1398 = vrot.lane.b32.xlu1 %v1393_v1, %s6047_s27  ;;  %v5915_v1 = vstv %s4335_s25  ;;  %6123 = sst [smem:[#allocation33_spill]] %s4373_s30 }
 0x269   :  { %6115 = vst [vmem:[#allocation78_spill] sm:$0xff] %v4345_v39  ;;  %v1434_v39 = vmul.f32 %v1433_v7, %v3939_v48  ;;  %v1951_v56 = vmul.f32 0.0, %v5915_v1  ;;  %s4385_s25 = sld [smem:[#allocation13 + $0x1b]] }
 0x26a   :  { %1925 = vrot.lane.b32.xlu0 %v1921_v25, %s6027_s7  ;;  %v4352_v43 = vpop.permute.xlu1 %946 }
 0x26b   :  { %6117 = vst [vmem:[#allocation79_spill] sm:$0xff] %v4352_v43 }
 0x26c   :  { %v4357_v10 = vpop.permute.xlu0 %1473  ;;  %1418 = vrot.lane.b32.xlu1 %v1416_v53, %s6036_s6 }
 0x26d   :  { %6118 = vst [vmem:[#allocation80_spill] sm:$0xff] %v4357_v10  ;;  %v5919_v10 = vstv %s4349_s13  ;;  %s4399_s13 = sld [smem:[#allocation13 + $0x3b]] }
 0x26e   :  { %1940 = vrot.lane.b32.xlu0 %v1936_v54, %s6027_s7  ;;  %v4364_v25 = vpop.permute.xlu1 %961  ;;  %v6125_v54 = vstv %s3941_s1  ;;  %v1966_v1 = vmul.f32 0.0, %v5919_v10  ;;  %s6130_s1 = sld [smem:[#allocation42_spill]] }
 0x26f   :  { %6120 = vst [vmem:[#allocation81_spill] sm:$0xff] %v4364_v25  ;;  %v1470_v7 = vmul.f32 %v6125_v54, %v4280_v34  ;;  %6126 = sst [smem:[#allocation39_spill]] %s4385_s25 }
 0x270   :  { %v4369_v57 = vpop.permute.xlu0 %1488  ;;  %1436 = vrot.lane.b32.xlu1 %v1434_v39, %s6036_s6 }
 0x271   :  { %6122 = vst [vmem:[#allocation82_spill] sm:$0xff] %v4369_v57  ;;  %v5922_v57 = vstv %s4361_s15  ;;  %s4413_s15 = sld [smem:[#allocation13 + $0x5b]] }
 0x272   :  { %1955 = vrot.lane.b32.xlu0 %v1951_v56, %s6031_s14  ;;  %v4376_v53 = vpop.permute.xlu1 %976  ;;  %v1981_v54 = vmul.f32 0.0, %v5922_v57 }
 0x273   :  { %6124 = vst [vmem:[#allocation83_spill] sm:$0xff] %v4376_v53 }
 0x274   :  { %1475 = vrot.lane.b32.xlu1 %v1470_v7, %s6027_s7  ;;  %v4387_v39 = vpop.permute.xlu0 %1503  ;;  %v5923_v7 = vstv %s4373_s30  ;;  %v6137_v57 = vstv %s6130_s1  ;;  %s4425_s30 = sld [smem:[#allocation13 + $0x7b]] }
 0x275   :  { %6127 = vst [vmem:[#allocation84_spill] sm:$0xff] %v4387_v39  ;;  %s6143_s1 = sld [smem:[#allocation25_spill]] }
 0x276   :  { %1970 = vrot.lane.b32.xlu0 %v1966_v1, %s6031_s14  ;;  %v4390_v56 = vpop.permute.xlu1 %996  ;;  %v6132_v1 = vstv %s3962_s20  ;;  %s6138_s20 = sld [smem:[#allocation46_spill]] }
 0x277   :  { %6128 = vst [vmem:[#allocation85_spill] sm:$0xff] %v4390_v56  ;;  %v1500_v39 = vmul.f32 %v6132_v1, %v4280_v34  ;;  %v1996_v56 = vmul.f32 0.0, %v5923_v7  ;;  %6135 = sst [smem:[#allocation42_spill]] %s4413_s15  ;;  %v1515_v1 = vmul.f32 %v6137_v57, %v4280_v34 }
 0x278   :  { %1490 = vrot.lane.b32.xlu1 %v1485_v3, %s6027_s7  ;;  %v4409_v42 = vpop.permute.xlu0 %1518  ;;  %v5927_v3 = vstv %s4385_s25  ;;  %s4439_s25 = sld [smem:[#allocation13 + $0x1c]] }
 0x279   :  { %6134 = vst [vmem:[#allocation87_spill] sm:$0xff] %v4409_v42  ;;  %v2011_v7 = vmul.f32 0.0, %v5927_v3  ;;  %v5929_v42 = vstv %s4399_s13 }
 0x27a   :  { %1985 = vrot.lane.b32.xlu0 %v1981_v54, %s6031_s14  ;;  %v4402_v10 = vpop.permute.xlu1 %1014  ;;  %6139 = sst [smem:[#allocation44_spill]] %s4425_s30  ;;  %v2026_v57 = vmul.f32 0.0, %v5929_v42 }
 0x27b   :  { %6131 = vst [vmem:[#allocation86_spill] sm:$0xff] %v4402_v10  ;;  %v6142_v10 = vstv %s6133_s28  ;;  %s4453_s28 = sld [smem:[#allocation13 + $0x3c]]  ;;  %v6148_v42 = vstv %s6143_s1 }
 0x27c   :  { %1505 = vrot.lane.b32.xlu1 %v1500_v39, %s6027_s7  ;;  %v4427_v39 = vpop.permute.xlu0 %1533  ;;  %v1530_v15 = vmul.f32 %v6142_v10, %v4280_v34  ;;  %s6153_s1 = sld [smem:[#allocation27_spill]] }
 0x27d   :  { %6140 = vst [vmem:[#allocation89_spill] sm:$0xff] %v4427_v39 }
 0x27e   :  { %2000 = vrot.lane.b32.xlu0 %v1996_v56, %s6031_s14  ;;  %v4416_v54 = vpop.permute.xlu1 %1053 }
 0x27f   :  { %6136 = vst [vmem:[#allocation88_spill] sm:$0xff] %v4416_v54 }
 0x280   :  { %1520 = vrot.lane.b32.xlu1 %v1515_v1, %s6027_s7  ;;  %v5930_v1 = vstv %s4413_s15  ;;  %v4449_v10 = vpop.permute.xlu0 %1548  ;;  %s4465_s15 = sld [smem:[#allocation13 + $0x5c]] }
 0x281   :  { %6146 = vst [vmem:[#allocation92_spill] sm:$0xff] %v4449_v10  ;;  %v5937_v10 = vstv %s4439_s25 }
 0x282   :  { %2015 = vrot.lane.b32.xlu0 %v2011_v7, %s6034_s4  ;;  %v4430_v56 = vpop.permute.xlu1 %1068  ;;  %v6145_v7 = vstv %s6138_s20  ;;  %s6149_s20 = sld [smem:[#allocation26_spill]] }
 0x283   :  { %6141 = vst [vmem:[#allocation90_spill] sm:$0xff] %v4430_v56  ;;  %v1545_v39 = vmul.f32 %v6145_v7, %v4280_v34  ;;  %v2041_v56 = vmul.f32 0.0, %v5930_v1  ;;  %v1560_v7 = vmul.f32 %v6148_v42, %v4280_v34  ;;  %v2071_v42 = vmul.f32 0.0, %v5937_v10 }
 0x284   :  { %1535 = vrot.lane.b32.xlu1 %v1530_v15, %s6031_s14  ;;  %v5935_v15 = vstv %s4425_s30  ;;  %s4479_s30 = sld [smem:[#allocation13 + $0x7c]]  ;;  %v6158_v10 = vstv %s6153_s1 }
 0x285   :  { %v2056_v1 = vmul.f32 0.0, %v5935_v15  ;;  %s4519_s1 = sld [smem:[#allocation13 + $0x5d]] }
 0x286   :  { %2030 = vrot.lane.b32.xlu0 %v2026_v57, %s6034_s4  ;;  %v4442_v3 = vpop.permute.xlu1 %1083 }
 0x287   :  { %6144 = vst [vmem:[#allocation91_spill] sm:$0xff] %v4442_v3 }
 0x288   :  { %1550 = vrot.lane.b32.xlu1 %v1545_v39, %s6031_s14  ;;  %v4467_v39 = vpop.permute.xlu0 %1563 }
 0x289   :  { %6150 = vst [vmem:[#allocation94_spill] sm:$0xff] %v4467_v39 }
 0x28a   :  { %2045 = vrot.lane.b32.xlu0 %v2041_v56, %s6034_s4  ;;  %v4456_v57 = vpop.permute.xlu1 %1098 }
 0x28b   :  { %6147 = vst [vmem:[#allocation93_spill] sm:$0xff] %v4456_v57  ;;  %v6152_v57 = vstv %s4018_s22  ;;  %s4493_s22 = sld [smem:[#allocation13 + $0x1d]] }
 0x28c   :  { %1565 = vrot.lane.b32.xlu1 %v1560_v7, %s6031_s14  ;;  %v1575_v3 = vmul.f32 %v6152_v57, %v4280_v34  ;;  %v5938_v7 = vstv %s4453_s28  ;;  %v4489_v57 = vpop.permute.xlu0 %1578 }
 0x28d   :  { %6156 = vst [vmem:[#allocation97_spill] sm:$0xff] %v4489_v57  ;;  %v5943_v57 = vstv %s4479_s30 }
 0x28e   :  { %2060 = vrot.lane.b32.xlu0 %v2056_v1, %s6034_s4  ;;  %v4470_v56 = vpop.permute.xlu1 %1113  ;;  %v6155_v1 = vstv %s6149_s20  ;;  %s4505_s20 = sld [smem:[#allocation13 + $0x3d]] }
 0x28f   :  { %6151 = vst [vmem:[#allocation95_spill] sm:$0xff] %v4470_v56  ;;  %v1590_v39 = vmul.f32 %v6155_v1, %v4280_v34  ;;  %v2086_v56 = vmul.f32 0.0, %v5938_v7  ;;  %v1605_v1 = vmul.f32 %v6158_v10, %v4280_v34  ;;  %v2116_v10 = vmul.f32 0.0, %v5943_v57 }
 0x290   :  { %1580 = vrot.lane.b32.xlu1 %v1575_v3, %s6031_s14  ;;  %v5941_v3 = vstv %s4465_s15  ;;  %v6167_v57 = vstv %s4086_s17  ;;  %s4559_s17 = sld [smem:[#allocation13 + $0x3e]] }
 0x291   :  { %v2101_v7 = vmul.f32 0.0, %v5941_v3 }
 0x292   :  { %2075 = vrot.lane.b32.xlu0 %v2071_v42, %s6040_s0  ;;  %v4482_v15 = vpop.permute.xlu1 %1128 }
 0x293   :  { %6154 = vst [vmem:[#allocation96_spill] sm:$0xff] %v4482_v15 }
 0x294   :  { %1595 = vrot.lane.b32.xlu1 %v1590_v39, %s6034_s4  ;;  %v4507_v39 = vpop.permute.xlu0 %1593 }
 0x295   :  { %6159 = vst [vmem:[#allocation99_spill] sm:$0xff] %v4507_v39 }
 0x296   :  { %2090 = vrot.lane.b32.xlu0 %v2086_v56, %s6040_s0  ;;  %v4496_v42 = vpop.permute.xlu1 %1143 }
 0x297   :  { %6157 = vst [vmem:[#allocation98_spill] sm:$0xff] %v4496_v42  ;;  %v6161_v42 = vstv %s4058_s2  ;;  %s4533_s2 = sld [smem:[#allocation13 + $0x7d]] }
 0x298   :  { %1610 = vrot.lane.b32.xlu1 %v1605_v1, %s6034_s4  ;;  %v1620_v15 = vmul.f32 %v6161_v42, %v4280_v34  ;;  %v5944_v1 = vstv %s4493_s22  ;;  %v4529_v42 = vpop.permute.xlu0 %1608 }
 0x299   :  { %6164 = vst [vmem:[#allocation102_spill] sm:$0xff] %v4529_v42  ;;  %v5949_v42 = vstv %s4519_s1 }
 0x29a   :  { %2105 = vrot.lane.b32.xlu0 %v2101_v7, %s6040_s0  ;;  %v4510_v56 = vpop.permute.xlu1 %1158  ;;  %v6163_v7 = vstv %s4072_s16  ;;  %s4545_s16 = sld [smem:[#allocation13 + $0x1e]] }
 0x29b   :  { %6160 = vst [vmem:[#allocation100_spill] sm:$0xff] %v4510_v56  ;;  %v1635_v39 = vmul.f32 %v6163_v7, %v4280_v34  ;;  %v2131_v56 = vmul.f32 0.0, %v5944_v1  ;;  %v1650_v7 = vmul.f32 %v6167_v57, %v4280_v34  ;;  %v2161_v57 = vmul.f32 0.0, %v5949_v42 }
 0x29c   :  { %1625 = vrot.lane.b32.xlu1 %v1620_v15, %s6034_s4  ;;  %v5947_v15 = vstv %s4505_s20  ;;  %v6175_v42 = vstv %s4128_s19  ;;  %s2995_s19 = sld [smem:[#allocation13 + $0x1f]] }
 0x29d   :  { %6165 = sst [smem:[#allocation46_spill]] %s4533_s2  ;;  %v2146_v1 = vmul.f32 0.0, %v5947_v15 }
 0x29e   :  { %2120 = vrot.lane.b32.xlu0 %v2116_v10, %s6040_s0  ;;  %v4522_v3 = vpop.permute.xlu1 %1173 }
 0x29f   :  { %6162 = vst [vmem:[#allocation101_spill] sm:$0xff] %v4522_v3 }
 0x2a0   :  { %1640 = vrot.lane.b32.xlu1 %v1635_v39, %s6034_s4  ;;  %v4547_v39 = vpop.permute.xlu0 %1623 }
 0x2a1   :  { %6168 = vst [vmem:[#allocation104_spill] sm:$0xff] %v4547_v39 }
 0x2a2   :  { %2135 = vrot.lane.b32.xlu0 %v2131_v56, %s6043_s24  ;;  %v4536_v10 = vpop.permute.xlu1 %1188 }
 0x2a3   :  { %6166 = vst [vmem:[#allocation103_spill] sm:$0xff] %v4536_v10  ;;  %v6170_v10 = vstv %s4100_s18  ;;  %s4573_s18 = sld [smem:[#allocation13 + $0x5e]] }
 0x2a4   :  { %1655 = vrot.lane.b32.xlu1 %v1650_v7, %s6040_s0  ;;  %v1665_v3 = vmul.f32 %v6170_v10, %v4280_v34  ;;  %v5950_v7 = vstv %s4533_s2  ;;  %v4569_v10 = vpop.permute.xlu0 %1638  ;;  %s4585_s2 = sld [smem:[#allocation13 + $0x7e]] }
 0x2a5   :  { %6173 = vst [vmem:[#allocation107_spill] sm:$0xff] %v4569_v10  ;;  %v5957_v10 = vstv %s4559_s17 }
 0x2a6   :  { %2150 = vrot.lane.b32.xlu0 %v2146_v1, %s6043_s24  ;;  %v4550_v56 = vpop.permute.xlu1 %1203  ;;  %v6172_v1 = vstv %s4114_s5  ;;  %s6176_s5 = sld [smem:[#allocation28_spill]] }
 0x2a7   :  { %6169 = vst [vmem:[#allocation105_spill] sm:$0xff] %v4550_v56  ;;  %v1680_v39 = vmul.f32 %v6172_v1, %v4280_v34  ;;  %v2176_v56 = vmul.f32 0.0, %v5950_v7  ;;  %v1695_v1 = vmul.f32 %v6175_v42, %v4280_v34  ;;  %v2206_v42 = vmul.f32 0.0, %v5957_v10 }
 0x2a8   :  { %1670 = vrot.lane.b32.xlu1 %v1665_v3, %s6040_s0  ;;  %v5954_v3 = vstv %s4545_s16 }
 0x2a9   :  { %v2191_v7 = vmul.f32 0.0, %v5954_v3 }
 0x2aa   :  { %2165 = vrot.lane.b32.xlu0 %v2161_v57, %s6043_s24  ;;  %v4562_v15 = vpop.permute.xlu1 %1218 }
 0x2ab   :  { %6171 = vst [vmem:[#allocation106_spill] sm:$0xff] %v4562_v15  ;;  %v6179_v15 = vstv %s4142_s21  ;;  %s2997_s21 = sld [smem:[#allocation13 + $0x5f]] }
 0x2ac   :  { %1685 = vrot.lane.b32.xlu1 %v1680_v39, %s6040_s0  ;;  %v4587_v39 = vpop.permute.xlu0 %1653 }
 0x2ad   :  { %6177 = vst [vmem:[#allocation109_spill] sm:$0xff] %v4587_v39  ;;  %v6181_v39 = vstv %s6176_s5  ;;  %s6186_s5 = sld [smem:[#allocation29_spill]] }
 0x2ae   :  { %2180 = vrot.lane.b32.xlu0 %v2176_v56, %s6043_s24  ;;  %v4576_v57 = vpop.permute.xlu1 %1233 }
 0x2af   :  { %6174 = vst [vmem:[#allocation108_spill] sm:$0xff] %v4576_v57  ;;  %v1710_v57 = vmul.f32 %v6179_v15, %v4280_v34  ;;  %v5960_v15 = vstv %s4585_s2 }
 0x2b0   :  { %1700 = vrot.lane.b32.xlu1 %v1695_v1, %s6040_s0  ;;  %v5959_v1 = vstv %s4573_s18  ;;  %v4607_v53 = vpop.permute.xlu0 %1668 }
 0x2b1   :  { %6182 = vst [vmem:[#allocation112_spill] sm:$0xff] %v4607_v53  ;;  %v6189_v53 = vstv %s4184_s9  ;;  %s2966_s9 = sld [smem:[#allocation13 + $0x77]] }
 0x2b2   :  { %2195 = vrot.lane.b32.xlu0 %v2191_v7, %s6047_s27  ;;  %v4590_v56 = vpop.permute.xlu1 %1248  ;;  %v1725_v7 = vmul.f32 %v6181_v39, %v4280_v34  ;;  %v4623_v39 = vsel %vm558_vm6, %v3747_v9, %v4046_v63  ;;  %v6191_v63 = vstv %s4198_s10  ;;  %s6206_s10 = sld [smem:[#allocation30_spill]] }
 0x2b3   :  { %6178 = vst [vmem:[#allocation110_spill] sm:$0xff] %v4590_v56  ;;  %v2221_v56 = vmul.f32 0.0, %v5959_v1  ;;  %6185 = vst [vmem:[#allocation114_spill] sm:$0xff] %v4623_v39 }
 0x2b4   :  { %1715 = vrot.lane.b32.xlu1 %v1710_v57, %s6043_s24  ;;  %v4625_v1 = vpop.permute.xlu0 %1683 }
 0x2b5   :  { %6187 = vst [vmem:[#allocation115_spill] sm:$0xff] %v4625_v1  ;;  %v1770_v1 = vmul.f32 %v6191_v63, %v4280_v34 }
 0x2b6   :  { %2210 = vrot.lane.b32.xlu0 %v2206_v42, %s6047_s27  ;;  %v4600_v3 = vpop.permute.xlu1 %1263  ;;  %v6184_v42 = vstv %s4170_s8  ;;  %s2964_s8 = sld [smem:[#allocation13 + $0x37]] }
 0x2b7   :  { %6180 = vst [vmem:[#allocation111_spill] sm:$0xff] %v4600_v3  ;;  %v1740_v10 = vmul.f32 %v6184_v42, %v4280_v34  ;;  %v2236_v3 = vmul.f32 0.0, %v5960_v15  ;;  %v1755_v42 = vmul.f32 %v6189_v53, %v4280_v34  ;;  %v2268_v15 = vstv %s2997_s21  ;;  %s4896_s21 = sld [smem:[#allocation13 + $0x8]] }
 0x2b8   :  { %1730 = vrot.lane.b32.xlu1 %v1725_v7, %s6043_s24  ;;  %v2250_v7 = vstv %s2995_s19  ;;  %v2269_v53 = vmul.f32 %v2268_v15, %v4623_v39  ;;  %s4892_s19 = sld [smem:[#allocation13 + $0x68]] }
 0x2ba   :  { %2225 = vrot.lane.b32.xlu0 %v2221_v56, %s6047_s27  ;;  %v4612_v57 = vpop.permute.xlu1 %1278 }
 0x2bb   :  { %6183 = vst [vmem:[#allocation113_spill] sm:$0xff] %v4612_v57  ;;  %v4641_v57 = vpop.permute.xlu0 %1698 }
 0x2bc   :  { %1745 = vrot.lane.b32.xlu1 %v1740_v10, %s6043_s24  ;;  %v2251_v10 = vmul.f32 %v2250_v7, %v4623_v39  ;;  %6192 = vst [vmem:[#allocation118_spill] sm:$0xff] %v4641_v57  ;;  %v6194_v7 = vstv %s6186_s5  ;;  %v1837_v57 = vstv %s2964_s8  ;;  %s4898_s5 = sld [smem:[#allocation13 + $0x48]] }
 0x2bd   :  { %s4904_s8 = sld [smem:[#allocation13 + $0x30]]  ;;  %v1022_v54 = vstv %s4896_s21 }
 0x2be   :  { %2240 = vrot.lane.b32.xlu0 %v2236_v3, %s6047_s27  ;;  %v4628_v56 = vpop.permute.xlu1 %1293  ;;  %v1040_v11 = vstv %s4892_s19  ;;  %v4964_v49 = vmul.f32 %v1022_v54, %v3939_v48  ;;  %s5573_s19 = sld [smem:[#allocation16 + $0x4]] }
 0x2bf   :  { %6188 = vst [vmem:[#allocation116_spill] sm:$0xff] %v4628_v56  ;;  %s5579_s21 = sld [smem:[#allocation16 + $0xc]] }
 0x2c0   :  { %1760 = vrot.lane.b32.xlu1 %v1755_v42, %s6043_s24  ;;  %v1785_v42 = vmul.f32 %v6194_v7, %v4280_v34  ;;  %v6199_v7 = vstv %s4240_s12  ;;  %s6212_s12 = sld [smem:[#allocation32_spill]] }
 0x2c2   :  { %2253 = vrot.lane.b32.xlu0 %v2251_v10, %s6036_s6  ;;  %v4636_v9 = vpop.permute.xlu1 %1308  ;;  %v4652_v10 = vpop.permute.xlu0 %1713  ;;  %v1034_v8 = vstv %s4898_s5  ;;  %s5585_s5 = sld [smem:[#allocation16 + $0x14]] }
 0x2c3   :  { %6190 = vst [vmem:[#allocation117_spill] sm:$0xff] %v4636_v9  ;;  %6195 = vst [vmem:[#allocation120_spill] sm:$0xff] %v4652_v10 }
 0x2c4   :  { %1775 = vrot.lane.b32.xlu1 %v1770_v1, %s6047_s27  ;;  %v6197_v1 = vstv %s4226_s11  ;;  %s6210_s11 = sld [smem:[#allocation31_spill]] }
 0x2c5   :  { %v1800_v15 = vmul.f32 %v6197_v1, %v4280_v34  ;;  %v1838_v1 = vmul.f32 %v1837_v57, %v4280_v34 }
 0x2c6   :  { %2271 = vrot.lane.b32.xlu0 %v2269_v53, %s6036_s6  ;;  %v4646_v3 = vpop.permute.xlu1 %1323  ;;  %v4669_v10 = vpop.permute.xlu0 %1728 }
 0x2c7   :  { %6193 = vst [vmem:[#allocation119_spill] sm:$0xff] %v4646_v3  ;;  %6200 = vst [vmem:[#allocation123_spill] sm:$0xff] %v4669_v10 }
 0x2c8   :  { %1790 = vrot.lane.b32.xlu1 %v1785_v42, %s6047_s27  ;;  %v1815_v42 = vmul.f32 %v6199_v7, %v4280_v34 }
 0x2ca   :  { %2286 = vrot.lane.b32.xlu0 %v3720_v20, %s6036_s6  ;;  %v4656_v63 = vpop.permute.xlu1 %1338  ;;  %v4676_v9 = vpop.permute.xlu0 %1743 }
 0x2cb   :  { %6196 = vst [vmem:[#allocation121_spill] sm:$0xff] %v4656_v63  ;;  %6202 = vst [vmem:[#allocation125_spill] sm:$0xff] %v4676_v9  ;;  %v6209_v9 = vstv %s4294_s26  ;;  %s6221_s26 = sld [smem:[#allocation39_spill]] }
 0x2cc   :  { %1805 = vrot.lane.b32.xlu1 %v1800_v15, %s6047_s27  ;;  %v1855_v15 = vstv %s2966_s9  ;;  %s4906_s9 = sld [smem:[#allocation13 + $0x70]] }
 0x2cd   :  { %v1856_v7 = vmul.f32 %v1855_v15, %v4280_v34 }
 0x2ce   :  { %2322 = vrot.lane.b32.xlu0 %v4280_v34, %s6036_s6  ;;  %v4664_v53 = vpop.permute.xlu1 %1353  ;;  %v4687_v57 = vpop.permute.xlu0 %1758 }
 0x2cf   :  { %6198 = vst [vmem:[#allocation122_spill] sm:$0xff] %v4664_v53  ;;  %6207 = vst [vmem:[#allocation128_spill] sm:$0xff] %v4687_v57 }
 0x2d0   :  { %1820 = vrot.lane.b32.xlu1 %v1815_v42, %s6047_s27  ;;  %v6205_v42 = vstv %s4282_s3  ;;  %s6217_s3 = sld [smem:[#allocation33_spill]] }
 0x2d2   :  { %v4672_v63 = vpop.permute.xlu1 %1368  ;;  %v4696_v15 = vpop.permute.xlu0 %1773 }
 0x2d3   :  { %6201 = vst [vmem:[#allocation124_spill] sm:$0xff] %v4672_v63  ;;  %v1892_v63 = vmul.f32 %v6205_v42, %v4623_v39  ;;  %6211 = vst [vmem:[#allocation130_spill] sm:$0xff] %v4696_v15  ;;  %v6224_v15 = vstv %s6210_s11  ;;  %s4912_s11 = sld [smem:[#allocation13 + $0x50]] }
 0x2d4   :  { %1840 = vrot.lane.b32.xlu1 %v1838_v1, %s6036_s6 }
 0x2d6   :  { %v4678_v3 = vpop.permute.xlu1 %1383  ;;  %v4709_v53 = vpop.permute.xlu0 %1788 }
 0x2d7   :  { %6203 = vst [vmem:[#allocation126_spill] sm:$0xff] %v4678_v3  ;;  %v1907_v3 = vmul.f32 %v6209_v9, %v4623_v39  ;;  %6218 = vst [vmem:[#allocation133_spill] sm:$0xff] %v4709_v53 }
 0x2d8   :  { %1858 = vrot.lane.b32.xlu1 %v1856_v7, %s6036_s6 }
 0x2d9   :  { %v1456_v37 = vstv %s4912_s11  ;;  %s5609_s11 = sld [smem:[#allocation16 + $0x15]] }
 0x2da   :  { %v4682_v10 = vpop.permute.xlu1 %1398 }
 0x2db   :  { %6204 = vst [vmem:[#allocation127_spill] sm:$0xff] %v4682_v10  ;;  %v6214_v10 = vstv %s4307_s29  ;;  %s6227_s29 = sld [smem:[#allocation42_spill]] }
 0x2dc   :  { %1897 = vrot.lane.b32.xlu1 %v1892_v63, %s6027_s7  ;;  %v1922_v42 = vmul.f32 %v6214_v10, %v4623_v39  ;;  %v6216_v63 = vstv %s4321_s23  ;;  %v4718_v10 = vpop.permute.xlu0 %1803  ;;  %s6231_s23 = sld [smem:[#allocation44_spill]] }
 0x2dd   :  { %6222 = vst [vmem:[#allocation135_spill] sm:$0xff] %v4718_v10 }
 0x2de   :  { %v4690_v1 = vpop.permute.xlu1 %1418 }
 0x2df   :  { %6208 = vst [vmem:[#allocation129_spill] sm:$0xff] %v4690_v1  ;;  %v1937_v1 = vmul.f32 %v6216_v63, %v4623_v39  ;;  %v1967_v63 = vmul.f32 %v6224_v15, %v4623_v39 }
 0x2e0   :  { %1912 = vrot.lane.b32.xlu1 %v1907_v3, %s6027_s7  ;;  %v6220_v3 = vstv %s6206_s10  ;;  %s4910_s10 = sld [smem:[#allocation13 + $0x10]] }
 0x2e2   :  { %v4698_v7 = vpop.permute.xlu1 %1436 }
 0x2e3   :  { %6213 = vst [vmem:[#allocation131_spill] sm:$0xff] %v4698_v7  ;;  %v1952_v7 = vmul.f32 %v6220_v3, %v4623_v39  ;;  %v6230_v3 = vstv %s6217_s3  ;;  %s4918_s3 = sld [smem:[#allocation13 + $0x78]] }
 0x2e4   :  { %1927 = vrot.lane.b32.xlu1 %v1922_v42, %s6027_s7  ;;  %v1997_v10 = vmul.f32 %v6230_v3, %v4623_v39  ;;  %v6239_v3 = vstv %s6227_s29  ;;  %s4926_s29 = sld [smem:[#allocation13 + $0x58]] }
 0x2e6   :  { %v4704_v57 = vpop.permute.xlu1 %1475  ;;  %v1444_v46 = vstv %s4910_s10  ;;  %s5603_s10 = sld [smem:[#allocation16 + $0xd]] }
 0x2e7   :  { %6215 = vst [vmem:[#allocation132_spill] sm:$0xff] %v4704_v57  ;;  %v4731_v57 = vpop.permute.xlu0 %1818 }
 0x2e8   :  { %1942 = vrot.lane.b32.xlu1 %v1937_v1, %s6027_s7  ;;  %v6226_v1 = vstv %s6212_s12  ;;  %6228 = vst [vmem:[#allocation138_spill] sm:$0xff] %v4731_v57  ;;  %s4914_s12 = sld [smem:[#allocation13 + $0x38]] }
 0x2e9   :  { %v1884_v45 = vstv %s4918_s3  ;;  %s5621_s3 = sld [smem:[#allocation16 + $0x6]] }
 0x2ea   :  { %v4712_v9 = vpop.permute.xlu1 %1490  ;;  %v1878_v40 = vstv %s4926_s29  ;;  %s5633_s29 = sld [smem:[#allocation16 + $0x16]] }
 0x2eb   :  { %6219 = vst [vmem:[#allocation134_spill] sm:$0xff] %v4712_v9  ;;  %v1982_v9 = vmul.f32 %v6226_v1, %v4623_v39  ;;  %v4740_v15 = vpop.permute.xlu0 %1831 }
 0x2ec   :  { %1957 = vrot.lane.b32.xlu1 %v1952_v7, %s6031_s14  ;;  %6232 = vst [vmem:[#allocation140_spill] sm:$0xff] %v4740_v15  ;;  %v2042_v15 = vmul.f32 %v6239_v3, %v4623_v39  ;;  %v6247_v3 = vstv %s4453_s28  ;;  %s4866_s28 = sld [smem:[#allocation13]] }
 0x2ee   :  { %v4720_v42 = vpop.permute.xlu1 %1505 }
 0x2ef   :  { %6223 = vst [vmem:[#allocation136_spill] sm:$0xff] %v4720_v42 }
 0x2f0   :  { %1972 = vrot.lane.b32.xlu1 %v1967_v63, %s6031_s14  ;;  %6439 = sst [smem:[#allocation26_spill]] %s5633_s29 }
 0x2f2   :  { %v4726_v53 = vpop.permute.xlu1 %1520 }
 0x2f3   :  { %6225 = vst [vmem:[#allocation137_spill] sm:$0xff] %v4726_v53  ;;  %v6234_v53 = vstv %s6221_s26  ;;  %s4922_s26 = sld [smem:[#allocation13 + $0x18]] }
 0x2f4   :  { %1987 = vrot.lane.b32.xlu1 %v1982_v9, %s6031_s14  ;;  %v2012_v1 = vmul.f32 %v6234_v53, %v4623_v39  ;;  %v6236_v9 = vstv %s4399_s13  ;;  %s2996_s13 = sld [smem:[#allocation13 + $0x3f]] }
 0x2f5   :  { %v2027_v42 = vmul.f32 %v6236_v9, %v4623_v39 }
 0x2f6   :  { %v4734_v7 = vpop.permute.xlu1 %1535 }
 0x2f7   :  { %6229 = vst [vmem:[#allocation139_spill] sm:$0xff] %v4734_v7  ;;  %v4753_v7 = vpop.permute.xlu0 %1849 }
 0x2f8   :  { %2002 = vrot.lane.b32.xlu1 %v1997_v10, %s6031_s14  ;;  %6237 = vst [vmem:[#allocation143_spill] sm:$0xff] %v4753_v7 }
 0x2fa   :  { %v4742_v63 = vpop.permute.xlu1 %1550 }
 0x2fb   :  { %6233 = vst [vmem:[#allocation141_spill] sm:$0xff] %v4742_v63  ;;  %v4762_v53 = vpop.permute.xlu0 %1895 }
 0x2fc   :  { %2017 = vrot.lane.b32.xlu1 %v2012_v1, %s6034_s4  ;;  %6240 = vst [vmem:[#allocation145_spill] sm:$0xff] %v4762_v53  ;;  %v2087_v53 = vmul.f32 %v6247_v3, %v4623_v39  ;;  %v6256_v3 = vstv %s4493_s22  ;;  %s4871_s22 = sld [smem:[#allocation14 + $0x1]] }
 0x2fe   :  { %v4748_v57 = vpop.permute.xlu1 %1565 }
 0x2ff   :  { %6235 = vst [vmem:[#allocation142_spill] sm:$0xff] %v4748_v57  ;;  %v6242_v57 = vstv %s6231_s23  ;;  %v4775_v63 = vpop.permute.xlu0 %1910  ;;  %s6430_s23 = smov 56  }
 0x300   :  { %2032 = vrot.lane.b32.xlu1 %v2027_v42, %s6034_s4  ;;  %v2057_v9 = vmul.f32 %v6242_v57, %v4623_v39  ;;  %v6244_v42 = vstv %s4439_s25  ;;  %6245 = vst [vmem:[#allocation148_spill] sm:$0xff] %v4775_v63  ;;  %s6253_s25 = sld [smem:[#allocation46_spill]] }
 0x302   :  { %v4756_v10 = vpop.permute.xlu1 %1580 }
 0x303   :  { %6238 = vst [vmem:[#allocation144_spill] sm:$0xff] %v4756_v10  ;;  %v2072_v10 = vmul.f32 %v6244_v42, %v4623_v39  ;;  %v4784_v57 = vpop.permute.xlu0 %1925 }
 0x304   :  { %2047 = vrot.lane.b32.xlu1 %v2042_v15, %s6034_s4  ;;  %6248 = vst [vmem:[#allocation150_spill] sm:$0xff] %v4784_v57  ;;  %v2132_v57 = vmul.f32 %v6256_v3, %v4623_v39 }
 0x306   :  { %v4764_v1 = vpop.permute.xlu1 %1595  ;;  %v6264_v3 = vstv %s6253_s25  ;;  %s5503_s25 = sld [smem:[#allocation16 + $0x1]] }
 0x307   :  { %6241 = vst [vmem:[#allocation146_spill] sm:$0xff] %v4764_v1  ;;  %v4797_v1 = vpop.permute.xlu0 %1940 }
 0x308   :  { %2062 = vrot.lane.b32.xlu1 %v2057_v9, %s6034_s4  ;;  %6254 = vst [vmem:[#allocation153_spill] sm:$0xff] %v4797_v1 }
 0x30a   :  { %v4770_v7 = vpop.permute.xlu1 %1610 }
 0x30b   :  { %6243 = vst [vmem:[#allocation147_spill] sm:$0xff] %v4770_v7  ;;  %v6250_v7 = vstv %s4465_s15  ;;  %s2998_s15 = sld [smem:[#allocation13 + $0x7f]] }
 0x30c   :  { %2077 = vrot.lane.b32.xlu1 %v2072_v10, %s6040_s0  ;;  %v2102_v42 = vmul.f32 %v6250_v7, %v4623_v39  ;;  %v6252_v10 = vstv %s4479_s30  ;;  %v4806_v7 = vpop.permute.xlu0 %1955  ;;  %s4864_s30 = sld [smem:[#allocation14]] }
 0x30d   :  { %6257 = vst [vmem:[#allocation155_spill] sm:$0xff] %v4806_v7 }
 0x30e   :  { %v4778_v15 = vpop.permute.xlu1 %1625 }
 0x30f   :  { %6246 = vst [vmem:[#allocation149_spill] sm:$0xff] %v4778_v15  ;;  %v2117_v15 = vmul.f32 %v6252_v10, %v4623_v39 }
 0x310   :  { %2092 = vrot.lane.b32.xlu1 %v2087_v53, %s6040_s0 }
 0x312   :  { %v4786_v9 = vpop.permute.xlu1 %1640 }
 0x313   :  { %6249 = vst [vmem:[#allocation151_spill] sm:$0xff] %v4786_v9  ;;  %v6259_v9 = vstv %s4505_s20  ;;  %s4873_s20 = sld [smem:[#allocation13 + $0x20]] }
 0x314   :  { %2107 = vrot.lane.b32.xlu1 %v2102_v42, %s6040_s0  ;;  %v2147_v10 = vmul.f32 %v6259_v9, %v4623_v39 }
 0x316   :  { %v4792_v63 = vpop.permute.xlu1 %1655 }
 0x317   :  { %6251 = vst [vmem:[#allocation152_spill] sm:$0xff] %v4792_v63  ;;  %v4819_v63 = vpop.permute.xlu0 %1970 }
 0x318   :  { %2122 = vrot.lane.b32.xlu1 %v2117_v15, %s6040_s0  ;;  %v6261_v15 = vstv %s4519_s1  ;;  %6262 = vst [vmem:[#allocation158_spill] sm:$0xff] %v4819_v63  ;;  %s4876_s1 = sld [smem:[#allocation14 + $0x2]] }
 0x31a   :  { %v4800_v53 = vpop.permute.xlu1 %1670 }
 0x31b   :  { %6255 = vst [vmem:[#allocation154_spill] sm:$0xff] %v4800_v53  ;;  %v2162_v53 = vmul.f32 %v6261_v15, %v4623_v39  ;;  %v4828_v9 = vpop.permute.xlu0 %1985 }
 0x31c   :  { %2137 = vrot.lane.b32.xlu1 %v2132_v57, %s6043_s24  ;;  %6265 = vst [vmem:[#allocation160_spill] sm:$0xff] %v4828_v9 }
 0x31e   :  { %v4808_v42 = vpop.permute.xlu1 %1685 }
 0x31f   :  { %6258 = vst [vmem:[#allocation156_spill] sm:$0xff] %v4808_v42  ;;  %v2177_v42 = vmul.f32 %v6264_v3, %v4623_v39  ;;  %v6272_v3 = vstv %s4573_s18  ;;  %s4890_s18 = sld [smem:[#allocation13 + $0x28]] }
 0x320   :  { %2152 = vrot.lane.b32.xlu1 %v2147_v10, %s6043_s24  ;;  %v2222_v9 = vmul.f32 %v6272_v3, %v4623_v39 }
 0x322   :  { %v4814_v1 = vpop.permute.xlu1 %1700 }
 0x323   :  { %6260 = vst [vmem:[#allocation157_spill] sm:$0xff] %v4814_v1  ;;  %v6267_v1 = vstv %s4545_s16  ;;  %s4884_s16 = sld [smem:[#allocation14 + $0x3]] }
 0x324   :  { %2167 = vrot.lane.b32.xlu1 %v2162_v53, %s6043_s24  ;;  %v2192_v15 = vmul.f32 %v6267_v1, %v4623_v39  ;;  %v6269_v53 = vstv %s4559_s17  ;;  %s4886_s17 = sld [smem:[#allocation13 + $0x60]] }
 0x325   :  { %v2207_v7 = vmul.f32 %v6269_v53, %v4623_v39 }
 0x326   :  { %v4822_v57 = vpop.permute.xlu1 %1715 }
 0x327   :  { %6263 = vst [vmem:[#allocation159_spill] sm:$0xff] %v4822_v57  ;;  %v4841_v57 = vpop.permute.xlu0 %2000 }
 0x328   :  { %2182 = vrot.lane.b32.xlu1 %v2177_v42, %s6043_s24  ;;  %6270 = vst [vmem:[#allocation163_spill] sm:$0xff] %v4841_v57 }
 0x32a   :  { %v4830_v10 = vpop.permute.xlu1 %1730 }
 0x32b   :  { %6266 = vst [vmem:[#allocation161_spill] sm:$0xff] %v4830_v10  ;;  %v4850_v1 = vpop.permute.xlu0 %2015  ;;  %v6275_v10 = vstv %s4585_s2  ;;  %s4878_s2 = sld [smem:[#allocation13 + $0x40]] }
 0x32c   :  { %2197 = vrot.lane.b32.xlu1 %v2192_v15, %s6047_s27  ;;  %6273 = vst [vmem:[#allocation165_spill] sm:$0xff] %v4850_v1  ;;  %v2237_v53 = vmul.f32 %v6275_v10, %v4623_v39  ;;  %v618_v1 = vstv %s4886_s17  ;;  %s5561_s17 = sld [smem:[#allocation16 + $0x13]] }
 0x32d   :  { %v620_v22 = vmul.f32 %v618_v1, %v3720_v20 }
 0x32e   :  { %v4836_v63 = vpop.permute.xlu1 %1745 }
 0x32f   :  { %6268 = vst [vmem:[#allocation162_spill] sm:$0xff] %v4836_v63  ;;  %v2259_v63 = vstv %s2996_s13  ;;  %v4861_v56 = vpop.permute.xlu0 %2030  ;;  %s5507_s13 = sld [smem:[#allocation16 + $0x9]] }
 0x330   :  { %2212 = vrot.lane.b32.xlu1 %v2207_v7, %s6047_s27  ;;  %v2260_v7 = vmul.f32 %v2259_v63, %v4623_v39  ;;  %6277 = vst [vmem:[#allocation168_spill] sm:$0xff] %v4861_v56  ;;  %v590_v56 = vstv %s4864_s30  ;;  %s5519_s30 = sld [smem:[#allocation16 + $0x19]] }
 0x332   :  { %v4844_v42 = vpop.permute.xlu1 %1760 }
 0x333   :  { %6271 = vst [vmem:[#allocation164_spill] sm:$0xff] %v4844_v42  ;;  %v2277_v42 = vstv %s2998_s15  ;;  %v4880_v63 = vpop.permute.xlu0 %2045  ;;  %s5512_s15 = sld [smem:[#allocation16 + $0x11]] }
 0x334   :  { %2227 = vrot.lane.b32.xlu1 %v2222_v9, %s6047_s27  ;;  %v2278_v10 = vmul.f32 %v2277_v42, %v4623_v39  ;;  %6279 = vst [vmem:[#allocation170_spill] sm:$0xff] %v4880_v63  ;;  %v600_v63 = vstv %s4866_s28  ;;  %s5525_s28 = sld [smem:[#allocation16 + $0x2]] }
 0x336   :  { %v4852_v15 = vpop.permute.xlu1 %1775 }
 0x337   :  { %6274 = vst [vmem:[#allocation166_spill] sm:$0xff] %v4852_v15  ;;  %v602_v15 = vmul.f32 %v600_v63, %v3720_v20 }
 0x338   :  { %2242 = vrot.lane.b32.xlu1 %v2237_v53, %s6047_s27  ;;  %v4900_v53 = vpop.permute.xlu0 %2060 }
 0x339   :  { %6282 = vst [vmem:[#allocation173_spill] sm:$0xff] %v4900_v53  ;;  %v604_v41 = vadd.f32 %v602_v15, %v590_v56 }
 0x33a   :  { %v4858_v57 = vpop.permute.xlu1 %1790 }
 0x33b   :  { %6276 = vst [vmem:[#allocation167_spill] sm:$0xff] %v4858_v57  ;;  %v612_v57 = vstv %s4878_s2  ;;  %v637_v27 = vadd.f32 %v4061_v60, %v604_v41  ;;  %s5549_s2 = sld [smem:[#allocation16 + $0x3]] }
 0x33c   :  { %2262 = vrot.lane.b32.xlu1 %v2260_v7, %s6036_s6  ;;  %v613_v12 = vmul.f32 0.0, %v612_v57  ;;  %v614_v5 = vmul.f32 %v612_v57, %v3720_v20 }
 0x33d   :  { %v697_v41 = vadd.f32 %v4117_v50, %v637_v27 }
 0x33e   :  { %v4868_v9 = vpop.permute.xlu1 %1805 }
 0x33f   :  { %6278 = vst [vmem:[#allocation169_spill] sm:$0xff] %v4868_v9  ;;  %v601_v9 = vmul.f32 0.0, %v600_v63  ;;  %v757_v27 = vadd.f32 %v4173_v4, %v697_v41 }
 0x340   :  { %2280 = vrot.lane.b32.xlu1 %v2278_v10, %s6036_s6  ;;  %v4916_v10 = vpop.permute.xlu0 %2075 }
 0x341   :  { %6284 = vst [vmem:[#allocation175_spill] sm:$0xff] %v4916_v10  ;;  %v596_v10 = vstv %s4884_s16  ;;  %v603_v63 = vadd.f32 %v601_v9, %v590_v56  ;;  %s5555_s16 = sld [smem:[#allocation16 + $0xb]] }
 0x342   :  { %v4882_v3 = vpop.permute.xlu1 %1820  ;;  %v622_v15 = vadd.f32 %v620_v22, %v596_v10  ;;  %v648_v22 = vsel %vm160_vm0, %v3677_v18, %v4075_v2 }
 0x343   :  { %6280 = vst [vmem:[#allocation171_spill] sm:$0xff] %v4882_v3  ;;  %v594_v3 = vstv %s4876_s1  ;;  %s5543_s1 = sld [smem:[#allocation16 + $0x1a]] }
 0x344   :  { %2304 = vrot.lane.b32.xlu1 %v3939_v48, %s6036_s6  ;;  %v4943_v25 = vpop.permute.xlu0 %2090  ;;  %v615_v29 = vadd.f32 %v613_v12, %v594_v3  ;;  %v616_v9 = vadd.f32 %v614_v5, %v594_v3  ;;  %v753_v5 = vsel %vm282_vm2, %v3794_v32, %v4173_v4  ;;  %v663_v32 = vsel %vm160_vm0, %v3688_v30, %v4089_v13 }
 0x345   :  { %6287 = vst [vmem:[#allocation178_spill] sm:$0xff] %v4943_v25  ;;  %v1866_v25 = vstv %s4922_s26  ;;  %v678_v30 = vsel %vm160_vm0, %v3699_v16, %v4103_v33  ;;  %v817_v4 = vadd.f32 %v4229_v31, %v757_v27  ;;  %v723_v16 = vsel %vm221_vm1, %v3770_v26, %v4145_v58  ;;  %s5627_s26 = sld [smem:[#allocation16 + $0xe]] }
 0x346   :  { %v4894_v42 = vpop.permute.xlu1 %1840  ;;  %v768_v26 = vsel %vm282_vm2, %v3806_v44, %v4187_v51  ;;  %v6289_v44 = vld [vmem:[#allocation24_spill] sm:$0xff] }
 0x347   :  { %6281 = vst [vmem:[#allocation172_spill] sm:$0xff] %v4894_v42  ;;  %v606_v42 = vstv %s4873_s20  ;;  %s5537_s20 = sld [smem:[#allocation16 + $0x12]] }
 0x348   :  { %2340 = vrot.lane.b32.xlu1 %v4623_v39, %s6036_s6  ;;  %v1028_v39 = vstv %s4890_s18  ;;  %v607_v43 = vmul.f32 0.0, %v606_v42  ;;  %v608_v19 = vmul.f32 %v606_v42, %v3720_v20  ;;  %v633_v42 = vsel %vm160_vm0, %v3666_v62, %v4061_v60  ;;  %s5567_s18 = sld [smem:[#allocation16 + $0x1b]] }
 0x349   :  { %v636_v56 = vadd.f32 %v633_v42, %v603_v63  ;;  %v4967_v62 = vmul.f32 %v1028_v39, %v3939_v48  ;;  %v4981_v60 = vmul.f32 %v1040_v11, %v3939_v48  ;;  %v4986_v3 = vmul.f32 0.0, %v1028_v39 }
 0x34a   :  { %v4908_v7 = vpop.permute.xlu1 %1858 }
 0x34b   :  { %6283 = vst [vmem:[#allocation174_spill] sm:$0xff] %v4908_v7  ;;  %v592_v7 = vstv %s4871_s22  ;;  %s5531_s22 = sld [smem:[#allocation16 + $0xa]] }
 0x34c   :  { %v609_v47 = vadd.f32 %v607_v43, %v592_v7  ;;  %v610_v57 = vadd.f32 %v608_v19, %v592_v7  ;;  %v4969_v19 = vpop.permute.xlu0 %2105  ;;  %v5003_v7 = vmul.f32 0.0, %v1040_v11  ;;  %v682_v11 = vadd.f32 %v4103_v33, %v622_v15 }
 0x34d   :  { %v738_v33 = vsel %vm221_vm1, %v3782_v0, %v4159_v17 }
 0x34e   :  { %v4920_v53 = vpop.permute.xlu1 %1897  ;;  %v652_v18 = vadd.f32 %v4075_v2, %v610_v57  ;;  %v651_v42 = vadd.f32 %v648_v22, %v609_v47  ;;  %v667_v2 = vadd.f32 %v4089_v13, %v616_v9  ;;  %v708_v47 = vsel %vm221_vm1, %v3757_v28, %v4131_v59 }
 0x34f   :  { %6285 = vst [vmem:[#allocation176_spill] sm:$0xff] %v4920_v53 }
 0x350   :  { %v5018_v57 = vpop.permute.xlu0 %2120  ;;  %v712_v13 = vadd.f32 %v4131_v59, %v652_v18  ;;  %v727_v28 = vadd.f32 %v4145_v58, %v667_v2  ;;  %v711_v59 = vadd.f32 %v708_v47, %v651_v42  ;;  %v798_v58 = vsel %vm282_vm2, %v3830_v6, %v4215_v14  ;;  %v6293_v42 = vld [vmem:[#allocation36_spill] sm:$0xff] }
 0x352   :  { %v4935_v53 = vpop.permute.xlu1 %1912  ;;  %v787_v41 = vadd.f32 %v4201_v24, %v727_v28 }
 0x353   :  { %6286 = vst [vmem:[#allocation177_spill] sm:$0xff] %v4935_v53  ;;  %v619_v53 = vmul.f32 0.0, %v618_v1  ;;  %v693_v1 = vsel %vm221_vm1, %v3708_v36, %v4117_v50  ;;  %v4978_v36 = vmul.f32 %v1034_v8, %v3939_v48  ;;  %v4991_v50 = vmul.f32 %v1444_v46, %v4280_v34 }
 0x354   :  { %v696_v43 = vadd.f32 %v693_v1, %v636_v56  ;;  %v813_v48 = vsel %vm343_vm3, %v3842_v21, %v4229_v31  ;;  %v873_v21 = vsel %vm404_vm4, %v3890_v23, %v4285_v61  ;;  %v877_v31 = vadd.f32 %v4285_v61, %v817_v4  ;;  %v5054_v27 = vpop.permute.xlu0 %2135  ;;  %v6294_v4 = vld [vmem:[#allocation54_spill] sm:$0xff] }
 0x355   :  { %v621_v20 = vadd.f32 %v619_v53, %v596_v10  ;;  %v5000_v53 = vmul.f32 0.0, %v1022_v54  ;;  %v5005_v10 = vmul.f32 0.0, %v1034_v8  ;;  %v666_v54 = vadd.f32 %v663_v32, %v615_v29 }
 0x356   :  { %v4951_v52 = vpop.permute.xlu1 %1927  ;;  %v756_v39 = vadd.f32 %v753_v5, %v696_v43  ;;  %v933_v29 = vsel %vm465_vm5, %v3934_v55, %v4338_v35  ;;  %v783_v55 = vsel %vm282_vm2, %v3818_v38, %v4201_v24  ;;  %v937_v61 = vadd.f32 %v4338_v35, %v877_v31  ;;  %v6288_v5 = vld [vmem:[#allocation67_spill] sm:$0xff]  ;;  %v6291_v24 = vld [vmem:[#allocation23_spill] sm:$0xff] }
 0x357   :  { %v681_v23 = vadd.f32 %v678_v30, %v621_v20  ;;  %v726_v20 = vadd.f32 %v723_v16, %v666_v54  ;;  %v742_v56 = vadd.f32 %v4159_v17, %v682_v11  ;;  %v843_v22 = vsel %vm343_vm3, %v6289_v44, %v6288_v5  ;;  %v6295_v11 = vld [vmem:[#allocation69_spill] sm:$0xff]  ;;  %v6297_v16 = vld [vmem:[#allocation72_spill] sm:$0xff]  ;;  %v6298_v31 = vld [vmem:[#allocation35_spill] sm:$0xff] }
 0x358   :  { %v816_v8 = vadd.f32 %v813_v48, %v756_v39  ;;  %v771_v43 = vadd.f32 %v768_v26, %v711_v59  ;;  %v772_v38 = vadd.f32 %v4187_v51, %v712_v13  ;;  %v6290_v48 = vld [vmem:[#allocation65_spill] sm:$0xff]  ;;  %v847_v6 = vadd.f32 %v6288_v5, %v787_v41  ;;  %v6292_v39 = vld [vmem:[#allocation74_spill] sm:$0xff]  ;;  %v6305_v44 = vld [vmem:[#allocation88_spill] sm:$0xff] }
 0x359   :  { %v741_v15 = vadd.f32 %v738_v33, %v681_v23  ;;  %v786_v35 = vadd.f32 %v783_v55, %v726_v20  ;;  %v802_v32 = vadd.f32 %v4215_v14, %v742_v56  ;;  %v828_v18 = vsel %vm343_vm3, %v6291_v24, %v6290_v48  ;;  %v6299_v13 = vld [vmem:[#allocation81_spill] sm:$0xff]  ;;  %v6300_v33 = vld [vmem:[#allocation40_spill] sm:$0xff]  ;;  %v5093_v24 = vpop.permute.xlu0 %2150 }
 0x35a   :  { %v4971_v12 = vpop.permute.xlu1 %1942  ;;  %v876_v9 = vadd.f32 %v873_v21, %v816_v8  ;;  %v903_v30 = vsel %vm404_vm4, %v6293_v42, %v6292_v39  ;;  %v991_v21 = vadd.f32 %v6294_v4, %v937_v61  ;;  %v832_v54 = vadd.f32 %v6290_v48, %v772_v38  ;;  %v6296_v8 = vld [vmem:[#allocation34_spill] sm:$0xff]  ;;  %v6301_v61 = vld [vmem:[#allocation76_spill] sm:$0xff]  ;;  %v6302_v59 = vld [vmem:[#allocation37_spill] sm:$0xff] }
 0x35b   :  { %v801_v51 = vadd.f32 %v798_v58, %v741_v15  ;;  %v846_v14 = vadd.f32 %v843_v22, %v786_v35  ;;  %v858_v47 = vsel %vm343_vm3, %v6296_v8, %v6295_v11  ;;  %v907_v23 = vadd.f32 %v6292_v39, %v847_v6  ;;  %v6304_v15 = vld [vmem:[#allocation38_spill] sm:$0xff]  ;;  %v6306_v22 = vld [vmem:[#allocation43_spill] sm:$0xff]  ;;  %v6307_v6 = vld [vmem:[#allocation83_spill] sm:$0xff] }
 0x35c   :  { %v936_v0 = vadd.f32 %v933_v29, %v876_v9  ;;  %v888_v29 = vsel %vm404_vm4, %v6298_v31, %v6297_v16  ;;  %v963_v9 = vsel %vm465_vm5, %v6300_v33, %v6299_v13  ;;  %v831_v28 = vadd.f32 %v828_v18, %v771_v43  ;;  %v6308_v39 = vld [vmem:[#allocation41_spill] sm:$0xff]  ;;  %v6312_v31 = vld [vmem:[#allocation101_spill] sm:$0xff] }
 0x35d   :  { %v862_v26 = vadd.f32 %v6295_v11, %v802_v32  ;;  %v906_v55 = vadd.f32 %v903_v30, %v846_v14  ;;  %v918_v20 = vsel %vm404_vm4, %v6302_v59, %v6301_v61  ;;  %v967_v58 = vadd.f32 %v6299_v13, %v907_v23 }
 0x35e   :  { %v5007_v63 = vpop.permute.xlu1 %1957  ;;  %v990_v2 = vadd.f32 %v6294_v4, %v936_v0  ;;  %v6303_v0 = vld [vmem:[#allocation79_spill] sm:$0xff]  ;;  %v1026_v5 = vadd.f32 %v4964_v49, %v991_v21  ;;  %v1055_v43 = vsel %vm160_vm0, %v6306_v22, %v6305_v44  ;;  %v861_v38 = vadd.f32 %v858_v47, %v801_v51  ;;  %v6310_v4 = vld [vmem:[#allocation49_spill] sm:$0xff] }
 0x35f   :  { %v948_v41 = vsel %vm465_vm5, %v6304_v15, %v6303_v0  ;;  %v891_v35 = vadd.f32 %v888_v29, %v831_v28  ;;  %v966_v32 = vadd.f32 %v963_v9, %v906_v55  ;;  %v892_v18 = vadd.f32 %v6297_v16, %v832_v54  ;;  %v6309_v49 = vld [vmem:[#allocation95_spill] sm:$0xff]  ;;  %v6313_v29 = vld [vmem:[#allocation53_spill] sm:$0xff] }
 0x360   :  { %v1025_v48 = vadd.f32 %v5000_v53, %v990_v2  ;;  %v978_v42 = vsel %vm465_vm5, %v6308_v39, %v6307_v6  ;;  %v1059_v30 = vadd.f32 %v6305_v44, %v1026_v5  ;;  %v1115_v21 = vsel %vm221_vm1, %v6310_v4, %v6309_v49  ;;  %v6311_v2 = vld [vmem:[#allocation55_spill] sm:$0xff]  ;;  %v6314_v9 = vld [vmem:[#allocation85_spill] sm:$0xff] }
 0x361   :  { %v921_v14 = vadd.f32 %v918_v20, %v861_v38  ;;  %v922_v51 = vadd.f32 %v6301_v61, %v862_v26  ;;  %v951_v11 = vadd.f32 %v948_v41, %v891_v35  ;;  %v952_v54 = vadd.f32 %v6303_v0, %v892_v18  ;;  %v6315_v20 = vld [vmem:[#allocation108_spill] sm:$0xff]  ;;  %v6316_v0 = vld [vmem:[#allocation59_spill] sm:$0xff]  ;;  %v6317_v41 = vld [vmem:[#allocation86_spill] sm:$0xff]  ;;  %v5129_v35 = vpop.permute.xlu0 %2165 }
 0x362   :  { %v5034_v1 = vpop.permute.xlu1 %1972  ;;  %v1058_v8 = vadd.f32 %v1055_v43, %v1025_v48  ;;  %v1009_v47 = vadd.f32 %v6311_v2, %v967_v58  ;;  %v1119_v16 = vadd.f32 %v6309_v49, %v1059_v30  ;;  %v1175_v23 = vsel %vm282_vm2, %v6313_v29, %v6312_v31  ;;  %v6321_v39 = vld [vmem:[#allocation63_spill] sm:$0xff] }
 0x363   :  { %v1008_v13 = vadd.f32 %v6311_v2, %v966_v32  ;;  %v981_v33 = vadd.f32 %v978_v42, %v921_v14  ;;  %v999_v28 = vadd.f32 %v6314_v9, %v951_v11  ;;  %v982_v55 = vadd.f32 %v6307_v6, %v922_v51  ;;  %v6320_v6 = vld [vmem:[#allocation116_spill] sm:$0xff]  ;;  %v6322_v11 = vld [vmem:[#allocation90_spill] sm:$0xff] }
 0x364   :  { %v1118_v26 = vadd.f32 %v1115_v21, %v1058_v8  ;;  %v1000_v61 = vadd.f32 %v6314_v9, %v952_v54  ;;  %v1179_v59 = vadd.f32 %v6312_v31, %v1119_v16  ;;  %v1235_v15 = vsel %vm343_vm3, %v6316_v0, %v6315_v20  ;;  %v6323_v8 = vld [vmem:[#allocation45_spill] sm:$0xff] }
 0x365   :  { %v1017_v58 = vadd.f32 %v6317_v41, %v981_v33  ;;  %v6318_v44 = vstv %s4904_s8  ;;  %v6319_v43 = vstv %s4906_s9  ;;  %v1018_v48 = vadd.f32 %v6317_v41, %v982_v55  ;;  %v6324_v16 = vld [vmem:[#allocation122_spill] sm:$0xff] }
 0x366   :  { %v5056_v17 = vpop.permute.xlu1 %1987  ;;  %v1178_v5 = vadd.f32 %v1175_v23, %v1118_v26  ;;  %v5123_v22 = vmul.f32 0.0, %v6318_v44  ;;  %v5127_v38 = vmul.f32 0.0, %v6319_v43  ;;  %v1239_v18 = vadd.f32 %v6315_v20, %v1179_v59  ;;  %v6325_v31 = vld [vmem:[#allocation70_spill] sm:$0xff]  ;;  %v6327_v23 = vld [vmem:[#allocation47_spill] sm:$0xff]  ;;  %v6330_v26 = vld [vmem:[#allocation96_spill] sm:$0xff] }
 0x367   :  { %v1295_v42 = vsel %vm404_vm4, %v6321_v39, %v6320_v6  ;;  %v1445_v30 = vmul.f32 0.0, %v1444_v46  ;;  %v1031_v49 = vadd.f32 %v4986_v3, %v999_v28  ;;  %v1037_v4 = vadd.f32 %v5005_v10, %v1008_v13  ;;  %v6326_v3 = vld [vmem:[#allocation91_spill] sm:$0xff]  ;;  %v6331_v55 = vld [vmem:[#allocation50_spill] sm:$0xff] }
 0x368   :  { %v1038_v21 = vadd.f32 %v4978_v36, %v1009_v47  ;;  %v1238_v14 = vadd.f32 %v1235_v15, %v1178_v5  ;;  %v1032_v51 = vadd.f32 %v4967_v62, %v1000_v61  ;;  %v1070_v54 = vsel %vm160_vm0, %v6323_v8, %v6322_v11  ;;  %v6328_v36 = vld [vmem:[#allocation93_spill] sm:$0xff]  ;;  %v6329_v47 = vld [vmem:[#allocation48_spill] sm:$0xff]  ;;  %v6332_v0 = vld [vmem:[#allocation98_spill] sm:$0xff]  ;;  %v5170_v5 = vpop.permute.xlu0 %2180 }
 0x369   :  { %v1299_v2 = vadd.f32 %v6320_v6, %v1239_v18  ;;  %v1355_v29 = vsel %vm465_vm5, %v6325_v31, %v6324_v16  ;;  %v1043_v46 = vadd.f32 %v5003_v7, %v1017_v58  ;;  %v1085_v10 = vsel %vm160_vm0, %v6327_v23, %v6326_v3  ;;  %v6333_v15 = vld [vmem:[#allocation51_spill] sm:$0xff]  ;;  %v6335_v18 = vld [vmem:[#allocation52_spill] sm:$0xff]  ;;  %v6341_v31 = vld [vmem:[#allocation58_spill] sm:$0xff] }
 0x36a   :  { %v5082_v56 = vpop.permute.xlu1 %2002  ;;  %v1100_v62 = vsel %vm160_vm0, %v6329_v47, %v6328_v36  ;;  %v1298_v13 = vadd.f32 %v1295_v42, %v1238_v14  ;;  %v1074_v9 = vadd.f32 %v6322_v11, %v1032_v51  ;;  %v1044_v28 = vadd.f32 %v4981_v60, %v1018_v48  ;;  %v6334_v48 = vld [vmem:[#allocation100_spill] sm:$0xff] }
 0x36b   :  { %v1130_v61 = vsel %vm221_vm1, %v6331_v55, %v6330_v26  ;;  %v1359_v7 = vadd.f32 %v6324_v16, %v1299_v2  ;;  %v1073_v59 = vadd.f32 %v1070_v54, %v1031_v49  ;;  %v1089_v20 = vadd.f32 %v6326_v3, %v1038_v21  ;;  %v6336_v21 = vld [vmem:[#allocation103_spill] sm:$0xff]  ;;  %v6337_v14 = vld [vmem:[#allocation56_spill] sm:$0xff]  ;;  %v6339_v54 = vld [vmem:[#allocation57_spill] sm:$0xff] }
 0x36c   :  { %v1145_v41 = vsel %vm221_vm1, %v6333_v15, %v6332_v0  ;;  %v1358_v58 = vadd.f32 %v1355_v29, %v1298_v13  ;;  %v1088_v44 = vadd.f32 %v1085_v10, %v1037_v4  ;;  %v1103_v43 = vadd.f32 %v1100_v62, %v1043_v46  ;;  %v6338_v4 = vld [vmem:[#allocation105_spill] sm:$0xff]  ;;  %v6340_v16 = vld [vmem:[#allocation106_spill] sm:$0xff]  ;;  %v6344_v47 = vld [vmem:[#allocation60_spill] sm:$0xff] }
 0x36d   :  { %v1104_v60 = vadd.f32 %v6328_v36, %v1044_v28  ;;  %v1160_v6 = vsel %vm221_vm1, %v6335_v18, %v6334_v48  ;;  %v1133_v39 = vadd.f32 %v1130_v61, %v1073_v59  ;;  %v1134_v42 = vadd.f32 %v6330_v26, %v1074_v9  ;;  %v6342_v46 = vld [vmem:[#allocation77_spill] sm:$0xff]  ;;  %v6343_v36 = vld [vmem:[#allocation110_spill] sm:$0xff]  ;;  %v6345_v55 = vld [vmem:[#allocation111_spill] sm:$0xff] }
 0x36e   :  { %v5104_v53 = vpop.permute.xlu1 %2017  ;;  %v1149_v49 = vadd.f32 %v6332_v0, %v1089_v20  ;;  %v1190_v51 = vsel %vm282_vm2, %v6337_v14, %v6336_v21  ;;  %v1148_v8 = vadd.f32 %v1145_v41, %v1088_v44  ;;  %v1205_v2 = vsel %vm282_vm2, %v6339_v54, %v6338_v4  ;;  %v6346_v61 = vld [vmem:[#allocation61_spill] sm:$0xff]  ;;  %v6348_v41 = vld [vmem:[#allocation62_spill] sm:$0xff]  ;;  %v6351_v14 = vld [vmem:[#allocation119_spill] sm:$0xff] }
 0x36f   :  { %v1220_v29 = vsel %vm282_vm2, %v6341_v31, %v6340_v16  ;;  %v1413_v3 = vadd.f32 %v6342_v46, %v1359_v7  ;;  %v1163_v23 = vadd.f32 %v1160_v6, %v1103_v43  ;;  %v1164_v10 = vadd.f32 %v6334_v48, %v1104_v60  ;;  %v6347_v15 = vld [vmem:[#allocation113_spill] sm:$0xff]  ;;  %v5204_v43 = vpop.permute.xlu0 %2195  ;;  %v6349_v6 = vld [vmem:[#allocation132_spill] sm:$0xff]  ;;  %v6353_v31 = vld [vmem:[#allocation139_spill] sm:$0xff] }
 0x370   :  { %v1250_v62 = vsel %vm343_vm3, %v6344_v47, %v6343_v36  ;;  %v1412_v13 = vadd.f32 %v6342_v46, %v1358_v58  ;;  %v1193_v9 = vadd.f32 %v1190_v51, %v1133_v39  ;;  %v1194_v28 = vadd.f32 %v6336_v21, %v1134_v42  ;;  %v6350_v39 = vld [vmem:[#allocation80_spill] sm:$0xff]  ;;  %v6352_v51 = vld [vmem:[#allocation66_spill] sm:$0xff]  ;;  %v6355_v46 = vld [vmem:[#allocation117_spill] sm:$0xff] }
 0x371   :  { %v1209_v26 = vadd.f32 %v6338_v4, %v1149_v49  ;;  %v1265_v59 = vsel %vm343_vm3, %v6346_v61, %v6345_v55  ;;  %v1208_v20 = vadd.f32 %v1205_v2, %v1148_v8  ;;  %v1223_v7 = vadd.f32 %v1220_v29, %v1163_v23  ;;  %v6354_v29 = vld [vmem:[#allocation89_spill] sm:$0xff] }
 0x372   :  { %v5131_v32 = vpop.permute.xlu1 %2032  ;;  %v1224_v0 = vadd.f32 %v6340_v16, %v1164_v10  ;;  %v1280_v44 = vsel %vm343_vm3, %v6348_v41, %v6347_v15  ;;  %v1253_v60 = vadd.f32 %v1250_v62, %v1193_v9  ;;  %v1254_v48 = vadd.f32 %v6343_v36, %v1194_v28  ;;  %v6357_v36 = vld [vmem:[#allocation126_spill] sm:$0xff]  ;;  %v6358_v47 = vld [vmem:[#allocation73_spill] sm:$0xff]  ;;  %v6364_v41 = vld [vmem:[#allocation71_spill] sm:$0xff] }
 0x373   :  { %v1448_v18 = vadd.f32 %v4991_v50, %v1413_v3  ;;  %v1477_v42 = vsel %vm160_vm0, %v6350_v39, %v6349_v6  ;;  %v1268_v49 = vadd.f32 %v1265_v59, %v1208_v20  ;;  %v1269_v21 = vadd.f32 %v6345_v55, %v1209_v26  ;;  %v6356_v3 = vld [vmem:[#allocation64_spill] sm:$0xff]  ;;  %v6359_v28 = vld [vmem:[#allocation121_spill] sm:$0xff]  ;;  %v6361_v59 = vld [vmem:[#allocation146_spill] sm:$0xff]  ;;  %v5243_v39 = vpop.permute.xlu0 %2210 }
 0x374   :  { %v1325_v8 = vsel %vm404_vm4, %v6352_v51, %v6351_v14  ;;  %v1447_v4 = vadd.f32 %v1445_v30, %v1412_v13  ;;  %v1283_v54 = vadd.f32 %v1280_v44, %v1223_v7  ;;  %v1284_v2 = vadd.f32 %v6347_v15, %v1224_v0  ;;  %v6360_v26 = vld [vmem:[#allocation68_spill] sm:$0xff]  ;;  %v6362_v20 = vld [vmem:[#allocation99_spill] sm:$0xff] }
 0x375   :  { %v1481_v16 = vadd.f32 %v6349_v6, %v1448_v18  ;;  %v1537_v50 = vsel %vm221_vm1, %v6354_v29, %v6353_v31  ;;  %v1310_v23 = vsel %vm404_vm4, %v6356_v3, %v6355_v46  ;;  %v1329_v10 = vadd.f32 %v6351_v14, %v1269_v21  ;;  %v6363_v15 = vld [vmem:[#allocation124_spill] sm:$0xff]  ;;  %v6366_v21 = vld [vmem:[#allocation75_spill] sm:$0xff] }
 0x376   :  { %v5158_v33 = vpop.permute.xlu1 %2047  ;;  %v1385_v62 = vsel %vm465_vm5, %v6358_v47, %v6357_v36  ;;  %v1480_v30 = vadd.f32 %v1477_v42, %v1447_v4  ;;  %v1328_v9 = vadd.f32 %v1325_v8, %v1268_v49  ;;  %v1340_v55 = vsel %vm404_vm4, %v6360_v26, %v6359_v28  ;;  %v6365_v49 = vld [vmem:[#allocation127_spill] sm:$0xff]  ;;  %v6367_v8 = vld [vmem:[#allocation152_spill] sm:$0xff]  ;;  %v6368_v4 = vld [vmem:[#allocation109_spill] sm:$0xff] }
 0x377   :  { %v1541_v61 = vadd.f32 %v6353_v31, %v1481_v16  ;;  %v1597_v7 = vsel %vm282_vm2, %v6362_v20, %v6361_v59  ;;  %v1314_v0 = vadd.f32 %v6355_v46, %v1254_v48  ;;  %v1370_v44 = vsel %vm465_vm5, %v6364_v41, %v6363_v15  ;;  %v6369_v47 = vld [vmem:[#allocation159_spill] sm:$0xff]  ;;  %v6371_v26 = vld [vmem:[#allocation78_spill] sm:$0xff] }
 0x378   :  { %v1389_v18 = vadd.f32 %v6357_v36, %v1329_v10  ;;  %v1540_v6 = vadd.f32 %v1537_v50, %v1480_v30  ;;  %v1388_v42 = vadd.f32 %v1385_v62, %v1328_v9  ;;  %v1400_v14 = vsel %vm465_vm5, %v6366_v21, %v6365_v49  ;;  %v6370_v62 = vld [vmem:[#allocation120_spill] sm:$0xff]  ;;  %v6375_v41 = vld [vmem:[#allocation131_spill] sm:$0xff] }
 0x379   :  { %v1601_v51 = vadd.f32 %v6361_v59, %v1541_v61  ;;  %v1657_v48 = vsel %vm343_vm3, %v6368_v4, %v6367_v8  ;;  %v1313_v16 = vadd.f32 %v1310_v23, %v1253_v60  ;;  %v1343_v31 = vadd.f32 %v1340_v55, %v1283_v54  ;;  %v6372_v61 = vld [vmem:[#allocation166_spill] sm:$0xff] }
 0x37a   :  { %v5181_v11 = vpop.permute.xlu1 %2062  ;;  %v1457_v29 = vmul.f32 0.0, %v1456_v37  ;;  %v1600_v46 = vadd.f32 %v1597_v7, %v1540_v6  ;;  %v1344_v50 = vadd.f32 %v6359_v28, %v1284_v2  ;;  %v1374_v10 = vadd.f32 %v6363_v15, %v1314_v0  ;;  %v6373_v59 = vld [vmem:[#allocation130_spill] sm:$0xff]  ;;  %v6374_v7 = vld [vmem:[#allocation129_spill] sm:$0xff]  ;;  %v5272_v6 = vpop.permute.xlu0 %2225 }
 0x37b   :  { %v1661_v36 = vadd.f32 %v6367_v8, %v1601_v51  ;;  %v1717_v30 = vsel %vm404_vm4, %v6370_v62, %v6369_v47  ;;  %v1373_v9 = vadd.f32 %v1370_v44, %v1313_v16  ;;  %v1431_v60 = vadd.f32 %v6371_v26, %v1389_v18 }
 0x37c   :  { %v1403_v54 = vadd.f32 %v1400_v14, %v1343_v31  ;;  %v1660_v23 = vadd.f32 %v1657_v48, %v1600_v46  ;;  %v1430_v55 = vadd.f32 %v6371_v26, %v1388_v42  ;;  %v1404_v2 = vadd.f32 %v6365_v49, %v1344_v50  ;;  %v6378_v31 = vld [vmem:[#allocation114_spill] sm:$0xff] }
 0x37d   :  { %v1721_v28 = vadd.f32 %v6369_v47, %v1661_v36  ;;  %v1777_v20 = vsel %vm465_vm5, %v6373_v59, %v6372_v61  ;;  %v1421_v0 = vadd.f32 %v6374_v7, %v1373_v9  ;;  %v1422_v15 = vadd.f32 %v6374_v7, %v1374_v10  ;;  %v6380_v36 = vld [vmem:[#allocation134_spill] sm:$0xff]  ;;  %v6385_v7 = vld [vmem:[#allocation87_spill] sm:$0xff] }
 0x37e   :  { %v5206_v58 = vpop.permute.xlu1 %2077  ;;  %v1439_v44 = vadd.f32 %v6375_v41, %v1403_v54  ;;  %v1720_v18 = vadd.f32 %v1717_v30, %v1660_v23  ;;  %v1440_v49 = vadd.f32 %v6375_v41, %v1404_v2  ;;  %v6376_v21 = vstv %s4904_s8  ;;  %v6381_v47 = vld [vmem:[#allocation82_spill] sm:$0xff]  ;;  %v6382_v23 = vld [vmem:[#allocation136_spill] sm:$0xff]  ;;  %s5591_s8 = sld [smem:[#allocation16 + $0x1c]] }
 0x37f   :  { %v1452_v14 = vmul.f32 %v6376_v21, %v4280_v34  ;;  %v1458_v51 = vmul.f32 %v1456_v37, %v4280_v34  ;;  %v1781_v8 = vadd.f32 %v6372_v61, %v1721_v28  ;;  %v6377_v4 = vstv %s4906_s9  ;;  %v6383_v2 = vld [vmem:[#allocation84_spill] sm:$0xff]  ;;  %v6389_v41 = vld [vmem:[#allocation142_spill] sm:$0xff]  ;;  %v5318_v21 = vpop.permute.xlu0 %2240  ;;  %s5597_s9 = sld [smem:[#allocation16 + $0x5]] }
 0x380   :  { %v1464_v48 = vmul.f32 %v6377_v4, %v4280_v34  ;;  %v1780_v16 = vadd.f32 %v1777_v20, %v1720_v18  ;;  %v1868_v46 = vmul.f32 %v1866_v25, %v6378_v31  ;;  %v6379_v50 = vstv %s4914_s12  ;;  %v6384_v20 = vld [vmem:[#allocation137_spill] sm:$0xff] }
 0x381   :  { %v5293_v10 = vmul.f32 %v6379_v50, %v6378_v31  ;;  %v1492_v62 = vsel %vm160_vm0, %v6381_v47, %v6380_v36  ;;  %v1459_v30 = vadd.f32 %v1457_v29, %v1430_v55  ;;  %v1460_v9 = vadd.f32 %v1458_v51, %v1431_v60  ;;  %v6386_v60 = vld [vmem:[#allocation141_spill] sm:$0xff]  ;;  %v6387_v55 = vld [vmem:[#allocation92_spill] sm:$0xff] }
 0x382   :  { %v5229_v13 = vpop.permute.xlu1 %2092  ;;  %v1867_v37 = vmul.f32 0.0, %v1866_v25  ;;  %v1453_v26 = vadd.f32 %v5123_v22, %v1421_v0  ;;  %v1465_v34 = vadd.f32 %v5127_v38, %v1439_v44  ;;  %v1454_v54 = vadd.f32 %v1452_v14, %v1422_v15  ;;  %v6388_v22 = vld [vmem:[#allocation140_spill] sm:$0xff]  ;;  %v6390_v44 = vld [vmem:[#allocation94_spill] sm:$0xff] }
 0x383   :  { %v1507_v28 = vsel %vm160_vm0, %v6383_v2, %v6382_v23  ;;  %v1466_v59 = vadd.f32 %v1464_v48, %v1440_v49  ;;  %v1522_v29 = vsel %vm160_vm0, %v6385_v7, %v6384_v20  ;;  %v1552_v25 = vsel %vm221_vm1, %v6387_v55, %v6386_v60  ;;  %v6391_v47 = vld [vmem:[#allocation144_spill] sm:$0xff] }
 0x384   :  { %v1835_v0 = vadd.f32 %v6388_v22, %v1781_v8  ;;  %v1495_v38 = vadd.f32 %v1492_v62, %v1453_v26  ;;  %v1496_v15 = vadd.f32 %v6380_v36, %v1454_v54  ;;  %v1567_v18 = vsel %vm221_vm1, %v6390_v44, %v6389_v41  ;;  %v6392_v62 = vld [vmem:[#allocation97_spill] sm:$0xff]  ;;  %v6400_v44 = vld [vmem:[#allocation151_spill] sm:$0xff] }
 0x385   :  { %v1834_v49 = vadd.f32 %v6388_v22, %v1780_v16  ;;  %v1510_v14 = vadd.f32 %v1507_v28, %v1459_v30  ;;  %v1511_v51 = vadd.f32 %v6382_v23, %v1460_v9  ;;  %v1526_v4 = vadd.f32 %v6384_v20, %v1466_v59  ;;  %v6393_v9 = vld [vmem:[#allocation176_spill] sm:$0xff]  ;;  %v6394_v23 = vld [vmem:[#allocation145_spill] sm:$0xff]  ;;  %v6396_v20 = vld [vmem:[#allocation102_spill] sm:$0xff] }
 0x386   :  { %v5254_v3 = vpop.permute.xlu1 %2107  ;;  %v5325_v48 = vmul.f32 0.0, %v1878_v40  ;;  %v1525_v8 = vadd.f32 %v1522_v29, %v1465_v34  ;;  %v1555_v50 = vadd.f32 %v1552_v25, %v1495_v38  ;;  %v1556_v36 = vadd.f32 %v6386_v60, %v1496_v15  ;;  %v6395_v34 = vld [vmem:[#allocation147_spill] sm:$0xff]  ;;  %v6397_v29 = vld [vmem:[#allocation149_spill] sm:$0xff]  ;;  %v6398_v60 = vld [vmem:[#allocation104_spill] sm:$0xff] }
 0x387   :  { %v1582_v26 = vsel %vm221_vm1, %v6392_v62, %v6391_v47  ;;  %v1570_v2 = vadd.f32 %v1567_v18, %v1510_v14  ;;  %v1571_v16 = vadd.f32 %v6389_v41, %v1511_v51  ;;  %v1870_v30 = vadd.f32 %v1868_v46, %v1835_v0  ;;  %v6399_v0 = vld [vmem:[#allocation155_spill] sm:$0xff]  ;;  %v6402_v51 = vld [vmem:[#allocation156_spill] sm:$0xff] }
 0x388   :  { %v1899_v28 = vsel %vm160_vm0, %v6394_v23, %v6393_v9  ;;  %v1586_v59 = vadd.f32 %v6391_v47, %v1526_v4  ;;  %v1612_v7 = vsel %vm282_vm2, %v6396_v20, %v6395_v34  ;;  %v1627_v55 = vsel %vm282_vm2, %v6398_v60, %v6397_v29  ;;  %v6401_v18 = vld [vmem:[#allocation107_spill] sm:$0xff]  ;;  %v6406_v20 = vld [vmem:[#allocation125_spill] sm:$0xff] }
 0x389   :  { %v1869_v25 = vadd.f32 %v1867_v37, %v1834_v49  ;;  %v1585_v22 = vadd.f32 %v1582_v26, %v1525_v8  ;;  %v1616_v38 = vadd.f32 %v6395_v34, %v1556_v36  ;;  %v1903_v46 = vadd.f32 %v6393_v9, %v1870_v30  ;;  %v6403_v4 = vld [vmem:[#allocation115_spill] sm:$0xff]  ;;  %v2254_v37 = vpop.permute.xlu0 %2253  ;;  %v6404_v30 = vld [vmem:[#allocation165_spill] sm:$0xff]  ;;  %v6405_v34 = vld [vmem:[#allocation162_spill] sm:$0xff] }
 0x38a   :  { %v5274_v42 = vpop.permute.xlu1 %2122  ;;  %v1959_v15 = vsel %vm221_vm1, %v6399_v0, %v5007_v63  ;;  %v1631_v41 = vadd.f32 %v6397_v29, %v1571_v16  ;;  %v1642_v14 = vsel %vm282_vm2, %v6401_v18, %v6400_v44  ;;  %v1687_v47 = vsel %vm343_vm3, %v6403_v4, %v6402_v51  ;;  %v6410_v0 = vld [vmem:[#allocation169_spill] sm:$0xff] }
 0x38b   :  { %v1902_v49 = vadd.f32 %v1899_v28, %v1869_v25  ;;  %v1615_v36 = vadd.f32 %v1612_v7, %v1555_v50  ;;  %v1630_v62 = vadd.f32 %v1627_v55, %v1570_v2  ;;  %v1963_v26 = vadd.f32 %v5007_v63, %v1903_v46  ;;  %v6407_v2 = vld [vmem:[#allocation175_spill] sm:$0xff]  ;;  %v6408_v7 = vld [vmem:[#allocation154_spill] sm:$0xff]  ;;  %v6409_v55 = vld [vmem:[#allocation112_spill] sm:$0xff] }
 0x38c   :  { %v2019_v16 = vsel %vm282_vm2, %v6404_v30, %v5104_v53  ;;  %v1646_v9 = vadd.f32 %v6400_v44, %v1586_v59  ;;  %v1691_v23 = vadd.f32 %v6402_v51, %v1631_v41  ;;  %v1747_v29 = vsel %vm404_vm4, %v6406_v20, %v6405_v34  ;;  %v6411_v41 = vld [vmem:[#allocation135_spill] sm:$0xff] }
 0x38d   :  { %v1962_v60 = vadd.f32 %v1959_v15, %v1902_v49  ;;  %v1645_v28 = vadd.f32 %v1642_v14, %v1585_v22  ;;  %v1690_v25 = vadd.f32 %v1687_v47, %v1630_v62  ;;  %v2023_v50 = vadd.f32 %v5104_v53, %v1963_v26  ;;  %v6412_v22 = vld [vmem:[#allocation157_spill] sm:$0xff]  ;;  %v6413_v14 = vld [vmem:[#allocation118_spill] sm:$0xff]  ;;  %v6415_v26 = vld [vmem:[#allocation123_spill] sm:$0xff] }
 0x38e   :  { %v5305_v61 = vpop.permute.xlu1 %2137  ;;  %v2079_v63 = vsel %vm343_vm3, %v6407_v2, %v5206_v58  ;;  %v1672_v46 = vsel %vm343_vm3, %v6409_v55, %v6408_v7  ;;  %v1751_v59 = vadd.f32 %v6405_v34, %v1691_v23  ;;  %v1807_v44 = vsel %vm465_vm5, %v6411_v41, %v6410_v0  ;;  %v6414_v62 = vld [vmem:[#allocation161_spill] sm:$0xff]  ;;  %v6418_v2 = vld [vmem:[#allocation167_spill] sm:$0xff] }
 0x38f   :  { %v2022_v18 = vadd.f32 %v2019_v16, %v1962_v60  ;;  %v1702_v53 = vsel %vm343_vm3, %v6413_v14, %v6412_v22  ;;  %v1750_v51 = vadd.f32 %v1747_v29, %v1690_v25  ;;  %v2083_v4 = vadd.f32 %v5206_v58, %v2023_v50  ;;  %v5391_v16 = vpop.permute.xlu0 %2271  ;;  %v6416_v60 = vld [vmem:[#allocation164_spill] sm:$0xff] }
 0x390   :  { %v2139_v47 = vsel %vm404_vm4, %v5054_v27, %v5305_v61  ;;  %v1676_v49 = vadd.f32 %v6408_v7, %v1616_v38  ;;  %v1732_v30 = vsel %vm404_vm4, %v6415_v26, %v6414_v62  ;;  %v1811_v23 = vadd.f32 %v6410_v0, %v1751_v59  ;;  %v6417_v29 = vld [vmem:[#allocation128_spill] sm:$0xff]  ;;  %v6419_v7 = vld [vmem:[#allocation133_spill] sm:$0xff] }
 0x391   :  { %v2082_v34 = vadd.f32 %v2079_v63, %v2022_v18  ;;  %v1675_v20 = vadd.f32 %v1672_v46, %v1615_v36  ;;  %v1762_v58 = vsel %vm404_vm4, %v6417_v29, %v6416_v60  ;;  %v1810_v25 = vadd.f32 %v1807_v44, %v1750_v51  ;;  %v6421_v44 = vld [vmem:[#allocation171_spill] sm:$0xff]  ;;  %v6424_v29 = vld [vmem:[#allocation172_spill] sm:$0xff] }
 0x392   :  { %v5331_v54 = vpop.permute.xlu1 %2152  ;;  %v2143_v50 = vadd.f32 %v5305_v61, %v2083_v4  ;;  %v1705_v27 = vadd.f32 %v1702_v53, %v1645_v28  ;;  %v1706_v38 = vadd.f32 %v6412_v22, %v1646_v9  ;;  %v1792_v55 = vsel %vm465_vm5, %v6419_v7, %v6418_v2  ;;  %v6420_v61 = vld [vmem:[#allocation143_spill] sm:$0xff]  ;;  %v6422_v9 = vld [vmem:[#allocation138_spill] sm:$0xff] }
 0x393   :  { %v2142_v41 = vadd.f32 %v2139_v47, %v2082_v34  ;;  %v1735_v63 = vadd.f32 %v1732_v30, %v1675_v20  ;;  %v1736_v36 = vadd.f32 %v6414_v62, %v1676_v49  ;;  %v1853_v28 = vadd.f32 %v6420_v61, %v1811_v23  ;;  %v2287_v62 = vpop.permute.xlu0 %2286 }
 0x394   :  { %v1765_v0 = vadd.f32 %v1762_v58, %v1705_v27  ;;  %v1822_v18 = vsel %vm465_vm5, %v6422_v9, %v6421_v44  ;;  %v1852_v4 = vadd.f32 %v6420_v61, %v1810_v25  ;;  %v1766_v49 = vadd.f32 %v6416_v60, %v1706_v38  ;;  %v6425_v60 = vld [vmem:[#allocation150_spill] sm:$0xff] }
 0x395   :  { %v1795_v53 = vadd.f32 %v1792_v55, %v1735_v63  ;;  %v1796_v51 = vadd.f32 %v6418_v2, %v1736_v36  ;;  %v1880_v30 = vmul.f32 %v1878_v40, %v6378_v31  ;;  %v1885_v25 = vmul.f32 0.0, %v1884_v45  ;;  %v6426_v40 = vld [vmem:[#allocation174_spill] sm:$0xff]  ;;  %v6427_v63 = vld [vmem:[#allocation177_spill] sm:$0xff]  ;;  %v6428_v36 = vld [vmem:[#allocation148_spill] sm:$0xff] }
 0x396   :  { %v5356_v8 = vpop.permute.xlu1 %2167  ;;  %v1825_v20 = vadd.f32 %v1822_v18, %v1765_v0  ;;  %v1929_v38 = vsel %vm160_vm0, %v6425_v60, %v4951_v52  ;;  %v1826_v55 = vadd.f32 %v6421_v44, %v1766_v49  ;;  %v6429_v0 = vld [vmem:[#allocation160_spill] sm:$0xff] }
 0x397   :  { %v1843_v58 = vadd.f32 %v6424_v29, %v1795_v53  ;;  %v1882_v2 = vadd.f32 %v1880_v30, %v1853_v28  ;;  %v1989_v61 = vsel %vm221_vm1, %v6429_v0, %v5056_v17  ;;  %v6431_v53 = vld [vmem:[#allocation158_spill] sm:$0xff]  ;;  %v6433_v30 = vld [vmem:[#allocation168_spill] sm:$0xff] }
 0x398   :  { %v1862_v44 = vadd.f32 %v6426_v40, %v1826_v55 }
 0x39a   :  { %v5378_v15 = vpop.permute.xlu1 %2182 }
 0x39e   :  { %v2198_v14 = vpop.permute.xlu1 %2197 }
 0x39f   :  { %v2199_v46 = vsel %vm465_vm5, %v5204_v43, %v2198_v14  ;;  %v2203_v59 = vadd.f32 %v2198_v14, %v2143_v50  ;;  %v6423_v43 = vstv %s4914_s12  ;;  %v1844_v50 = vadd.f32 %v6424_v29, %v1796_v51  ;;  %s5615_s12 = sld [smem:[#allocation16 + $0x1d]] }
 0x3a0   :  { %v2202_v22 = vadd.f32 %v2199_v46, %v2142_v41  ;;  %v1873_v26 = vmul.f32 0.0, %v6423_v43  ;;  %v1881_v41 = vadd.f32 %v5325_v48, %v1852_v4  ;;  %v1914_v46 = vsel %vm160_vm0, %v6428_v36, %v6427_v63  ;;  %v6432_v4 = vld [vmem:[#allocation170_spill] sm:$0xff] }
 0x3a1   :  { %v2257_v47 = vadd.f32 %v2254_v37, %v2203_v59  ;;  %v1933_v59 = vadd.f32 %v4951_v52, %v1882_v2  ;;  %v1974_v51 = vsel %vm221_vm1, %v6431_v53, %v5034_v1 }
 0x3a2   :  { %v2256_v23 = vadd.f32 %v2254_v37, %v2202_v22  ;;  %v5417_v34 = vpop.permute.xlu1 %2212  ;;  %v1861_v37 = vadd.f32 %v6426_v40, %v1825_v20  ;;  %v1875_v18 = vadd.f32 %v1873_v26, %v1843_v58  ;;  %v1876_v22 = vadd.f32 %v5293_v10, %v1844_v50  ;;  %v6436_v40 = vld [vmem:[#allocation163_spill] sm:$0xff] }
 0x3a3   :  { %v2290_v27 = vadd.f32 %v2287_v62, %v2257_v47  ;;  %v1932_v48 = vadd.f32 %v1929_v38, %v1881_v41  ;;  %v1993_v52 = vadd.f32 %v5056_v17, %v1933_v59  ;;  %v2049_v47 = vsel %vm282_vm2, %v6432_v4, %v5158_v33  ;;  %v6437_v59 = vld [vmem:[#allocation173_spill] sm:$0xff] }
 0x3a4   :  { %v2289_v7 = vadd.f32 %v2287_v62, %v2256_v23  ;;  %v1917_v49 = vadd.f32 %v1914_v46, %v1875_v18  ;;  %v1918_v62 = vadd.f32 %v6427_v63, %v1876_v22  ;;  %v1886_v10 = vmul.f32 %v1884_v45, %v6378_v31  ;;  %v6434_v45 = vld [vmem:[#allocation153_spill] sm:$0xff] }
 0x3a5   :  { %v2292_v14 = vmax.f32 %v2290_v27, 0.0  ;;  %v1992_v43 = vadd.f32 %v1989_v61, %v1932_v48  ;;  %v1887_v26 = vadd.f32 %v1885_v25, %v1861_v37  ;;  %v2034_v23 = vsel %vm282_vm2, %v6433_v30, %v5131_v32  ;;  %v6435_v25 = vld [vmem:[#allocation178_spill] sm:$0xff]  ;;  %6438 = sst [smem:[#allocation25_spill]] %s5615_s12 }
 0x3a6   :  { %v2291_v28 = vmax.f32 %v2289_v7, 0.0  ;;  %v2228_v9 = vpop.permute.xlu1 %2227  ;;  %v2053_v17 = vadd.f32 %v5158_v33, %v1993_v52  ;;  %v2109_v20 = vsel %vm343_vm3, %v4969_v19, %v5254_v3  ;;  %v1888_v58 = vadd.f32 %v1886_v10, %v1862_v44 }
 0x3a7   :  { %2297 = vrot.lane.b32.xlu1 %v2292_v14, %s6430_s23  ;;  %v1977_v50 = vadd.f32 %v1974_v51, %v1917_v49  ;;  %v1978_v27 = vadd.f32 %v5034_v1, %v1918_v62  ;;  %v2052_v2 = vadd.f32 %v2049_v47, %v1992_v43  ;;  %v1944_v31 = vsel %vm160_vm0, %v6434_v45, %v4971_v12 }
 0x3a8   :  { %2295 = vrot.lane.b32.xlu0 %v2291_v28, %s6430_s23  ;;  %v2094_v60 = vsel %vm343_vm3, %v6435_v25, %v5229_v13  ;;  %v2113_v33 = vadd.f32 %v5254_v3, %v2053_v17  ;;  %v2169_v19 = vsel %vm404_vm4, %v5129_v35, %v5356_v8  ;;  %v1948_v38 = vadd.f32 %v4971_v12, %v1888_v58 }
 0x3a9   :  { %v2037_v7 = vadd.f32 %v2034_v23, %v1977_v50  ;;  %v2038_v1 = vadd.f32 %v5131_v32, %v1978_v27  ;;  %v2112_v55 = vadd.f32 %v2109_v20, %v2052_v2  ;;  %v2004_v37 = vsel %vm221_vm1, %v6436_v40, %v5082_v56 }
 0x3aa   :  { %v2243_v29 = vpop.permute.xlu1 %2242  ;;  %v2154_v41 = vsel %vm404_vm4, %v5093_v24, %v5331_v54  ;;  %v2173_v3 = vadd.f32 %v5356_v8, %v2113_v33  ;;  %v2229_v14 = vsel %vm465_vm5, %v5272_v6, %v2228_v9  ;;  %v1947_v63 = vadd.f32 %v1944_v31, %v1887_v26 }
 0x3ab   :  { %v2097_v12 = vadd.f32 %v2094_v60, %v2037_v7  ;;  %v2098_v36 = vadd.f32 %v5229_v13, %v2038_v1  ;;  %v2172_v32 = vadd.f32 %v2169_v19, %v2112_v55  ;;  %v2008_v46 = vadd.f32 %v5082_v56, %v1948_v38 }
 0x3ac   :  { %v2064_v0 = vsel %vm282_vm2, %v6437_v59, %v5181_v11  ;;  %v2214_v24 = vsel %vm465_vm5, %v5243_v39, %v5417_v34  ;;  %v2233_v8 = vadd.f32 %v2228_v9, %v2173_v3  ;;  %v2007_v61 = vadd.f32 %v2004_v37, %v1947_v63 }
 0x3ad   :  { %v2157_v28 = vadd.f32 %v2154_v41, %v2097_v12  ;;  %v2158_v6 = vadd.f32 %v5331_v54, %v2098_v36  ;;  %v2232_v18 = vadd.f32 %v2229_v14, %v2172_v32  ;;  %v2068_v44 = vadd.f32 %v5181_v11, %v2008_v46 }
 0x3ae   :  { %v2263_v35 = vpop.permute.xlu1 %2262  ;;  %v2124_v56 = vsel %vm343_vm3, %v5018_v57, %v5274_v42  ;;  %v2067_v22 = vadd.f32 %v2064_v0, %v2007_v61  ;;  %v2184_v39 = vsel %vm404_vm4, %v5170_v5, %v5378_v15  ;;  %v2275_v54 = vadd.f32 %v5391_v16, %v2233_v8 }
 0x3af   :  { %v2217_v48 = vadd.f32 %v2214_v24, %v2157_v28  ;;  %v2218_v53 = vadd.f32 %v5417_v34, %v2158_v6  ;;  %v2128_v51 = vadd.f32 %v5274_v42, %v2068_v44  ;;  %v2274_v11 = vadd.f32 %v5391_v16, %v2232_v18  ;;  %v2323_v34 = vpop.permute.xlu0 %2322 }
 0x3b0   :  { %v2127_v9 = vadd.f32 %v2124_v56, %v2067_v22  ;;  %v2244_v47 = vsel %vm465_vm5, %v5318_v21, %v2243_v29  ;;  %v2326_v43 = vadd.f32 %v2323_v34, %v2275_v54  ;;  %v2365_v27 = vstv %s5503_s25  ;;  %s5780_s25 = sld [smem:[#allocation16 + $0x18]] }
 0x3b1   :  { %v2265_v52 = vadd.f32 %v2263_v35, %v2217_v48  ;;  %v2266_v4 = vadd.f32 %v2263_v35, %v2218_v53  ;;  %v2188_v57 = vadd.f32 %v5378_v15, %v2128_v51  ;;  %v2325_v5 = vadd.f32 %v2323_v34, %v2274_v11 }
 0x3b2   :  { %v2281_v13 = vpop.permute.xlu1 %2280  ;;  %v2187_v62 = vadd.f32 %v2184_v39, %v2127_v9  ;;  %v2366_v31 = vmul.f32 0.0, %v2365_v27  ;;  %v2472_v25 = vstv %s5507_s13  ;;  %v2579_v33 = vstv %s5512_s15  ;;  %s6442_s15 = sld [smem:[#allocation179_spill]] }
 0x3b3   :  { %v2248_v26 = vadd.f32 %v2243_v29, %v2188_v57  ;;  %v2327_v21 = vmax.f32 %v2325_v5, 0.0  ;;  %v2328_v29 = vmax.f32 %v2326_v43, 0.0  ;;  %v2473_v60 = vmul.f32 0.0, %v2472_v25 }
 0x3b4   :  { %v2247_v30 = vadd.f32 %v2244_v47, %v2187_v62  ;;  %v2580_v19 = vmul.f32 0.0, %v2579_v33  ;;  %v2686_v38 = vstv %s5519_s30  ;;  %v2380_v1 = vstv %s5525_s28  ;;  %s6443_s30 = smov 56   ;;  %s3181_s28 = smov [#allocation17]  }
 0x3b5   :  { %v2284_v15 = vadd.f32 %v2281_v13, %v2248_v26  ;;  %v2687_v7 = vmul.f32 0.0, %v2686_v38  ;;  %v2381_v55 = vmul.f32 0.0, %v2380_v1  ;;  %v2487_v40 = vstv %s5531_s22  ;;  %s2823_s22 = sshll.u32 %s3181_s28, 4  ;;  %s2824_s22 = int_to_ptr.vmem [resolvable:$true] %s2823_s22 }
 0x3b6   :  { %v2305_v49 = vpop.permute.xlu1 %2304  ;;  %v2283_v20 = vadd.f32 %v2281_v13, %v2247_v30  ;;  %v2488_v37 = vmul.f32 0.0, %v2487_v40  ;;  %v2594_v41 = vstv %s5537_s20  ;;  %v2701_v14 = vstv %s5543_s1  ;;  %s3136_s20 = scalar_lea.vmem %s2824_s22, 128  ;;  %p3141_p3 = scmp.lt.s32.totalorder %s2824_s22, %s2824_s22 }
 0x3b7   :  { %v2307_v42 = vadd.f32 %v2305_v49, %v2265_v52  ;;  %v2308_v10 = vadd.f32 %v2305_v49, %v2266_v4  ;;  %v2595_v3 = vmul.f32 0.0, %v2594_v41  ;;  %v2702_v35 = vmul.f32 0.0, %v2701_v14  ;;  %p3137_p2 = scmp.ne.s32.totalorder %s2824_s22, %s3136_s20  ;;  %p3142_p4 = scmp.lt.s32.totalorder %s3136_s20, %s3136_s20 }
 0x3b8   :  { %v2395_v63 = vstv %s5549_s2  ;;  %v2502_v36 = vstv %s5555_s16  ;;  %v2609_v46 = vstv %s5561_s17  ;;  %v2716_v0 = vstv %s5567_s18 }
 0x3b9   :  { %v2309_v16 = vmax.f32 %v2307_v42, 0.0  ;;  %v2310_v23 = vmax.f32 %v2308_v10, 0.0  ;;  %v2396_v12 = vmul.f32 0.0, %v2395_v63  ;;  %v2503_v32 = vmul.f32 0.0, %v2502_v36  ;;  %p3143_p5 = por %p3142_p4, %p3141_p3 }
 0x3ba   :  { %v2341_v17 = vpop.permute.xlu1 %2340  ;;  %v2610_v59 = vmul.f32 0.0, %v2609_v46  ;;  %v2717_v24 = vmul.f32 0.0, %v2716_v0  ;;  %v2410_v8 = vstv %s5573_s19  ;;  %v2517_v28 = vstv %s5579_s21 }
 0x3bb   :  { %2315 = vrot.lane.b32.xlu1 %v2310_v23, %s6430_s23  ;;  %2313 = vrot.lane.b32.xlu0 %v2309_v16, %s6430_s23  ;;  %v2343_v58 = vadd.f32 %v2341_v17, %v2283_v20  ;;  %v2344_v50 = vadd.f32 %v2341_v17, %v2284_v15  ;;  %v2411_v61 = vmul.f32 0.0, %v2410_v8  ;;  %v2518_v6 = vmul.f32 0.0, %v2517_v28  ;;  %p3144_p6 = pnand %p3143_p5, %p3137_p2 }
 0x3bc   :  { %v2624_v18 = vstv %s5585_s5  ;;  %v2731_v56 = vstv %s5591_s8  ;;  %v2425_v22 = vstv %s5597_s9  ;;  %v2532_v53 = vstv %s5603_s10 }
 0x3bd   :  { %v2345_v2 = vmax.f32 %v2343_v58, 0.0  ;;  %v2346_v45 = vmax.f32 %v2344_v50, 0.0  ;;  %v2625_v44 = vmul.f32 0.0, %v2624_v18  ;;  %v2732_v13 = vmul.f32 0.0, %v2731_v56 }
 0x3be   :  { %v2426_v48 = vmul.f32 0.0, %v2425_v22  ;;  %v2533_v51 = vmul.f32 0.0, %v2532_v53  ;;  %v2639_v39 = vstv %s5609_s11  ;;  %v2746_v9 = vstv %s5615_s12  ;;  %s3005_s12 = sld [smem:[#allocation16 + $0x7]] }
 0x3bf   :  { %2333 = vrot.lane.b32.xlu1 %v2328_v29, %s6430_s23  ;;  %2331 = vrot.lane.b32.xlu0 %v2327_v21, %s6430_s23  ;;  %v2640_v54 = vmul.f32 0.0, %v2639_v39  ;;  %v2747_v11 = vmul.f32 0.0, %v2746_v9  ;;  %v2440_v52 = vstv %s5621_s3  ;;  %v2547_v57 = vstv %s5627_s26 }
 0x3c0   :  { %v2441_v4 = vmul.f32 0.0, %v2440_v52  ;;  %v2548_v47 = vmul.f32 0.0, %v2547_v57  ;;  %v2654_v49 = vstv %s5633_s29  ;;  %s3021_s29 = sld [smem:[#allocation16 + $0x17]] }
 0x3c1   :  { %v2655_v10 = vmul.f32 0.0, %v2654_v49 }
 0x3c3   :  { %2351 = vrot.lane.b32.xlu1 %v2346_v45, %s6430_s23  ;;  %2349 = vrot.lane.b32.xlu0 %v2345_v2, %s6430_s23  ;;  %s5639_s23 = sld [smem:[#allocation16 + $0x1e]] }
 0x3c4   :  { %v2455_v30 = vstv %s3005_s12 }
 0x3c6   :  { %v2669_v21 = vstv %s3021_s29 }
 0x3c7   :  { %2370 = vrot.lane.b32.xlu0 %v2366_v31, %s6027_s7 }
 0x3c9   :  { %v2761_v26 = vstv %s5639_s23  ;;  %s3006_s23 = sld [smem:[#allocation16 + $0x8]] }
 0x3ca   :  { %v2762_v5 = vmul.f32 0.0, %v2761_v26 }
 0x3cb   :  { %2477 = vrot.lane.b32.xlu0 %v2473_v60, %s6027_s7 }
 0x3cf   :  { %2584 = vrot.lane.b32.xlu0 %v2580_v19, %s6027_s7  ;;  %v3055_v19 = vld [vmem:[#allocation6] sm:$0xff] }
 0x3d3   :  { %2691 = vrot.lane.b32.xlu0 %v2687_v7, %s6027_s7 }
 0x3d7   :  { %2385 = vrot.lane.b32.xlu0 %v2381_v55, %s6031_s14 }
 0x3db   :  { %2492 = vrot.lane.b32.xlu0 %v2488_v37, %s6031_s14 }
 0x3df   :  { %2599 = vrot.lane.b32.xlu0 %v2595_v3, %s6031_s14 }
 0x3e3   :  { %2706 = vrot.lane.b32.xlu0 %v2702_v35, %s6031_s14 }
 0x3e7   :  { %2400 = vrot.lane.b32.xlu0 %v2396_v12, %s6034_s4 }
 0x3eb   :  { %2507 = vrot.lane.b32.xlu0 %v2503_v32, %s6034_s4 }
 0x3ef   :  { %2614 = vrot.lane.b32.xlu0 %v2610_v59, %s6034_s4 }
 0x3f3   :  { %2721 = vrot.lane.b32.xlu0 %v2717_v24, %s6034_s4 }
 0x3f7   :  { %2415 = vrot.lane.b32.xlu0 %v2411_v61, %s6040_s0 }
 0x3fb   :  { %2522 = vrot.lane.b32.xlu0 %v2518_v6, %s6040_s0 }
 0x3ff   :  { %2629 = vrot.lane.b32.xlu0 %v2625_v44, %s6040_s0 }
 0x403   :  { %2736 = vrot.lane.b32.xlu0 %v2732_v13, %s6040_s0 }
 0x407   :  { %2430 = vrot.lane.b32.xlu0 %v2426_v48, %s6043_s24 }
 0x40b   :  { %2537 = vrot.lane.b32.xlu0 %v2533_v51, %s6043_s24 }
 0x40f   :  { %2644 = vrot.lane.b32.xlu0 %v2640_v54, %s6043_s24 }
 0x413   :  { %2751 = vrot.lane.b32.xlu0 %v2747_v11, %s6043_s24 }
 0x417   :  { %2445 = vrot.lane.b32.xlu0 %v2441_v4, %s6047_s27 }
 0x419   :  { %v2298_v34 = vpop.permute.xlu1 %2297 }
 0x41a   :  { %v2296_v62 = vpop.permute.xlu0 %2295 }
 0x41b   :  { %v5646_v42 = vsel %vm558_vm6, %v2296_v62, %v2298_v34  ;;  %2552 = vrot.lane.b32.xlu0 %v2548_v47, %s6047_s27 }
 0x41c   :  { %v2367_v43 = vmul.f32 %v2365_v27, %v5646_v42  ;;  %v2456_v16 = vmul.f32 %v2455_v30, %v5646_v42  ;;  %v2412_v3 = vmul.f32 %v2410_v8, %v5646_v42  ;;  %v2427_v12 = vmul.f32 %v2425_v22, %v5646_v42 }
 0x41d   :  { %v2442_v8 = vmul.f32 %v2440_v52, %v5646_v42 }
 0x41e   :  { %2372 = vrot.lane.b32.xlu1 %v2367_v43, %s6027_s7 }
 0x41f   :  { %2659 = vrot.lane.b32.xlu0 %v2655_v10, %s6047_s27 }
 0x423   :  { %2766 = vrot.lane.b32.xlu0 %v2762_v5, %s6047_s27 }
 0x427   :  { %2458 = vrot.lane.b32.xlu0 %v2456_v16, %s6036_s6 }
 0x42d   :  { %v2314_v23 = vpop.permute.xlu0 %2313  ;;  %v2316_v17 = vpop.permute.xlu1 %2315 }
 0x42e   :  { %v5663_v20 = vsel %vm558_vm6, %v2314_v23, %v2316_v17 }
 0x42f   :  { %v2474_v15 = vmul.f32 %v2472_v25, %v5663_v20  ;;  %v2489_v7 = vmul.f32 %v2487_v40, %v5663_v20  ;;  %v2504_v40 = vmul.f32 %v2502_v36, %v5663_v20  ;;  %v2534_v32 = vmul.f32 %v2532_v53, %v5663_v20 }
 0x430   :  { %v2549_v61 = vmul.f32 %v2547_v57, %v5663_v20  ;;  %v2466_v57 = vstv %s3006_s23 }
 0x431   :  { %v2332_v29 = vpop.permute.xlu0 %2331  ;;  %2479 = vrot.lane.b32.xlu1 %v2474_v15, %s6027_s7  ;;  %v2334_v58 = vpop.permute.xlu1 %2333  ;;  %v2468_v47 = vmul.f32 %v2466_v57, %v5663_v20 }
 0x432   :  { %v5670_v50 = vsel %vm558_vm6, %v2332_v29, %v2334_v58  ;;  %v2467_v29 = vmul.f32 0.0, %v2466_v57 }
 0x433   :  { %v2670_v27 = vmul.f32 %v2669_v21, %v5670_v50  ;;  %v2581_v2 = vmul.f32 %v2579_v33, %v5670_v50  ;;  %v2382_v33 = vmul.f32 %v2380_v1, %v5646_v42  ;;  %v2397_v1 = vmul.f32 %v2395_v63, %v5646_v42 }
 0x434   :  { %v2611_v37 = vmul.f32 %v2609_v46, %v5670_v50  ;;  %v2626_v35 = vmul.f32 %v2624_v18, %v5670_v50  ;;  %v2641_v46 = vmul.f32 %v2639_v39, %v5670_v50  ;;  %v2656_v6 = vmul.f32 %v2654_v49, %v5670_v50 }
 0x435   :  { %v2350_v45 = vpop.permute.xlu0 %2349  ;;  %2672 = vrot.lane.b32.xlu0 %v2670_v27, %s6036_s6  ;;  %2586 = vrot.lane.b32.xlu1 %v2581_v2, %s6027_s7  ;;  %v2352_v31 = vpop.permute.xlu1 %2351 }
 0x436   :  { %v5679_v25 = vsel %vm558_vm6, %v2350_v45, %v2352_v31 }
 0x437   :  { %v2688_v60 = vmul.f32 %v2686_v38, %v5679_v25  ;;  %v2596_v38 = vmul.f32 %v2594_v41, %v5670_v50  ;;  %v2703_v55 = vmul.f32 %v2701_v14, %v5679_v25  ;;  %v2718_v41 = vmul.f32 %v2716_v0, %v5679_v25 }
 0x438   :  { %v2519_v14 = vmul.f32 %v2517_v28, %v5663_v20  ;;  %v2733_v63 = vmul.f32 %v2731_v56, %v5679_v25  ;;  %v2748_v0 = vmul.f32 %v2746_v9, %v5679_v25  ;;  %v2763_v44 = vmul.f32 %v2761_v26, %v5679_v25 }
 0x439   :  { %2693 = vrot.lane.b32.xlu1 %v2688_v60, %s6027_s7  ;;  %2795 = vrot.lane.b32.xlu0 %v3055_v19, %s6036_s6  ;;  %v2371_v36 = vpop.permute.xlu0 %2370  ;;  %v2680_v26 = vstv %s5780_s25 }
 0x43a   :  { %v2682_v16 = vmul.f32 %v2680_v26, %v5679_v25 }
 0x43d   :  { %2387 = vrot.lane.b32.xlu1 %v2382_v33, %s6031_s14  ;;  %v2478_v59 = vpop.permute.xlu0 %2477 }
 0x441   :  { %2494 = vrot.lane.b32.xlu1 %v2489_v7, %s6031_s14  ;;  %v2585_v24 = vpop.permute.xlu0 %2584 }
 0x445   :  { %2601 = vrot.lane.b32.xlu1 %v2596_v38, %s6031_s14  ;;  %v5757_v28 = vpop.permute.xlu0 %2691 }
 0x449   :  { %2708 = vrot.lane.b32.xlu1 %v2703_v55, %s6031_s14  ;;  %s3013_s14 = sld [smem:[#allocation16 + $0xf]]  ;;  %v2386_v18 = vpop.permute.xlu0 %2385 }
 0x44d   :  { %2402 = vrot.lane.b32.xlu1 %v2397_v1, %s6034_s4  ;;  %v2493_v22 = vpop.permute.xlu0 %2492 }
 0x44f   :  { %v2562_v56 = vstv %s3013_s14 }
 0x450   :  { %v2563_v13 = vmul.f32 %v2562_v56, %v5663_v20 }
 0x451   :  { %2509 = vrot.lane.b32.xlu1 %v2504_v40, %s6034_s4  ;;  %v2600_v11 = vpop.permute.xlu0 %2599 }
 0x455   :  { %2616 = vrot.lane.b32.xlu1 %v2611_v37, %s6034_s4  ;;  %v5776_v52 = vpop.permute.xlu0 %2706 }
 0x459   :  { %2723 = vrot.lane.b32.xlu1 %v2718_v41, %s6034_s4  ;;  %v5778_v4 = vpop.permute.xlu0 %2400 }
 0x45d   :  { %2417 = vrot.lane.b32.xlu1 %v2412_v3, %s6040_s0  ;;  %v5783_v62 = vpop.permute.xlu0 %2507 }
 0x461   :  { %2524 = vrot.lane.b32.xlu1 %v2519_v14, %s6040_s0  ;;  %v5787_v30 = vpop.permute.xlu0 %2614 }
 0x465   :  { %2631 = vrot.lane.b32.xlu1 %v2626_v35, %s6040_s0  ;;  %v2722_v27 = vpop.permute.xlu0 %2721 }
 0x469   :  { %2738 = vrot.lane.b32.xlu1 %v2733_v63, %s6040_s0  ;;  %s5763_s0 = sld [smem:[#allocation16]]  ;;  %v2416_v1 = vpop.permute.xlu0 %2415 }
 0x46d   :  { %2432 = vrot.lane.b32.xlu1 %v2427_v12, %s6043_s24  ;;  %v2523_v63 = vpop.permute.xlu0 %2522 }
 0x46f   :  { %v2359_v48 = vstv %s5763_s0 }
 0x470   :  { %v2361_v51 = vmul.f32 %v2359_v48, %v5646_v42  ;;  %v2360_v23 = vmul.f32 0.0, %v2359_v48 }
 0x471   :  { %2539 = vrot.lane.b32.xlu1 %v2534_v32, %s6043_s24 }
 0x475   :  { %2646 = vrot.lane.b32.xlu1 %v2641_v46, %s6043_s24 }
 0x479   :  { %2753 = vrot.lane.b32.xlu1 %v2748_v0, %s6043_s24  ;;  %s3029_s24 = sld [smem:[#allocation16 + $0x1f]] }
 0x47d   :  { %2447 = vrot.lane.b32.xlu1 %v2442_v8, %s6047_s27 }
 0x47f   :  { %v2776_v53 = vstv %s3029_s24 }
 0x480   :  { %v2777_v39 = vmul.f32 %v2776_v53, %v5679_v25 }
 0x481   :  { %2554 = vrot.lane.b32.xlu1 %v2549_v61, %s6047_s27 }
 0x485   :  { %2661 = vrot.lane.b32.xlu1 %v2656_v6, %s6047_s27 }
 0x489   :  { %2768 = vrot.lane.b32.xlu1 %v2763_v44, %s6047_s27  ;;  %s3014_s27 = sld [smem:[#allocation16 + $0x10]] }
 0x48d   :  { %2565 = vrot.lane.b32.xlu1 %v2563_v13, %s6036_s6 }
 0x48f   :  { %v2573_v34 = vstv %s3014_s27 }
 0x490   :  { %v2373_v54 = vpop.permute.xlu1 %2372  ;;  %v2575_v10 = vmul.f32 %v2573_v34, %v5670_v50  ;;  %v2574_v19 = vmul.f32 0.0, %v2573_v34 }
 0x491   :  { %v2378_v9 = vadd.f32 %v2373_v54, %v2361_v51  ;;  %2779 = vrot.lane.b32.xlu1 %v2777_v39, %s6036_s6  ;;  %v2374_v15 = vsel %vm160_vm0, %v2371_v36, %v2373_v54  ;;  %v2630_v36 = vpop.permute.xlu0 %2629 }
 0x492   :  { %v2377_v20 = vadd.f32 %v2374_v15, %v2360_v23 }
 0x4a3   :  { %v2480_v49 = vpop.permute.xlu1 %2479 }
 0x4a4   :  { %v2485_v42 = vadd.f32 %v2480_v49, %v2468_v47  ;;  %v2481_v2 = vsel %vm160_vm0, %v2478_v59, %v2480_v49  ;;  %v2737_v59 = vpop.permute.xlu0 %2736 }
 0x4a5   :  { %v2484_v60 = vadd.f32 %v2481_v2, %v2467_v29 }
 0x4a7   :  { %v2587_v43 = vpop.permute.xlu1 %2586 }
 0x4a8   :  { %v2592_v5 = vadd.f32 %v2587_v43, %v2575_v10  ;;  %v2588_v25 = vsel %vm160_vm0, %v2585_v24, %v2587_v43  ;;  %v2431_v24 = vpop.permute.xlu0 %2430 }
 0x4a9   :  { %v2591_v40 = vadd.f32 %v2588_v25, %v2574_v19 }
 0x4ab   :  { %v2694_v17 = vpop.permute.xlu1 %2693 }
 0x4ac   :  { %v2699_v21 = vadd.f32 %v2694_v17, %v2682_v16  ;;  %v2538_v6 = vpop.permute.xlu0 %2537 }
 0x4af   :  { %v2388_v58 = vpop.permute.xlu1 %2387 }
 0x4b0   :  { %v2389_v50 = vsel %vm221_vm1, %v2386_v18, %v2388_v58  ;;  %v2393_v45 = vadd.f32 %v2388_v58, %v2378_v9  ;;  %v2645_v44 = vpop.permute.xlu0 %2644  ;;  %v2681_v9 = vmul.f32 0.0, %v2680_v26 }
 0x4b1   :  { %v2392_v31 = vadd.f32 %v2389_v50, %v2377_v20 }
 0x4b3   :  { %v2495_v33 = vpop.permute.xlu1 %2494 }
 0x4b4   :  { %v2496_v7 = vsel %vm221_vm1, %v2493_v22, %v2495_v33  ;;  %v2500_v38 = vadd.f32 %v2495_v33, %v2485_v42  ;;  %v2752_v22 = vpop.permute.xlu0 %2751 }
 0x4b5   :  { %v2499_v55 = vadd.f32 %v2496_v7, %v2484_v60 }
 0x4b7   :  { %v2602_v37 = vpop.permute.xlu1 %2601 }
 0x4b8   :  { %v2603_v41 = vsel %vm221_vm1, %v2600_v11, %v2602_v37  ;;  %v2607_v3 = vadd.f32 %v2602_v37, %v2592_v5  ;;  %v2446_v53 = vpop.permute.xlu0 %2445  ;;  %v2695_v11 = vsel %vm160_vm0, %v5757_v28, %v2694_v17 }
 0x4b9   :  { %v2606_v14 = vadd.f32 %v2603_v41, %v2591_v40  ;;  %v2698_v34 = vadd.f32 %v2695_v11, %v2681_v9 }
 0x4bb   :  { %v2709_v35 = vpop.permute.xlu1 %2708 }
 0x4bc   :  { %v2553_v54 = vpop.permute.xlu0 %2552  ;;  %v2710_v47 = vsel %vm221_vm1, %v5776_v52, %v2709_v35  ;;  %v2714_v16 = vadd.f32 %v2709_v35, %v2699_v21 }
 0x4bd   :  { %v2713_v5 = vadd.f32 %v2710_v47, %v2698_v34 }
 0x4bf   :  { %v2403_v12 = vpop.permute.xlu1 %2402 }
 0x4c0   :  { %v2660_v49 = vpop.permute.xlu0 %2659  ;;  %v2404_v42 = vsel %vm282_vm2, %v5778_v4, %v2403_v12  ;;  %v2408_v15 = vadd.f32 %v2403_v12, %v2393_v45 }
 0x4c1   :  { %v2407_v23 = vadd.f32 %v2404_v42, %v2392_v31 }
 0x4c3   :  { %v2510_v32 = vpop.permute.xlu1 %2509 }
 0x4c4   :  { %v2511_v10 = vsel %vm282_vm2, %v5783_v62, %v2510_v32  ;;  %v2515_v20 = vadd.f32 %v2510_v32, %v2500_v38  ;;  %v2767_v60 = vpop.permute.xlu0 %2766 }
 0x4c5   :  { %v2514_v17 = vadd.f32 %v2511_v10, %v2499_v55 }
 0x4c7   :  { %v2617_v46 = vpop.permute.xlu1 %2616 }
 0x4c8   :  { %v2618_v28 = vsel %vm282_vm2, %v5787_v30, %v2617_v46  ;;  %v2622_v29 = vadd.f32 %v2617_v46, %v2607_v3 }
 0x4c9   :  { %v2621_v31 = vadd.f32 %v2618_v28, %v2606_v14 }
 0x4cb   :  { %v2724_v0 = vpop.permute.xlu1 %2723 }
 0x4cc   :  { %v2725_v52 = vsel %vm282_vm2, %v2722_v27, %v2724_v0  ;;  %v2729_v19 = vadd.f32 %v2724_v0, %v2714_v16 }
 0x4cd   :  { %v2728_v45 = vadd.f32 %v2725_v52, %v2713_v5 }
 0x4cf   :  { %v2418_v8 = vpop.permute.xlu1 %2417 }
 0x4d0   :  { %v2419_v26 = vsel %vm343_vm3, %v2416_v1, %v2418_v8  ;;  %v2423_v2 = vadd.f32 %v2418_v8, %v2408_v15  ;;  %v2459_v8 = vpop.permute.xlu0 %2458 }
 0x4d1   :  { %v2422_v58 = vadd.f32 %v2419_v26, %v2407_v23  ;;  %v2791_v23 = vstv %s6442_s15 }
 0x4d3   :  { %v2525_v61 = vpop.permute.xlu1 %2524 }
 0x4d4   :  { %v2526_v62 = vsel %vm343_vm3, %v2523_v63, %v2525_v61  ;;  %v2530_v33 = vadd.f32 %v2525_v61, %v2515_v20 }
 0x4d5   :  { %v2529_v38 = vadd.f32 %v2526_v62, %v2514_v17  ;;  %v3180_v62 = vmov 0.0  }
 0x4d7   :  { %v2632_v18 = vpop.permute.xlu1 %2631 }
 0x4d8   :  { %v2633_v21 = vsel %vm343_vm3, %v2630_v36, %v2632_v18  ;;  %v2637_v1 = vadd.f32 %v2632_v18, %v2622_v29 }
 0x4d9   :  { %v2636_v55 = vadd.f32 %v2633_v21, %v2621_v31 }
 0x4db   :  { %v2739_v56 = vpop.permute.xlu1 %2738 }
 0x4dc   :  { %v2740_v40 = vsel %vm343_vm3, %v2737_v59, %v2739_v56  ;;  %v2744_v63 = vadd.f32 %v2739_v56, %v2729_v19 }
 0x4dd   :  { %v2743_v46 = vadd.f32 %v2740_v40, %v2728_v45 }
 0x4df   :  { %v2433_v13 = vpop.permute.xlu1 %2432 }
 0x4e0   :  { %v2434_v4 = vsel %vm404_vm4, %v2431_v24, %v2433_v13  ;;  %v2438_v25 = vadd.f32 %v2433_v13, %v2423_v2 }
 0x4e1   :  { %v2437_v27 = vadd.f32 %v2434_v4, %v2422_v58 }
 0x4e3   :  { %v2540_v48 = vpop.permute.xlu1 %2539 }
 0x4e4   :  { %v2541_v7 = vsel %vm404_vm4, %v2538_v6, %v2540_v48  ;;  %v2545_v36 = vadd.f32 %v2540_v48, %v2530_v33 }
 0x4e5   :  { %v2544_v12 = vadd.f32 %v2541_v7, %v2529_v38 }
 0x4e7   :  { %v2647_v51 = vpop.permute.xlu1 %2646 }
 0x4e8   :  { %v2648_v37 = vsel %vm404_vm4, %v2645_v44, %v2647_v51  ;;  %v2652_v0 = vadd.f32 %v2647_v51, %v2637_v1 }
 0x4e9   :  { %v2651_v61 = vadd.f32 %v2648_v37, %v2636_v55 }
 0x4eb   :  { %v2754_v39 = vpop.permute.xlu1 %2753 }
 0x4ec   :  { %v2755_v32 = vsel %vm404_vm4, %v2752_v22, %v2754_v39  ;;  %v2759_v6 = vadd.f32 %v2754_v39, %v2744_v63 }
 0x4ed   :  { %v2758_v44 = vadd.f32 %v2755_v32, %v2743_v46 }
 0x4ef   :  { %v2448_v57 = vpop.permute.xlu1 %2447 }
 0x4f0   :  { %v2449_v30 = vsel %vm465_vm5, %v2446_v53, %v2448_v57  ;;  %v2453_v3 = vadd.f32 %v2448_v57, %v2438_v25 }
 0x4f1   :  { %v2452_v41 = vadd.f32 %v2449_v30, %v2437_v27 }
 0x4f2   :  { %v2462_v53 = vadd.f32 %v2459_v8, %v2453_v3 }
 0x4f3   :  { %v2555_v43 = vpop.permute.xlu1 %2554  ;;  %v2461_v13 = vadd.f32 %v2459_v8, %v2452_v41 }
 0x4f4   :  { %v2556_v14 = vsel %vm465_vm5, %v2553_v54, %v2555_v43  ;;  %v2560_v18 = vadd.f32 %v2555_v43, %v2545_v36 }
 0x4f5   :  { %v2559_v59 = vadd.f32 %v2556_v14, %v2544_v12 }
 0x4f7   :  { %v2662_v50 = vpop.permute.xlu1 %2661 }
 0x4f8   :  { %v2663_v24 = vsel %vm465_vm5, %v2660_v49, %v2662_v50  ;;  %v2667_v11 = vadd.f32 %v2662_v50, %v2652_v0  ;;  %v2673_v49 = vpop.permute.xlu0 %2672 }
 0x4f9   :  { %v2666_v56 = vadd.f32 %v2663_v24, %v2651_v61 }
 0x4fa   :  { %v2676_v39 = vadd.f32 %v2673_v49, %v2667_v11 }
 0x4fb   :  { %v2769_v35 = vpop.permute.xlu1 %2768  ;;  %v2675_v10 = vadd.f32 %v2673_v49, %v2666_v56 }
 0x4fc   :  { %v2770_v54 = vsel %vm465_vm5, %v2767_v60, %v2769_v35  ;;  %v2774_v47 = vadd.f32 %v2769_v35, %v2759_v6  ;;  %v2796_v52 = vpop.permute.xlu0 %2795 }
 0x4fd   :  { %v2773_v22 = vadd.f32 %v2770_v54, %v2758_v44 }
 0x4ff   :  { %v2566_v9 = vpop.permute.xlu1 %2565 }
 0x500   :  { %v2568_v48 = vadd.f32 %v2566_v9, %v2559_v59  ;;  %v2569_v57 = vadd.f32 %v2566_v9, %v2560_v18 }
 0x502   :  { %v2784_v51 = vadd.f32 %v2568_v48, %v2461_v13  ;;  %v2785_v34 = vadd.f32 %v2569_v57, %v2462_v53 }
 0x503   :  { %v2780_v42 = vpop.permute.xlu1 %2779 }
 0x504   :  { %v2782_v5 = vadd.f32 %v2780_v42, %v2773_v22  ;;  %v2783_v43 = vadd.f32 %v2780_v42, %v2774_v47 }
 0x506   :  { %v2786_v16 = vadd.f32 %v2782_v5, %v2675_v10  ;;  %v2787_v26 = vadd.f32 %v2783_v43, %v2676_v39 }
 0x508   :  { %v2788_v15 = vadd.f32 %v2786_v16, %v2784_v51  ;;  %v2789_v28 = vadd.f32 %v2787_v26, %v2785_v34 }
 0x50a   :  { %v2792_v17 = vadd.f32 %v2791_v23, %v2788_v15  ;;  %v2793_v20 = vadd.f32 %v2791_v23, %v2789_v28 }
 0x50c   :  { %v2798_v29 = vadd.f32 %v2796_v52, %v2792_v17  ;;  %v2799_v4 = vadd.f32 %v2796_v52, %v2793_v20 }
 0x50e   :  { %v3030_v58 = vadd.f32 -1.0, %v2798_v29  ;;  %v3031_v2 = vadd.f32 -1.0, %v2799_v4 }
 0x510   :  { %vm2802_vm7 = vcmp.ge.f32.partialorder %v3030_v58, 0.0  ;;  %vm2803_vm8 = vcmp.ge.f32.partialorder %v3031_v2, 0.0 }
 0x511   :  { %v3032_v21 = vsel %vm2802_vm7, 1.0, %v3180_v62  ;;  %v3033_v50 = vsel %vm2803_vm8, 1.0, %v3180_v62 }
 0x512   :  { %v3050_v60 = vpack.i.bf16 %v3033_v50, %v3032_v21 }
 0x514   :  { %3051 = vrot.lane.b32.xlu1 %v3050_v60, %s6443_s30 }
 0x586   :  { %v3052_v31 = vpop.permute.xlu1 %3051 }
 0x587   :  { %v3054_v45 = vunpack.i.h.bf16 %v3052_v31  ;;  %v3053_v19 = vunpack.i.l.bf16 %v3052_v31 }
 0x589   :  { %v2814_v30 = vsel %vm558_vm6, %v3053_v19, %v3054_v45 }
 0x58a   :  { %2816 = vst [vmem:[#allocation17] sm:$0xff] %v2814_v30 }
 0x58b   :  { %3147 = shalt.err (!%p3144_p6)
}
 0x58c   :  { %s6444_s16 = sld [smem:[#allocation180_spill]] }
 0x592   :  { %2826 = dma.vmem_to_hbm [thread:$0]  %s2824_s22, 128, %s6444_s16, [#allocation8]  }
 0x593   :  { %3164 = dma.done.wait [#allocation8], 128  }
 0x594   :  { %3165 = vsyncadd [#allocation8], 4294967168 }
 0x595   :  { %2830 = vsyncpa [#allocation7], 1 }
 0x596   :  { %2831 = vsyncpa [#allocation8], 1 }
 0x597   :  { %2832 = vsyncpa [#allocation9], 1 }
 0x598   :  { %2833 = vsyncpa [#allocation12], 1 }
 0x599   :  { %2834 = vsyncpa [#allocation15], 1 }

</bundles_post_ra>
